<compile_context>
chip_gen: v7x
topology: tpu7x:2x2x1
jax: 0.10.0
libtpu: 0.0.40
codegen_flags: <defaults>
</compile_context>

<pallas_src>
import jax
import jax.numpy as jnp
from jax import lax
from jax.experimental import pallas as pl
from jax.experimental.pallas import tpu as pltpu

EPS = 1e-5
_NEG = float(jnp.finfo(jnp.float32).min)   # maxpool 'same' padding value


# --------------------------------------------------------------------------------------
# Fused whole-network kernel (one invocation per BB batch elements)
# --------------------------------------------------------------------------------------
def _make_kernel(plan, L, BB):
    padm = plan["pad_max"]
    blocks = plan["blocks"]
    cdt = plan["dot_dtype"]                # dtype fed to the MXU (f32 by default, bf16 on v6e/v7x)

    def kernel(*args):
        out_ref = args[-3]                 # (BB, n_cls)
        conv_ref = args[-2]                # (BB, L + 2*padm, conv_lanes)  im2col slab (zero strips)
        mp_ref = args[-1]                  # (BB, L + 2*padm, mp_lanes)    _NEG-padded maxpool slab
        refs = iter(args[:-3])
        x_ref = next(refs)                 # (BB, L, C_in0)
        xl_ref = next(refs)                # (BB, nfl)

        # One-time init of the two maxpool pad rows; data rows are overwritten every block and
        # lanes beyond the current c_in are never read.
        mp_lanes = mp_ref.shape[2]
        mp_ref[:, padm - 1:padm, :] = jnp.full((BB, 1, mp_lanes), _NEG, jnp.float32)
        mp_ref[:, padm + L:padm + L + 1, :] = jnp.full((BB, 1, mp_lanes), _NEG, jnp.float32)

        # Flatten batch*time onto the MXU M axis (channels stay on lanes).
        x = x_ref[...].reshape(BB * L, x_ref.shape[2]).astype(jnp.float32)

        for blk in blocks:
            c_in, c_conv, kmax = blk["c_in"], blk["c_conv"], blk["kmax"]
            p = kmax // 2
            kc = kmax * c_conv

            # 1x1 bottleneck conv
            if blk["use_bneck"]:
                wb_ref = next(refs)
                xb = jnp.dot(x.astype(cdt), wb_ref[...], preferred_element_type=jnp.float32)
            else:
                xb = x

            wt_ref = next(refs)            # (kmax*c_conv, 4*Cout)  BN-folded, all 3 conv branches
            wmp_ref = next(refs)           # (c_in, 4*Cout)         BN-folded maxpool-branch 1x1
            b_ref = next(refs)             # (1, 4*Cout)            folded BN bias

            # ---- K-concatenated im2col: column group j holds xb shifted by (j - p) -------------
            # Data is written directly at the shifted rows; only the (<= p)-row out-of-range
            # strips inside the read window are zeroed (no full-slab refills).
            xb3 = xb.reshape(BB, L, c_conv)
            for j in range(kmax):
                o = j - p
                lo = j * c_conv
                conv_ref[:, padm - o:padm - o + L, lo:lo + c_conv] = xb3
                if o < 0:
                    conv_ref[:, padm:padm - o, lo:lo + c_conv] = (
                        jnp.zeros((BB, -o, c_conv), jnp.float32))
                elif o > 0:
                    conv_ref[:, padm + L - o:padm + L, lo:lo + c_conv] = (
                        jnp.zeros((BB, o, c_conv), jnp.float32))

            xcat = conv_ref[:, padm:padm + L, :kc].reshape(BB * L, kc)
            acc = jnp.dot(xcat.astype(cdt), wt_ref[...],
                          preferred_element_type=jnp.float32)      # ONE matmul for all conv taps

            # ---- maxpool(3, stride 1, 'same') branch on the block input, folded 1x1 conv -------
            x3 = x.reshape(BB, L, c_in)
            mp_ref[:, padm:padm + L, :c_in] = x3
            mp = jnp.maximum(jnp.maximum(mp_ref[:, padm - 1:padm - 1 + L, :c_in], x3),
                             mp_ref[:, padm + 1:padm + 1 + L, :c_in])
            acc = acc + jnp.dot(mp.reshape(BB * L, c_in).astype(cdt), wmp_ref[...],
                                preferred_element_type=jnp.float32)
            y = acc + b_ref[...]           # folded eval-mode BatchNorm

            # residual 1x1 conv (BN folded) + add, then SiLU
            if blk["residual"]:
                wr_ref = next(refs)
                br_ref = next(refs)
                y = (y + jnp.dot(x.astype(cdt), wr_ref[...], preferred_element_type=jnp.float32)
                     + br_ref[...])
            x = y * jax.nn.sigmoid(y)      # SiLU

        # ---- global average pool over time as an MXU matmul (avoids mid-axis vector reduce) ----
        row = lax.broadcasted_iota(jnp.int32, (BB, BB * L), 0)
        col = lax.broadcasted_iota(jnp.int32, (BB, BB * L), 1)
        sel = (col >= row * L) & (col < row * L + L)
        pool = jnp.where(sel, 1.0 / L, 0.0).astype(jnp.float32)
        feats = jnp.dot(pool.astype(cdt), x.astype(cdt),
                        preferred_element_type=jnp.float32)         # (BB, 4*Cout)

        xl = xl_ref[...].astype(jnp.float32)                         # (BB, nfl)

        # head: [x_long | feats] @ W1 (BN2 folded) -> SiLU -> (dropout = identity) -> W2
        w1l_ref = next(refs); w1s_ref = next(refs); b1_ref = next(refs)
        w2_ref = next(refs); b2_ref = next(refs)
        h = (jnp.dot(xl.astype(cdt), w1l_ref[...], preferred_element_type=jnp.float32)
             + jnp.dot(feats.astype(cdt), w1s_ref[...], preferred_element_type=jnp.float32)
             + b1_ref[...])
        h = h * jax.nn.sigmoid(h)
        out_ref[...] = (jnp.dot(h.astype(cdt), w2_ref[...], preferred_element_type=jnp.float32)
                        + b2_ref[...])

    return kernel


def long_network_forward(x, plan, weights, block_batch=8):
    """x: (B, C_in, number_features_long + L) in PyTorch NCW layout."""
    nfl = plan["nfl"]
    n_cls = plan["n_classes"]
    B, c_in0, T = x.shape
    L = T - nfl                                             # L multiple of 8 keeps reshapes free

    x_long = x[:, 0, :nfl]                                  # (B, nfl)
    x_short = jnp.transpose(x[:, :, nfl:], (0, 2, 1))       # (B, L, C_in): channels -> lanes

    BB = int(block_batch)
    Bp = ((B + BB - 1) // BB) * BB                          # pad batch to a multiple of BB
    if Bp != B:
        x_short = jnp.pad(x_short, ((0, Bp - B), (0, 0), (0, 0)))
        x_long = jnp.pad(x_long, ((0, Bp - B), (0, 0)))

    padm = plan["pad_max"]
    conv_lanes = ((plan["k_flat_max"] + 127) // 128) * 128
    mp_lanes = ((plan["c_in_max"] + 127) // 128) * 128

    in_specs = ([pl.BlockSpec((BB, L, c_in0), lambda b: (b, 0, 0)),
                 pl.BlockSpec((BB, nfl), lambda b: (b, 0))]
                + [pl.BlockSpec(tuple(w.shape), lambda b, nd=w.ndim: (0,) * nd)
                   for w in weights])                       # weights: VMEM-resident, const index

    out = pl.pallas_call(
        _make_kernel(plan, L, BB),
        out_shape=jax.ShapeDtypeStruct((Bp, n_cls), jnp.float32),
        grid=(Bp // BB,),
        in_specs=in_specs,
        out_specs=pl.BlockSpec((BB, n_cls), lambda b: (b, 0)),
        scratch_shapes=[pltpu.VMEM((BB, L + 2 * padm, conv_lanes), jnp.float32),
                        pltpu.VMEM((BB, L + 2 * padm, mp_lanes), jnp.float32)],
        compiler_params=pltpu.CompilerParams(
            dimension_semantics=("parallel",),
            vmem_limit_bytes=32 * 1024 * 1024),
    )(x_short, x_long, *weights)
    return out[:B]


# --------------------------------------------------------------------------------------
# Parameter fusion: fold eval-mode BN into weights, fuse the inception branches per block
# --------------------------------------------------------------------------------------
def _fold_bn(gamma, beta, mean, var):
    s = gamma / jnp.sqrt(var + EPS)
    return s, beta - mean * s


def fuse_params(params, compute_dtype=jnp.float32):
    """compute_dtype: dtype of the MXU inputs (use jnp.bfloat16 on v6e/v7x; f32 by default)."""
    nfl = params["number_features_long"]
    weights = []
    blocks_meta = []
    for bp in params["short"]["blocks"]:
        branch_ws = bp["branch_ws"]                       # [(Cout, Cconv, K_b)]
        out_conv, c_conv = int(branch_ws[0].shape[0]), int(branch_ws[0].shape[1])
        c_out = 4 * out_conv
        mp_w = bp["mp_w"]                                 # (Cout, Cin, 1)
        c_in = int(mp_w.shape[1])
        use_bneck = bp["bottleneck_w"] is not None
        bks = [int(w.shape[2]) for w in branch_ws]
        kmax = max(bks)
        p = kmax // 2
        s, b_bn = _fold_bn(*bp["bn"])                     # (1, c_out)

        if use_bneck:
            weights.append(jnp.transpose(bp["bottleneck_w"][:, :, 0]).astype(compute_dtype))

        # (kmax*c_conv, c_out): K-concatenated (tap-major, channel-minor) fused weights of the
        # three conv branches, BN-scaled -- one matmul per block in the kernel.
        w_taps = jnp.zeros((kmax, c_conv, c_out), jnp.float32)
        for b_idx, (kb, wb) in enumerate(zip(bks, branch_ws)):
            pb = kb // 2
            col = b_idx * out_conv
            for jb in range(kb):
                w_taps = w_taps.at[jb + p - pb, :, col:col + out_conv].set(
                    jnp.transpose(wb[:, :, jb]))
        w_taps = (w_taps * s.reshape(1, 1, c_out)).reshape(kmax * c_conv, c_out)
        weights.append(w_taps.astype(compute_dtype))

        # maxpool-branch 1x1 conv occupies the last output column group, BN-scaled.
        w_mp = jnp.zeros((c_in, c_out), jnp.float32)
        w_mp = w_mp.at[:, 3 * out_conv:].set(jnp.transpose(mp_w[:, :, 0]))
        weights.append((w_mp * s).astype(compute_dtype))
        weights.append(b_bn.astype(jnp.float32))

        if bp["residual"]:
            s_r, b_r = _fold_bn(*bp["res_bn"])
            weights.append((jnp.transpose(bp["res_w"][:, :, 0]) * s_r).astype(compute_dtype))
            weights.append(b_r.astype(jnp.float32))

        blocks_meta.append(dict(use_bneck=use_bneck, kmax=kmax, c_in=c_in,
                                c_conv=c_conv, residual=bp["residual"]))

    hp = params["head"]
    sg = hp["g"] / jnp.sqrt(hp["v"] + EPS)                # fold BatchNorm1d(8) into hidden linear
    w1f = hp["w1"] * sg
    b1f = (hp["b1"] - hp["m"]) * sg + hp["be"]
    weights += [w1f[:nfl, :].astype(compute_dtype), w1f[nfl:, :].astype(compute_dtype),
                b1f.astype(jnp.float32),
                hp["w2"].astype(compute_dtype), hp["b2"].astype(jnp.float32)]

    plan = dict(
        nfl=nfl,
        n_classes=int(hp["w2"].shape[1]),
        blocks=blocks_meta,
        pad_max=max(1, max(m["kmax"] // 2 for m in blocks_meta)),
        k_flat_max=max(m["kmax"] * m["c_conv"] for m in blocks_meta),
        c_in_max=max(m["c_in"] for m in blocks_meta),
        dot_dtype=compute_dtype,
    )
    return plan, weights


# --------------------------------------------------------------------------------------
# Deterministic parameter init (raw / unfused, PyTorch-like shapes)
# --------------------------------------------------------------------------------------
def _bn_params(c):
    return (jnp.ones((1, c), jnp.float32), jnp.zeros((1, c), jnp.float32),
            jnp.zeros((1, c), jnp.float32), jnp.ones((1, c), jnp.float32))


def _normal(key, shape, scale=0.1):
    return scale * jax.random.normal(key, shape, jnp.float32)


def init_params(key, number_features_long, num_blocks, in_channels, out_conv,
                bottleneck, kernel_sizes, use_residuals, num_pred_classes):
    if use_residuals == "default":
        residuals = [((i + 1) % 3 == 0) for i in range(num_blocks)]
    elif isinstance(use_residuals, bool):
        residuals = [use_residuals] * num_blocks
    else:
        residuals = list(use_residuals)
    if isinstance(kernel_sizes, int):
        kernel_sizes = [kernel_sizes] * num_blocks
    assert all(k % 2 == 1 for k in kernel_sizes), "odd kernel sizes required for 'same' padding"

    keys = iter(jax.random.split(key, 8 * num_blocks + 4))
    blocks = []
    c_in = in_channels
    for i in range(num_blocks):
        k = kernel_sizes[i]
        k_mid = max(k // 2, 1)
        k_mid = k_mid if k_mid % 2 == 1 else k_mid + 1
        branch_ks = [k, k_mid, 1]
        use_bneck = c_in > 1 and bottleneck > 0
        bneck_w = _normal(next(keys), (bottleneck, c_in, 1)) if use_bneck else None
        conv_in = bottleneck if use_bneck else c_in
        branch_ws = [_normal(next(keys), (out_conv, conv_in, bk)) for bk in branch_ks]
        mp_w = _normal(next(keys), (out_conv, c_in, 1))
        c_out = 4 * out_conv
        blocks.append({
            "bottleneck_w": bneck_w,
            "branch_ws": branch_ws,
            "mp_w": mp_w,
            "bn": _bn_params(c_out),
            "residual": residuals[i],
            "res_w": _normal(next(keys), (c_out, c_in, 1)) if residuals[i] else None,
            "res_bn": _bn_params(c_out) if residuals[i] else None,
        })
        c_in = c_out

    feat_dim = number_features_long + out_conv * 4
    head = {
        "w1": _normal(next(keys), (feat_dim, 8)),
        "b1": jnp.zeros((1, 8), jnp.float32),
        "g": jnp.ones((1, 8), jnp.float32),
        "be": jnp.zeros((1, 8), jnp.float32),
        "m": jnp.zeros((1, 8), jnp.float32),
        "v": jnp.ones((1, 8), jnp.float32),
        "w2": _normal(next(keys), (8, num_pred_classes)),
        "b2": jnp.zeros((1, num_pred_classes), jnp.float32),
    }
    return {"number_features_long": number_features_long,
            "short": {"blocks": blocks}, "head": head}


# --------------------------------------------------------------------------------------
# Pure-XLA reference (unfused), used only for a correctness check in __main__
# --------------------------------------------------------------------------------------
def _reference_forward(x, params):
    hp = lax.Precision.HIGHEST

    def conv1d_same(x, w):                              # x (B,Cin,L), w (Cout,Cin,K)
        K = int(w.shape[2]); p = K // 2; L = x.shape[2]
        xp = jnp.pad(x, ((0, 0), (0, 0), (p, p)))
        y = 0.0
        for j in range(K):
            y = y + jnp.einsum("bcl,oc->bol", xp[:, :, j:j + L], w[:, :, j], precision=hp)
        return y

    def bn_ncl(x, g, b, m, v):
        C = x.shape[1]
        s = (g / jnp.sqrt(v + EPS)).reshape(1, C, 1)
        return (x - m.reshape(1, C, 1)) * s + b.reshape(1, C, 1)

    def silu(z):
        return z * jax.nn.sigmoid(z)

    nfl = params["number_features_long"]
    xl = x[:, 0, :nfl]
    h = x[:, :, nfl:]
    for bp in params["short"]["blocks"]:
        inp = h
        hb = conv1d_same(h, bp["bottleneck_w"]) if bp["bottleneck_w"] is not None else h
        branches = [conv1d_same(hb, w) for w in bp["branch_ws"]]
        L = inp.shape[2]
        xp = jnp.pad(inp, ((0, 0), (0, 0), (1, 1)), constant_values=_NEG)
        mp = jnp.maximum(jnp.maximum(xp[:, :, 0:L], xp[:, :, 1:L + 1]), xp[:, :, 2:L + 2])
        branches.append(conv1d_same(mp, bp["mp_w"]))
        y = bn_ncl(jnp.concatenate(branches, axis=1), *bp["bn"])
        if bp["residual"]:
            y = y + bn_ncl(conv1d_same(inp, bp["res_w"]), *bp["res_bn"])
        h = silu(y)
    feats = jnp.mean(h, axis=2)
    cat = jnp.concatenate([xl, feats], axis=1)
    hd = params["head"]
    z = jnp.dot(cat, hd["w1"], precision=hp) + hd["b1"]
    z = (z - hd["m"]) * (hd["g"] / jnp.sqrt(hd["v"] + EPS)) + hd["be"]
    z = silu(z)
    return jnp.dot(z, hd["w2"], precision=hp) + hd["b2"]


# --------------------------------------------------------------------------------------
if __name__ == "__main__":
    key = jax.random.PRNGKey(0)
    pkey, xkey = jax.random.split(key)

    # Small, module-consistent config (3 blocks so the residual path is exercised).
    batch = 16                       # 2 grid steps of BB=8 -> even split across v7x's 2 TCs
    block_batch = 8                  # BB * L = 128 rows per matmul
    number_features_long = 6
    in_channels_short = 3
    seq_len_short = 16
    total_len = number_features_long + seq_len_short
    num_blocks = 3
    number_channel_out_conv = 8
    bottleneck_channels = 4
    kernel_sizes = [5, 3, 3]
    num_pred_classes = 2

    params = init_params(pkey, number_features_long, num_blocks, in_channels_short,
                         number_channel_out_conv, bottleneck_channels, kernel_sizes,
                         "default", num_pred_classes)
    # compute_dtype=jnp.bfloat16 doubles MXU throughput on v6e/v7x; f32 kept here so the
    # reference check below passes with tight tolerances.
    plan, weights = fuse_params(params, compute_dtype=jnp.float32)

    x = jax.random.normal(xkey, (batch, in_channels_short, total_len), jnp.float32)

    fwd = jax.jit(lambda inp: long_network_forward(inp, plan, weights, block_batch=block_batch))
    out = fwd(x)
    jax.block_until_ready(out)

    ref = _reference_forward(x, params)
    assert out.shape == (batch, num_pred_classes)
    assert out.dtype == jnp.float32
    assert jnp.allclose(out, ref, rtol=1e-2, atol=1e-3), (out, ref)
    print("KERNEL_OK")
</pallas_src>

<mosaic_0001>
module attributes {stable_mosaic.version = 11 : i64} {
  func.func @kernel(%arg0: i32, %arg1: memref<8x16x3xf32, #tpu.memory_space<vmem>>, %arg2: memref<8x6xf32, #tpu.memory_space<vmem>>, %arg3: memref<3x4xf32, #tpu.memory_space<vmem>>, %arg4: memref<20x32xf32, #tpu.memory_space<vmem>>, %arg5: memref<3x32xf32, #tpu.memory_space<vmem>>, %arg6: memref<1x32xf32, #tpu.memory_space<vmem>>, %arg7: memref<32x4xf32, #tpu.memory_space<vmem>>, %arg8: memref<12x32xf32, #tpu.memory_space<vmem>>, %arg9: memref<32x32xf32, #tpu.memory_space<vmem>>, %arg10: memref<1x32xf32, #tpu.memory_space<vmem>>, %arg11: memref<32x4xf32, #tpu.memory_space<vmem>>, %arg12: memref<12x32xf32, #tpu.memory_space<vmem>>, %arg13: memref<32x32xf32, #tpu.memory_space<vmem>>, %arg14: memref<1x32xf32, #tpu.memory_space<vmem>>, %arg15: memref<32x32xf32, #tpu.memory_space<vmem>>, %arg16: memref<1x32xf32, #tpu.memory_space<vmem>>, %arg17: memref<6x8xf32, #tpu.memory_space<vmem>>, %arg18: memref<32x8xf32, #tpu.memory_space<vmem>>, %arg19: memref<1x8xf32, #tpu.memory_space<vmem>>, %arg20: memref<8x2xf32, #tpu.memory_space<vmem>>, %arg21: memref<1x2xf32, #tpu.memory_space<vmem>>, %arg22: memref<8x2xf32, #tpu.memory_space<vmem>>, %arg23: memref<8x20x128xf32, #tpu.memory_space<vmem>>, %arg24: memref<8x20x128xf32, #tpu.memory_space<vmem>>) attributes {dimension_semantics = [#tpu.dimension_semantics<parallel>], iteration_bounds = array<i64: 2>, scalar_prefetch = 0 : i64, scratch_operands = 2 : i64, tpu.core_type = #tpu.core_type<tc>, window_params = [{transform_indices = @transform_0, window_bounds = array<i64: 8, 16, 3>}, {transform_indices = @transform_1, window_bounds = array<i64: 8, 6>}, {pipeline_mode = #tpu.pipeline_mode<synchronous>, transform_indices = @transform_2, window_bounds = array<i64: 3, 4>}, {pipeline_mode = #tpu.pipeline_mode<synchronous>, transform_indices = @transform_3, window_bounds = array<i64: 20, 32>}, {pipeline_mode = #tpu.pipeline_mode<synchronous>, transform_indices = @transform_4, window_bounds = array<i64: 3, 32>}, {pipeline_mode = #tpu.pipeline_mode<synchronous>, transform_indices = @transform_5, window_bounds = array<i64: 1, 32>}, {pipeline_mode = #tpu.pipeline_mode<synchronous>, transform_indices = @transform_6, window_bounds = array<i64: 32, 4>}, {pipeline_mode = #tpu.pipeline_mode<synchronous>, transform_indices = @transform_7, window_bounds = array<i64: 12, 32>}, {pipeline_mode = #tpu.pipeline_mode<synchronous>, transform_indices = @transform_8, window_bounds = array<i64: 32, 32>}, {pipeline_mode = #tpu.pipeline_mode<synchronous>, transform_indices = @transform_9, window_bounds = array<i64: 1, 32>}, {pipeline_mode = #tpu.pipeline_mode<synchronous>, transform_indices = @transform_10, window_bounds = array<i64: 32, 4>}, {pipeline_mode = #tpu.pipeline_mode<synchronous>, transform_indices = @transform_11, window_bounds = array<i64: 12, 32>}, {pipeline_mode = #tpu.pipeline_mode<synchronous>, transform_indices = @transform_12, window_bounds = array<i64: 32, 32>}, {pipeline_mode = #tpu.pipeline_mode<synchronous>, transform_indices = @transform_13, window_bounds = array<i64: 1, 32>}, {pipeline_mode = #tpu.pipeline_mode<synchronous>, transform_indices = @transform_14, window_bounds = array<i64: 32, 32>}, {pipeline_mode = #tpu.pipeline_mode<synchronous>, transform_indices = @transform_15, window_bounds = array<i64: 1, 32>}, {pipeline_mode = #tpu.pipeline_mode<synchronous>, transform_indices = @transform_16, window_bounds = array<i64: 6, 8>}, {pipeline_mode = #tpu.pipeline_mode<synchronous>, transform_indices = @transform_17, window_bounds = array<i64: 32, 8>}, {pipeline_mode = #tpu.pipeline_mode<synchronous>, transform_indices = @transform_18, window_bounds = array<i64: 1, 8>}, {pipeline_mode = #tpu.pipeline_mode<synchronous>, transform_indices = @transform_19, window_bounds = array<i64: 8, 2>}, {pipeline_mode = #tpu.pipeline_mode<synchronous>, transform_indices = @transform_20, window_bounds = array<i64: 1, 2>}, {transform_indices = @transform_21, window_bounds = array<i64: 8, 2>}]} {
    %cst = arith.constant -3.40282347E+38 : f32
    %0 = vector.broadcast %cst : f32 to vector<8x1x128xf32>
    %c0 = arith.constant 0 : index
    %c1 = arith.constant 1 : index
    %c0_0 = arith.constant 0 : index
    %1 = vector.load %arg24[%c0, %c1, %c0_0] : memref<8x20x128xf32, #tpu.memory_space<vmem>>, vector<8x1x128xf32>
    tpu.vector_store %arg24[%c0, %c1, %c0_0], %0 {strides = array<i32>} : memref<8x20x128xf32, #tpu.memory_space<vmem>>, vector<8x1x128xf32>,
    %cst_1 = arith.constant -3.40282347E+38 : f32
    %2 = vector.broadcast %cst_1 : f32 to vector<8x1x128xf32>
    %c0_2 = arith.constant 0 : index
    %c18 = arith.constant 18 : index
    %c0_3 = arith.constant 0 : index
    %3 = vector.load %arg24[%c0_2, %c18, %c0_3] : memref<8x20x128xf32, #tpu.memory_space<vmem>>, vector<8x1x128xf32>
    tpu.vector_store %arg24[%c0_2, %c18, %c0_3], %2 {strides = array<i32>} : memref<8x20x128xf32, #tpu.memory_space<vmem>>, vector<8x1x128xf32>,
    %c0_4 = arith.constant 0 : index
    %c0_5 = arith.constant 0 : index
    %c0_6 = arith.constant 0 : index
    %4 = vector.load %arg1[%c0_4, %c0_5, %c0_6] : memref<8x16x3xf32, #tpu.memory_space<vmem>>, vector<8x16x3xf32>
    %5 = vector.shape_cast %4 : vector<8x16x3xf32> to vector<128x3xf32>
    %c0_7 = arith.constant 0 : index
    %c0_8 = arith.constant 0 : index
    %6 = vector.load %arg3[%c0_7, %c0_8] : memref<3x4xf32, #tpu.memory_space<vmem>>, vector<3x4xf32>
    %cst_9 = arith.constant dense<0.000000e+00> : vector<128x4xf32>
    %7 = tpu.matmul %5, %6, %cst_9 {dimension_numbers = #tpu.dot_dimension_numbers<[1], [0], [0], [1], [0, 0, 1, 1], [], []>} : vector<128x3xf32>, vector<3x4xf32>, vector<128x4xf32> -> vector<128x4xf32>
    %8 = vector.shape_cast %7 : vector<128x4xf32> to vector<8x16x4xf32>
    %c0_10 = arith.constant 0 : index
    %c4 = arith.constant 4 : index
    %c0_11 = arith.constant 0 : index
    %9 = vector.load %arg23[%c0_10, %c4, %c0_11] : memref<8x20x128xf32, #tpu.memory_space<vmem>>, vector<8x16x4xf32>
    tpu.vector_store %arg23[%c0_10, %c4, %c0_11], %8 {strides = array<i32>} : memref<8x20x128xf32, #tpu.memory_space<vmem>>, vector<8x16x4xf32>,
    %cst_12 = arith.constant 0.000000e+00 : f32
    %10 = vector.broadcast %cst_12 : f32 to vector<8x2x4xf32>
    %c0_13 = arith.constant 0 : index
    %c2 = arith.constant 2 : index
    %c0_14 = arith.constant 0 : index
    %11 = vector.load %arg23[%c0_13, %c2, %c0_14] : memref<8x20x128xf32, #tpu.memory_space<vmem>>, vector<8x2x4xf32>
    tpu.vector_store %arg23[%c0_13, %c2, %c0_14], %10 {strides = array<i32>} : memref<8x20x128xf32, #tpu.memory_space<vmem>>, vector<8x2x4xf32>,
    %c0_15 = arith.constant 0 : index
    %c3 = arith.constant 3 : index
    %c4_16 = arith.constant 4 : index
    %12 = vector.load %arg23[%c0_15, %c3, %c4_16] : memref<8x20x128xf32, #tpu.memory_space<vmem>>, vector<8x16x4xf32>
    tpu.vector_store %arg23[%c0_15, %c3, %c4_16], %8 {strides = array<i32>} : memref<8x20x128xf32, #tpu.memory_space<vmem>>, vector<8x16x4xf32>,
    %cst_17 = arith.constant 0.000000e+00 : f32
    %13 = vector.broadcast %cst_17 : f32 to vector<8x1x4xf32>
    %c0_18 = arith.constant 0 : index
    %c2_19 = arith.constant 2 : index
    %c4_20 = arith.constant 4 : index
    %14 = vector.load %arg23[%c0_18, %c2_19, %c4_20] : memref<8x20x128xf32, #tpu.memory_space<vmem>>, vector<8x1x4xf32>
    tpu.vector_store %arg23[%c0_18, %c2_19, %c4_20], %13 {strides = array<i32>} : memref<8x20x128xf32, #tpu.memory_space<vmem>>, vector<8x1x4xf32>,
    %c0_21 = arith.constant 0 : index
    %c2_22 = arith.constant 2 : index
    %c8 = arith.constant 8 : index
    %15 = vector.load %arg23[%c0_21, %c2_22, %c8] : memref<8x20x128xf32, #tpu.memory_space<vmem>>, vector<8x16x4xf32>
    tpu.vector_store %arg23[%c0_21, %c2_22, %c8], %8 {strides = array<i32>} : memref<8x20x128xf32, #tpu.memory_space<vmem>>, vector<8x16x4xf32>,
    %c0_23 = arith.constant 0 : index
    %c1_24 = arith.constant 1 : index
    %c12 = arith.constant 12 : index
    %16 = vector.load %arg23[%c0_23, %c1_24, %c12] : memref<8x20x128xf32, #tpu.memory_space<vmem>>, vector<8x16x4xf32>
    tpu.vector_store %arg23[%c0_23, %c1_24, %c12], %8 {strides = array<i32>} : memref<8x20x128xf32, #tpu.memory_space<vmem>>, vector<8x16x4xf32>,
    %cst_25 = arith.constant 0.000000e+00 : f32
    %17 = vector.broadcast %cst_25 : f32 to vector<8x1x4xf32>
    %c0_26 = arith.constant 0 : index
    %c17 = arith.constant 17 : index
    %c12_27 = arith.constant 12 : index
    %18 = vector.load %arg23[%c0_26, %c17, %c12_27] : memref<8x20x128xf32, #tpu.memory_space<vmem>>, vector<8x1x4xf32>
    tpu.vector_store %arg23[%c0_26, %c17, %c12_27], %17 {strides = array<i32>} : memref<8x20x128xf32, #tpu.memory_space<vmem>>, vector<8x1x4xf32>,
    %c0_28 = arith.constant 0 : index
    %c0_29 = arith.constant 0 : index
    %c16 = arith.constant 16 : index
    %19 = vector.load %arg23[%c0_28, %c0_29, %c16] : memref<8x20x128xf32, #tpu.memory_space<vmem>>, vector<8x16x4xf32>
    tpu.vector_store %arg23[%c0_28, %c0_29, %c16], %8 {strides = array<i32>} : memref<8x20x128xf32, #tpu.memory_space<vmem>>, vector<8x16x4xf32>,
    %cst_30 = arith.constant 0.000000e+00 : f32
    %20 = vector.broadcast %cst_30 : f32 to vector<8x2x4xf32>
    %c0_31 = arith.constant 0 : index
    %c16_32 = arith.constant 16 : index
    %c16_33 = arith.constant 16 : index
    %21 = vector.load %arg23[%c0_31, %c16_32, %c16_33] : memref<8x20x128xf32, #tpu.memory_space<vmem>>, vector<8x2x4xf32>
    tpu.vector_store %arg23[%c0_31, %c16_32, %c16_33], %20 {strides = array<i32>} : memref<8x20x128xf32, #tpu.memory_space<vmem>>, vector<8x2x4xf32>,
    %c0_34 = arith.constant 0 : index
    %c2_35 = arith.constant 2 : index
    %c0_36 = arith.constant 0 : index
    %22 = vector.load %arg23[%c0_34, %c2_35, %c0_36] : memref<8x20x128xf32, #tpu.memory_space<vmem>>, vector<8x16x20xf32>
    %23 = vector.shape_cast %22 : vector<8x16x20xf32> to vector<128x20xf32>
    %c0_37 = arith.constant 0 : index
    %c0_38 = arith.constant 0 : index
    %24 = vector.load %arg4[%c0_37, %c0_38] : memref<20x32xf32, #tpu.memory_space<vmem>>, vector<20x32xf32>
    %cst_39 = arith.constant dense<0.000000e+00> : vector<128x32xf32>
    %25 = tpu.matmul %23, %24, %cst_39 {dimension_numbers = #tpu.dot_dimension_numbers<[1], [0], [0], [1], [0, 0, 1, 1], [], []>} : vector<128x20xf32>, vector<20x32xf32>, vector<128x32xf32> -> vector<128x32xf32>
    %26 = vector.shape_cast %5 : vector<128x3xf32> to vector<8x16x3xf32>
    %c0_40 = arith.constant 0 : index
    %c2_41 = arith.constant 2 : index
    %c0_42 = arith.constant 0 : index
    %27 = vector.load %arg24[%c0_40, %c2_41, %c0_42] : memref<8x20x128xf32, #tpu.memory_space<vmem>>, vector<8x16x3xf32>
    tpu.vector_store %arg24[%c0_40, %c2_41, %c0_42], %26 {strides = array<i32>} : memref<8x20x128xf32, #tpu.memory_space<vmem>>, vector<8x16x3xf32>,
    %c0_43 = arith.constant 0 : index
    %c1_44 = arith.constant 1 : index
    %c0_45 = arith.constant 0 : index
    %28 = vector.load %arg24[%c0_43, %c1_44, %c0_45] : memref<8x20x128xf32, #tpu.memory_space<vmem>>, vector<8x16x3xf32>
    %29 = arith.maximumf %28, %26 : vector<8x16x3xf32>
    %c0_46 = arith.constant 0 : index
    %c3_47 = arith.constant 3 : index
    %c0_48 = arith.constant 0 : index
    %30 = vector.load %arg24[%c0_46, %c3_47, %c0_48] : memref<8x20x128xf32, #tpu.memory_space<vmem>>, vector<8x16x3xf32>
    %31 = arith.maximumf %29, %30 : vector<8x16x3xf32>
    %32 = vector.shape_cast %31 : vector<8x16x3xf32> to vector<128x3xf32>
    %c0_49 = arith.constant 0 : index
    %c0_50 = arith.constant 0 : index
    %33 = vector.load %arg5[%c0_49, %c0_50] : memref<3x32xf32, #tpu.memory_space<vmem>>, vector<3x32xf32>
    %cst_51 = arith.constant dense<0.000000e+00> : vector<128x32xf32>
    %34 = tpu.matmul %32, %33, %cst_51 {dimension_numbers = #tpu.dot_dimension_numbers<[1], [0], [0], [1], [0, 0, 1, 1], [], []>} : vector<128x3xf32>, vector<3x32xf32>, vector<128x32xf32> -> vector<128x32xf32>
    %35 = arith.addf %25, %34 : vector<128x32xf32>
    %c0_52 = arith.constant 0 : index
    %c0_53 = arith.constant 0 : index
    %36 = vector.load %arg6[%c0_52, %c0_53] : memref<1x32xf32, #tpu.memory_space<vmem>>, vector<1x32xf32>
    %37 = vector.broadcast %36 : vector<1x32xf32> to vector<128x32xf32>
    %38 = arith.addf %35, %37 : vector<128x32xf32>
    %39 = arith.negf %38 : vector<128x32xf32>
    %40 = math.exp %39 : vector<128x32xf32>
    %cst_54 = arith.constant 1.000000e+00 : f32
    %41 = vector.broadcast %cst_54 : f32 to vector<128x32xf32>
    %42 = arith.addf %41, %40 : vector<128x32xf32>
    %43 = arith.divf %41, %42 : vector<128x32xf32>
    %44 = arith.mulf %38, %43 : vector<128x32xf32>
    %c0_55 = arith.constant 0 : index
    %c0_56 = arith.constant 0 : index
    %45 = vector.load %arg7[%c0_55, %c0_56] : memref<32x4xf32, #tpu.memory_space<vmem>>, vector<32x4xf32>
    %cst_57 = arith.constant dense<0.000000e+00> : vector<128x4xf32>
    %46 = tpu.matmul %44, %45, %cst_57 {dimension_numbers = #tpu.dot_dimension_numbers<[1], [0], [0], [1], [0, 0, 1, 1], [], []>} : vector<128x32xf32>, vector<32x4xf32>, vector<128x4xf32> -> vector<128x4xf32>
    %47 = vector.shape_cast %46 : vector<128x4xf32> to vector<8x16x4xf32>
    %c0_58 = arith.constant 0 : index
    %c3_59 = arith.constant 3 : index
    %c0_60 = arith.constant 0 : index
    %48 = vector.load %arg23[%c0_58, %c3_59, %c0_60] : memref<8x20x128xf32, #tpu.memory_space<vmem>>, vector<8x16x4xf32>
    tpu.vector_store %arg23[%c0_58, %c3_59, %c0_60], %47 {strides = array<i32>} : memref<8x20x128xf32, #tpu.memory_space<vmem>>, vector<8x16x4xf32>,
    %cst_61 = arith.constant 0.000000e+00 : f32
    %49 = vector.broadcast %cst_61 : f32 to vector<8x1x4xf32>
    %c0_62 = arith.constant 0 : index
    %c2_63 = arith.constant 2 : index
    %c0_64 = arith.constant 0 : index
    %50 = vector.load %arg23[%c0_62, %c2_63, %c0_64] : memref<8x20x128xf32, #tpu.memory_space<vmem>>, vector<8x1x4xf32>
    tpu.vector_store %arg23[%c0_62, %c2_63, %c0_64], %49 {strides = array<i32>} : memref<8x20x128xf32, #tpu.memory_space<vmem>>, vector<8x1x4xf32>,
    %c0_65 = arith.constant 0 : index
    %c2_66 = arith.constant 2 : index
    %c4_67 = arith.constant 4 : index
    %51 = vector.load %arg23[%c0_65, %c2_66, %c4_67] : memref<8x20x128xf32, #tpu.memory_space<vmem>>, vector<8x16x4xf32>
    tpu.vector_store %arg23[%c0_65, %c2_66, %c4_67], %47 {strides = array<i32>} : memref<8x20x128xf32, #tpu.memory_space<vmem>>, vector<8x16x4xf32>,
    %c0_68 = arith.constant 0 : index
    %c1_69 = arith.constant 1 : index
    %c8_70 = arith.constant 8 : index
    %52 = vector.load %arg23[%c0_68, %c1_69, %c8_70] : memref<8x20x128xf32, #tpu.memory_space<vmem>>, vector<8x16x4xf32>
    tpu.vector_store %arg23[%c0_68, %c1_69, %c8_70], %47 {strides = array<i32>} : memref<8x20x128xf32, #tpu.memory_space<vmem>>, vector<8x16x4xf32>,
    %cst_71 = arith.constant 0.000000e+00 : f32
    %53 = vector.broadcast %cst_71 : f32 to vector<8x1x4xf32>
    %c0_72 = arith.constant 0 : index
    %c17_73 = arith.constant 17 : index
    %c8_74 = arith.constant 8 : index
    %54 = vector.load %arg23[%c0_72, %c17_73, %c8_74] : memref<8x20x128xf32, #tpu.memory_space<vmem>>, vector<8x1x4xf32>
    tpu.vector_store %arg23[%c0_72, %c17_73, %c8_74], %53 {strides = array<i32>} : memref<8x20x128xf32, #tpu.memory_space<vmem>>, vector<8x1x4xf32>,
    %c0_75 = arith.constant 0 : index
    %c2_76 = arith.constant 2 : index
    %c0_77 = arith.constant 0 : index
    %55 = vector.load %arg23[%c0_75, %c2_76, %c0_77] : memref<8x20x128xf32, #tpu.memory_space<vmem>>, vector<8x16x12xf32>
    %56 = vector.shape_cast %55 : vector<8x16x12xf32> to vector<128x12xf32>
    %c0_78 = arith.constant 0 : index
    %c0_79 = arith.constant 0 : index
    %57 = vector.load %arg8[%c0_78, %c0_79] : memref<12x32xf32, #tpu.memory_space<vmem>>, vector<12x32xf32>
    %cst_80 = arith.constant dense<0.000000e+00> : vector<128x32xf32>
    %58 = tpu.matmul %56, %57, %cst_80 {dimension_numbers = #tpu.dot_dimension_numbers<[1], [0], [0], [1], [0, 0, 1, 1], [], []>} : vector<128x12xf32>, vector<12x32xf32>, vector<128x32xf32> -> vector<128x32xf32>
    %59 = vector.shape_cast %44 : vector<128x32xf32> to vector<8x16x32xf32>
    %c0_81 = arith.constant 0 : index
    %c2_82 = arith.constant 2 : index
    %c0_83 = arith.constant 0 : index
    %60 = vector.load %arg24[%c0_81, %c2_82, %c0_83] : memref<8x20x128xf32, #tpu.memory_space<vmem>>, vector<8x16x32xf32>
    tpu.vector_store %arg24[%c0_81, %c2_82, %c0_83], %59 {strides = array<i32>} : memref<8x20x128xf32, #tpu.memory_space<vmem>>, vector<8x16x32xf32>,
    %c0_84 = arith.constant 0 : index
    %c1_85 = arith.constant 1 : index
    %c0_86 = arith.constant 0 : index
    %61 = vector.load %arg24[%c0_84, %c1_85, %c0_86] : memref<8x20x128xf32, #tpu.memory_space<vmem>>, vector<8x16x32xf32>
    %62 = arith.maximumf %61, %59 : vector<8x16x32xf32>
    %c0_87 = arith.constant 0 : index
    %c3_88 = arith.constant 3 : index
    %c0_89 = arith.constant 0 : index
    %63 = vector.load %arg24[%c0_87, %c3_88, %c0_89] : memref<8x20x128xf32, #tpu.memory_space<vmem>>, vector<8x16x32xf32>
    %64 = arith.maximumf %62, %63 : vector<8x16x32xf32>
    %65 = vector.shape_cast %64 : vector<8x16x32xf32> to vector<128x32xf32>
    %c0_90 = arith.constant 0 : index
    %c0_91 = arith.constant 0 : index
    %66 = vector.load %arg9[%c0_90, %c0_91] : memref<32x32xf32, #tpu.memory_space<vmem>>, vector<32x32xf32>
    %cst_92 = arith.constant dense<0.000000e+00> : vector<128x32xf32>
    %67 = tpu.matmul %65, %66, %cst_92 {dimension_numbers = #tpu.dot_dimension_numbers<[1], [0], [0], [1], [0, 0, 1, 1], [], []>} : vector<128x32xf32>, vector<32x32xf32>, vector<128x32xf32> -> vector<128x32xf32>
    %68 = arith.addf %58, %67 : vector<128x32xf32>
    %c0_93 = arith.constant 0 : index
    %c0_94 = arith.constant 0 : index
    %69 = vector.load %arg10[%c0_93, %c0_94] : memref<1x32xf32, #tpu.memory_space<vmem>>, vector<1x32xf32>
    %70 = vector.broadcast %69 : vector<1x32xf32> to vector<128x32xf32>
    %71 = arith.addf %68, %70 : vector<128x32xf32>
    %72 = arith.negf %71 : vector<128x32xf32>
    %73 = math.exp %72 : vector<128x32xf32>
    %cst_95 = arith.constant 1.000000e+00 : f32
    %74 = vector.broadcast %cst_95 : f32 to vector<128x32xf32>
    %75 = arith.addf %74, %73 : vector<128x32xf32>
    %76 = arith.divf %74, %75 : vector<128x32xf32>
    %77 = arith.mulf %71, %76 : vector<128x32xf32>
    %c0_96 = arith.constant 0 : index
    %c0_97 = arith.constant 0 : index
    %78 = vector.load %arg11[%c0_96, %c0_97] : memref<32x4xf32, #tpu.memory_space<vmem>>, vector<32x4xf32>
    %cst_98 = arith.constant dense<0.000000e+00> : vector<128x4xf32>
    %79 = tpu.matmul %77, %78, %cst_98 {dimension_numbers = #tpu.dot_dimension_numbers<[1], [0], [0], [1], [0, 0, 1, 1], [], []>} : vector<128x32xf32>, vector<32x4xf32>, vector<128x4xf32> -> vector<128x4xf32>
    %80 = vector.shape_cast %79 : vector<128x4xf32> to vector<8x16x4xf32>
    %c0_99 = arith.constant 0 : index
    %c3_100 = arith.constant 3 : index
    %c0_101 = arith.constant 0 : index
    %81 = vector.load %arg23[%c0_99, %c3_100, %c0_101] : memref<8x20x128xf32, #tpu.memory_space<vmem>>, vector<8x16x4xf32>
    tpu.vector_store %arg23[%c0_99, %c3_100, %c0_101], %80 {strides = array<i32>} : memref<8x20x128xf32, #tpu.memory_space<vmem>>, vector<8x16x4xf32>,
    %cst_102 = arith.constant 0.000000e+00 : f32
    %82 = vector.broadcast %cst_102 : f32 to vector<8x1x4xf32>
    %c0_103 = arith.constant 0 : index
    %c2_104 = arith.constant 2 : index
    %c0_105 = arith.constant 0 : index
    %83 = vector.load %arg23[%c0_103, %c2_104, %c0_105] : memref<8x20x128xf32, #tpu.memory_space<vmem>>, vector<8x1x4xf32>
    tpu.vector_store %arg23[%c0_103, %c2_104, %c0_105], %82 {strides = array<i32>} : memref<8x20x128xf32, #tpu.memory_space<vmem>>, vector<8x1x4xf32>,
    %c0_106 = arith.constant 0 : index
    %c2_107 = arith.constant 2 : index
    %c4_108 = arith.constant 4 : index
    %84 = vector.load %arg23[%c0_106, %c2_107, %c4_108] : memref<8x20x128xf32, #tpu.memory_space<vmem>>, vector<8x16x4xf32>
    tpu.vector_store %arg23[%c0_106, %c2_107, %c4_108], %80 {strides = array<i32>} : memref<8x20x128xf32, #tpu.memory_space<vmem>>, vector<8x16x4xf32>,
    %c0_109 = arith.constant 0 : index
    %c1_110 = arith.constant 1 : index
    %c8_111 = arith.constant 8 : index
    %85 = vector.load %arg23[%c0_109, %c1_110, %c8_111] : memref<8x20x128xf32, #tpu.memory_space<vmem>>, vector<8x16x4xf32>
    tpu.vector_store %arg23[%c0_109, %c1_110, %c8_111], %80 {strides = array<i32>} : memref<8x20x128xf32, #tpu.memory_space<vmem>>, vector<8x16x4xf32>,
    %cst_112 = arith.constant 0.000000e+00 : f32
    %86 = vector.broadcast %cst_112 : f32 to vector<8x1x4xf32>
    %c0_113 = arith.constant 0 : index
    %c17_114 = arith.constant 17 : index
    %c8_115 = arith.constant 8 : index
    %87 = vector.load %arg23[%c0_113, %c17_114, %c8_115] : memref<8x20x128xf32, #tpu.memory_space<vmem>>, vector<8x1x4xf32>
    tpu.vector_store %arg23[%c0_113, %c17_114, %c8_115], %86 {strides = array<i32>} : memref<8x20x128xf32, #tpu.memory_space<vmem>>, vector<8x1x4xf32>,
    %c0_116 = arith.constant 0 : index
    %c2_117 = arith.constant 2 : index
    %c0_118 = arith.constant 0 : index
    %88 = vector.load %arg23[%c0_116, %c2_117, %c0_118] : memref<8x20x128xf32, #tpu.memory_space<vmem>>, vector<8x16x12xf32>
    %89 = vector.shape_cast %88 : vector<8x16x12xf32> to vector<128x12xf32>
    %c0_119 = arith.constant 0 : index
    %c0_120 = arith.constant 0 : index
    %90 = vector.load %arg12[%c0_119, %c0_120] : memref<12x32xf32, #tpu.memory_space<vmem>>, vector<12x32xf32>
    %cst_121 = arith.constant dense<0.000000e+00> : vector<128x32xf32>
    %91 = tpu.matmul %89, %90, %cst_121 {dimension_numbers = #tpu.dot_dimension_numbers<[1], [0], [0], [1], [0, 0, 1, 1], [], []>} : vector<128x12xf32>, vector<12x32xf32>, vector<128x32xf32> -> vector<128x32xf32>
    %92 = vector.shape_cast %77 : vector<128x32xf32> to vector<8x16x32xf32>
    %c0_122 = arith.constant 0 : index
    %c2_123 = arith.constant 2 : index
    %c0_124 = arith.constant 0 : index
    %93 = vector.load %arg24[%c0_122, %c2_123, %c0_124] : memref<8x20x128xf32, #tpu.memory_space<vmem>>, vector<8x16x32xf32>
    tpu.vector_store %arg24[%c0_122, %c2_123, %c0_124], %92 {strides = array<i32>} : memref<8x20x128xf32, #tpu.memory_space<vmem>>, vector<8x16x32xf32>,
    %c0_125 = arith.constant 0 : index
    %c1_126 = arith.constant 1 : index
    %c0_127 = arith.constant 0 : index
    %94 = vector.load %arg24[%c0_125, %c1_126, %c0_127] : memref<8x20x128xf32, #tpu.memory_space<vmem>>, vector<8x16x32xf32>
    %95 = arith.maximumf %94, %92 : vector<8x16x32xf32>
    %c0_128 = arith.constant 0 : index
    %c3_129 = arith.constant 3 : index
    %c0_130 = arith.constant 0 : index
    %96 = vector.load %arg24[%c0_128, %c3_129, %c0_130] : memref<8x20x128xf32, #tpu.memory_space<vmem>>, vector<8x16x32xf32>
    %97 = arith.maximumf %95, %96 : vector<8x16x32xf32>
    %98 = vector.shape_cast %97 : vector<8x16x32xf32> to vector<128x32xf32>
    %c0_131 = arith.constant 0 : index
    %c0_132 = arith.constant 0 : index
    %99 = vector.load %arg13[%c0_131, %c0_132] : memref<32x32xf32, #tpu.memory_space<vmem>>, vector<32x32xf32>
    %cst_133 = arith.constant dense<0.000000e+00> : vector<128x32xf32>
    %100 = tpu.matmul %98, %99, %cst_133 {dimension_numbers = #tpu.dot_dimension_numbers<[1], [0], [0], [1], [0, 0, 1, 1], [], []>} : vector<128x32xf32>, vector<32x32xf32>, vector<128x32xf32> -> vector<128x32xf32>
    %101 = arith.addf %91, %100 : vector<128x32xf32>
    %c0_134 = arith.constant 0 : index
    %c0_135 = arith.constant 0 : index
    %102 = vector.load %arg14[%c0_134, %c0_135] : memref<1x32xf32, #tpu.memory_space<vmem>>, vector<1x32xf32>
    %103 = vector.broadcast %102 : vector<1x32xf32> to vector<128x32xf32>
    %104 = arith.addf %101, %103 : vector<128x32xf32>
    %c0_136 = arith.constant 0 : index
    %c0_137 = arith.constant 0 : index
    %105 = vector.load %arg15[%c0_136, %c0_137] : memref<32x32xf32, #tpu.memory_space<vmem>>, vector<32x32xf32>
    %cst_138 = arith.constant dense<0.000000e+00> : vector<128x32xf32>
    %106 = tpu.matmul %77, %105, %cst_138 {dimension_numbers = #tpu.dot_dimension_numbers<[1], [0], [0], [1], [0, 0, 1, 1], [], []>} : vector<128x32xf32>, vector<32x32xf32>, vector<128x32xf32> -> vector<128x32xf32>
    %107 = arith.addf %104, %106 : vector<128x32xf32>
    %c0_139 = arith.constant 0 : index
    %c0_140 = arith.constant 0 : index
    %108 = vector.load %arg16[%c0_139, %c0_140] : memref<1x32xf32, #tpu.memory_space<vmem>>, vector<1x32xf32>
    %109 = vector.broadcast %108 : vector<1x32xf32> to vector<128x32xf32>
    %110 = arith.addf %107, %109 : vector<128x32xf32>
    %111 = arith.negf %110 : vector<128x32xf32>
    %112 = math.exp %111 : vector<128x32xf32>
    %cst_141 = arith.constant 1.000000e+00 : f32
    %113 = vector.broadcast %cst_141 : f32 to vector<128x32xf32>
    %114 = arith.addf %113, %112 : vector<128x32xf32>
    %115 = arith.divf %113, %114 : vector<128x32xf32>
    %116 = arith.mulf %110, %115 : vector<128x32xf32>
    %117 = tpu.iota {dimensions = array<i32: 0>} : vector<8x128xi32>
    %118 = tpu.iota {dimensions = array<i32: 1>} : vector<8x128xi32>
    %c16_i32 = arith.constant 16 : i32
    %119 = vector.broadcast %c16_i32 : i32 to vector<8x128xi32>
    %120 = arith.muli %117, %119 : vector<8x128xi32>
    %121 = arith.cmpi sge, %118, %120 : vector<8x128xi32>
    %c16_i32_142 = arith.constant 16 : i32
    %122 = vector.broadcast %c16_i32_142 : i32 to vector<8x128xi32>
    %123 = arith.muli %117, %122 : vector<8x128xi32>
    %c16_i32_143 = arith.constant 16 : i32
    %124 = vector.broadcast %c16_i32_143 : i32 to vector<8x128xi32>
    %125 = arith.addi %123, %124 : vector<8x128xi32>
    %126 = arith.cmpi slt, %118, %125 : vector<8x128xi32>
    %127 = arith.andi %121, %126 : vector<8x128xi1>
    %cst_144 = arith.constant 6.250000e-02 : f32
    %cst_145 = arith.constant 0.000000e+00 : f32
    %128 = vector.broadcast %cst_144 : f32 to vector<8x128xf32>
    %129 = vector.broadcast %cst_145 : f32 to vector<8x128xf32>
    %130 = arith.select %127, %128, %129 : vector<8x128xi1>, vector<8x128xf32>
    %cst_146 = arith.constant dense<0.000000e+00> : vector<8x32xf32>
    %131 = tpu.matmul %130, %116, %cst_146 {dimension_numbers = #tpu.dot_dimension_numbers<[1], [0], [0], [1], [0, 0, 1, 1], [], []>} : vector<8x128xf32>, vector<128x32xf32>, vector<8x32xf32> -> vector<8x32xf32>
    %c0_147 = arith.constant 0 : index
    %c0_148 = arith.constant 0 : index
    %132 = vector.load %arg2[%c0_147, %c0_148] : memref<8x6xf32, #tpu.memory_space<vmem>>, vector<8x6xf32>
    %c0_149 = arith.constant 0 : index
    %c0_150 = arith.constant 0 : index
    %133 = vector.load %arg17[%c0_149, %c0_150] : memref<6x8xf32, #tpu.memory_space<vmem>>, vector<6x8xf32>
    %cst_151 = arith.constant dense<0.000000e+00> : vector<8x8xf32>
    %134 = tpu.matmul %132, %133, %cst_151 {dimension_numbers = #tpu.dot_dimension_numbers<[1], [0], [0], [1], [0, 0, 1, 1], [], []>} : vector<8x6xf32>, vector<6x8xf32>, vector<8x8xf32> -> vector<8x8xf32>
    %c0_152 = arith.constant 0 : index
    %c0_153 = arith.constant 0 : index
    %135 = vector.load %arg18[%c0_152, %c0_153] : memref<32x8xf32, #tpu.memory_space<vmem>>, vector<32x8xf32>
    %cst_154 = arith.constant dense<0.000000e+00> : vector<8x8xf32>
    %136 = tpu.matmul %131, %135, %cst_154 {dimension_numbers = #tpu.dot_dimension_numbers<[1], [0], [0], [1], [0, 0, 1, 1], [], []>} : vector<8x32xf32>, vector<32x8xf32>, vector<8x8xf32> -> vector<8x8xf32>
    %137 = arith.addf %134, %136 : vector<8x8xf32>
    %c0_155 = arith.constant 0 : index
    %c0_156 = arith.constant 0 : index
    %138 = vector.load %arg19[%c0_155, %c0_156] : memref<1x8xf32, #tpu.memory_space<vmem>>, vector<1x8xf32>
    %139 = vector.broadcast %138 : vector<1x8xf32> to vector<8x8xf32>
    %140 = arith.addf %137, %139 : vector<8x8xf32>
    %141 = arith.negf %140 : vector<8x8xf32>
    %142 = math.exp %141 : vector<8x8xf32>
    %cst_157 = arith.constant 1.000000e+00 : f32
    %143 = vector.broadcast %cst_157 : f32 to vector<8x8xf32>
    %144 = arith.addf %143, %142 : vector<8x8xf32>
    %145 = arith.divf %143, %144 : vector<8x8xf32>
    %146 = arith.mulf %140, %145 : vector<8x8xf32>
    %c0_158 = arith.constant 0 : index
    %c0_159 = arith.constant 0 : index
    %147 = vector.load %arg20[%c0_158, %c0_159] : memref<8x2xf32, #tpu.memory_space<vmem>>, vector<8x2xf32>
    %cst_160 = arith.constant dense<0.000000e+00> : vector<8x2xf32>
    %148 = tpu.matmul %146, %147, %cst_160 {dimension_numbers = #tpu.dot_dimension_numbers<[1], [0], [0], [1], [0, 0, 1, 1], [], []>} : vector<8x8xf32>, vector<8x2xf32>, vector<8x2xf32> -> vector<8x2xf32>
    %c0_161 = arith.constant 0 : index
    %c0_162 = arith.constant 0 : index
    %149 = vector.load %arg21[%c0_161, %c0_162] : memref<1x2xf32, #tpu.memory_space<vmem>>, vector<1x2xf32>
    %150 = vector.broadcast %149 : vector<1x2xf32> to vector<8x2xf32>
    %151 = arith.addf %148, %150 : vector<8x2xf32>
    %c0_163 = arith.constant 0 : index
    %c0_164 = arith.constant 0 : index
    %152 = vector.load %arg22[%c0_163, %c0_164] : memref<8x2xf32, #tpu.memory_space<vmem>>, vector<8x2xf32>
    tpu.vector_store %arg22[%c0_163, %c0_164], %151 {strides = array<i32>} : memref<8x2xf32, #tpu.memory_space<vmem>>, vector<8x2xf32>,
    return
  }
  func.func @transform_0(%arg0: i32) -> (i32, i32, i32) {
    %c0_i32 = arith.constant 0 : i32
    %c0_i32_0 = arith.constant 0 : i32
    %c0_i32_1 = arith.constant 0 : i32
    return %arg0, %c0_i32, %c0_i32_0 : i32, i32, i32
  }
  func.func @transform_1(%arg0: i32) -> (i32, i32) {
    %c0_i32 = arith.constant 0 : i32
    %c0_i32_0 = arith.constant 0 : i32
    return %arg0, %c0_i32 : i32, i32
  }
  func.func @transform_2(%arg0: i32) -> (i32, i32) {
    %c0_i32 = arith.constant 0 : i32
    %c0_i32_0 = arith.constant 0 : i32
    %c0_i32_1 = arith.constant 0 : i32
    return %c0_i32, %c0_i32_0 : i32, i32
  }
  func.func @transform_3(%arg0: i32) -> (i32, i32) {
    %c0_i32 = arith.constant 0 : i32
    %c0_i32_0 = arith.constant 0 : i32
    %c0_i32_1 = arith.constant 0 : i32
    return %c0_i32, %c0_i32_0 : i32, i32
  }
  func.func @transform_4(%arg0: i32) -> (i32, i32) {
    %c0_i32 = arith.constant 0 : i32
    %c0_i32_0 = arith.constant 0 : i32
    %c0_i32_1 = arith.constant 0 : i32
    return %c0_i32, %c0_i32_0 : i32, i32
  }
  func.func @transform_5(%arg0: i32) -> (i32, i32) {
    %c0_i32 = arith.constant 0 : i32
    %c0_i32_0 = arith.constant 0 : i32
    %c0_i32_1 = arith.constant 0 : i32
    return %c0_i32, %c0_i32_0 : i32, i32
  }
  func.func @transform_6(%arg0: i32) -> (i32, i32) {
    %c0_i32 = arith.constant 0 : i32
    %c0_i32_0 = arith.constant 0 : i32
    %c0_i32_1 = arith.constant 0 : i32
    return %c0_i32, %c0_i32_0 : i32, i32
  }
  func.func @transform_7(%arg0: i32) -> (i32, i32) {
    %c0_i32 = arith.constant 0 : i32
    %c0_i32_0 = arith.constant 0 : i32
    %c0_i32_1 = arith.constant 0 : i32
    return %c0_i32, %c0_i32_0 : i32, i32
  }
  func.func @transform_8(%arg0: i32) -> (i32, i32) {
    %c0_i32 = arith.constant 0 : i32
    %c0_i32_0 = arith.constant 0 : i32
    %c0_i32_1 = arith.constant 0 : i32
    return %c0_i32, %c0_i32_0 : i32, i32
  }
  func.func @transform_9(%arg0: i32) -> (i32, i32) {
    %c0_i32 = arith.constant 0 : i32
    %c0_i32_0 = arith.constant 0 : i32
    %c0_i32_1 = arith.constant 0 : i32
    return %c0_i32, %c0_i32_0 : i32, i32
  }
  func.func @transform_10(%arg0: i32) -> (i32, i32) {
    %c0_i32 = arith.constant 0 : i32
    %c0_i32_0 = arith.constant 0 : i32
    %c0_i32_1 = arith.constant 0 : i32
    return %c0_i32, %c0_i32_0 : i32, i32
  }
  func.func @transform_11(%arg0: i32) -> (i32, i32) {
    %c0_i32 = arith.constant 0 : i32
    %c0_i32_0 = arith.constant 0 : i32
    %c0_i32_1 = arith.constant 0 : i32
    return %c0_i32, %c0_i32_0 : i32, i32
  }
  func.func @transform_12(%arg0: i32) -> (i32, i32) {
    %c0_i32 = arith.constant 0 : i32
    %c0_i32_0 = arith.constant 0 : i32
    %c0_i32_1 = arith.constant 0 : i32
    return %c0_i32, %c0_i32_0 : i32, i32
  }
  func.func @transform_13(%arg0: i32) -> (i32, i32) {
    %c0_i32 = arith.constant 0 : i32
    %c0_i32_0 = arith.constant 0 : i32
    %c0_i32_1 = arith.constant 0 : i32
    return %c0_i32, %c0_i32_0 : i32, i32
  }
  func.func @transform_14(%arg0: i32) -> (i32, i32) {
    %c0_i32 = arith.constant 0 : i32
    %c0_i32_0 = arith.constant 0 : i32
    %c0_i32_1 = arith.constant 0 : i32
    return %c0_i32, %c0_i32_0 : i32, i32
  }
  func.func @transform_15(%arg0: i32) -> (i32, i32) {
    %c0_i32 = arith.constant 0 : i32
    %c0_i32_0 = arith.constant 0 : i32
    %c0_i32_1 = arith.constant 0 : i32
    return %c0_i32, %c0_i32_0 : i32, i32
  }
  func.func @transform_16(%arg0: i32) -> (i32, i32) {
    %c0_i32 = arith.constant 0 : i32
    %c0_i32_0 = arith.constant 0 : i32
    %c0_i32_1 = arith.constant 0 : i32
    return %c0_i32, %c0_i32_0 : i32, i32
  }
  func.func @transform_17(%arg0: i32) -> (i32, i32) {
    %c0_i32 = arith.constant 0 : i32
    %c0_i32_0 = arith.constant 0 : i32
    %c0_i32_1 = arith.constant 0 : i32
    return %c0_i32, %c0_i32_0 : i32, i32
  }
  func.func @transform_18(%arg0: i32) -> (i32, i32) {
    %c0_i32 = arith.constant 0 : i32
    %c0_i32_0 = arith.constant 0 : i32
    %c0_i32_1 = arith.constant 0 : i32
    return %c0_i32, %c0_i32_0 : i32, i32
  }
  func.func @transform_19(%arg0: i32) -> (i32, i32) {
    %c0_i32 = arith.constant 0 : i32
    %c0_i32_0 = arith.constant 0 : i32
    %c0_i32_1 = arith.constant 0 : i32
    return %c0_i32, %c0_i32_0 : i32, i32
  }
  func.func @transform_20(%arg0: i32) -> (i32, i32) {
    %c0_i32 = arith.constant 0 : i32
    %c0_i32_0 = arith.constant 0 : i32
    %c0_i32_1 = arith.constant 0 : i32
    return %c0_i32, %c0_i32_0 : i32, i32
  }
  func.func @transform_21(%arg0: i32) -> (i32, i32) {
    %c0_i32 = arith.constant 0 : i32
    %c0_i32_0 = arith.constant 0 : i32
    return %arg0, %c0_i32 : i32, i32
  }
}

</mosaic_0001>

<bundles_post_ra>
// kernel: _lambda_.1
= control target key start
LH: loop header
LB: loop body
LE: loop exit
PB: predicated region body
PF: predicated region fallthrough
CT: control target
= control target key end

     0   :  { %s7110_s0 = inlined_call_operand.vmem [shape: f32[16,16,3], index: 0, kind: input, shape index: {}]   ;;  %s7111_s1 = inlined_call_operand.vmem [shape: f32[16,6], index: 1, kind: input, shape index: {}]   ;;  %s7112_s2 = inlined_call_operand.vmem [shape: f32[3,4], index: 2, kind: input, shape index: {}]   ;;  %s7113_s3 = inlined_call_operand.vmem [shape: f32[20,32], index: 3, kind: input, shape index: {}]   ;;  %s7114_s4 = inlined_call_operand.vmem [shape: f32[3,32], index: 4, kind: input, shape index: {}]   ;;  %s7115_s5 = inlined_call_operand.vmem [shape: f32[1,32], index: 5, kind: input, shape index: {}, may-alias: {5,9,13,15}]   ;;  %s7116_s6 = inlined_call_operand.vmem [shape: f32[32,4], index: 6, kind: input, shape index: {}]   ;;  %s7117_s7 = inlined_call_operand.vmem [shape: f32[12,32], index: 7, kind: input, shape index: {}]   ;;  %s7118_s8 = inlined_call_operand.vmem [shape: f32[32,32], index: 8, kind: input, shape index: {}]   ;;  %s7119_s9 = inlined_call_operand.vmem [shape: f32[1,32], index: 9, kind: input, shape index: {}, may-alias: {5,9,13,15}]   ;;  %s7120_s10 = inlined_call_operand.vmem [shape: f32[32,4], index: 10, kind: input, shape index: {}]   ;;  %s7121_s11 = inlined_call_operand.vmem [shape: f32[12,32], index: 11, kind: input, shape index: {}]   ;;  %s7122_s12 = inlined_call_operand.vmem [shape: f32[32,32], index: 12, kind: input, shape index: {}]   ;;  %s7123_s13 = inlined_call_operand.vmem [shape: f32[1,32], index: 13, kind: input, shape index: {}, may-alias: {5,9,13,15}]   ;;  %s7124_s14 = inlined_call_operand.vmem [shape: f32[32,32], index: 14, kind: input, shape index: {}]   ;;  %s7125_s15 = inlined_call_operand.vmem [shape: f32[1,32], index: 15, kind: input, shape index: {}, may-alias: {5,9,13,15}]   ;;  %s7126_s16 = inlined_call_operand.vmem [shape: f32[6,8], index: 16, kind: input, shape index: {}]   ;;  %s7127_s17 = inlined_call_operand.vmem [shape: f32[32,8], index: 17, kind: input, shape index: {}]   ;;  %s7128_s18 = inlined_call_operand.vmem [shape: f32[1,8], index: 18, kind: input, shape index: {}]   ;;  %s7129_s19 = inlined_call_operand.vmem [shape: f32[8,2], index: 19, kind: input, shape index: {}]   ;;  %s7130_s20 = inlined_call_operand.vmem [shape: f32[1,2], index: 20, kind: input, shape index: {}]   ;;  %s7131_s21 = inlined_call_operand.vmem [shape: f32[16,2], index: 21, kind: output, shape index: {}]  }
   0x1   :  { %7133 = sst [smem:[#allocation4_spill]] %s7110_s0 }
   0x2   :  { %7134 = sst [smem:[#allocation5_spill]] %s7111_s1 }
   0x3   :  { %7135 = sst [smem:[#allocation6_spill]] %s7112_s2  ;;  %s5774_s2 = smov 0  }
   0x4   :  { %7136 = sst [smem:[#allocation7_spill]] %s7113_s3 }
   0x5   :  { %7137 = sst [smem:[#allocation8_spill]] %s7114_s4 }
   0x6   :  { %7138 = sst [smem:[#allocation9_spill]] %s7115_s5 }
   0x7 LB: > { %s5780_s25 = sadd.s32 4294967295, %s5652_s2   ;;  %p4461_p0 = scmp.ge.s32.totalorder %s5652_s2, 1  ;;  %s5652_s2 = sphi %s5774_s2, %s31_s2  }
   0x8   : > { %p598_p1 = scmp.lt.s32.totalorder %s5652_s2, 3 }
   0xa   : > { %p599_p2 = pnand %p4461_p0, %p598_p1 }
   0xb   : > { %s7139_s3 = sld [smem:[#allocation6_spill]] (!%p599_p2)  ;;  %vm759_vm0 = vcmask (!%p599_p2), 1042432   ;;  %s4462_s28 = sshll.u32 (!%p599_p2), %s5780_s25, 3  ;;  %v5654_v1 = vmov (!%p599_p2), -3.4028235e+38   ;;  %vm710_vm1 = vcmask (!%p599_p2), 23552  }
   0xc   : > { %602 = sbr.rel (%p599_p2) target bundleno = 2613 (0xa35), region = 104  ;;  %p5789_p3 = scmp.lt.s32.totalorder (!%p599_p2), %s4462_s28, 15  ;;  %677 = vst [vmem:[#allocation3 + $0x1] sm:$0x1] (!%p599_p2), %v5654_v1  ;;  %678 = vst [vmem:[#allocation3 + $0x19] sm:$0x1] (!%p599_p2), %v5654_v1 }
   0xd   : > { %679 = vst [vmem:[#allocation3 + $0x31] sm:$0x1] (!%p599_p2), %v5654_v1  ;;  %680 = vst [vmem:[#allocation3 + $0x49] sm:$0x1] (!%p599_p2), %v5654_v1  ;;  %s7141_s5 = sld [smem:[#allocation4_spill]] (!%p599_p2)  ;;  %vm925_vm2 = vcmask (!%p599_p2), 25600  }
   0xe   : > { %681 = vst [vmem:[#allocation3 + $0x61] sm:$0x1] (!%p599_p2), %v5654_v1  ;;  %682 = vst [vmem:[#allocation3 + $0x79] sm:$0x1] (!%p599_p2), %v5654_v1  ;;  %v5655_v18 = vmov (!%p599_p2), 0.0   ;;  %vm1015_vm3 = vcmask (!%p599_p2), 57376  }
   0xf   : > { %683 = vst [vmem:[#allocation3 + $0x91] sm:$0x1] (!%p599_p2), %v5654_v1  ;;  %684 = vst [vmem:[#allocation3 + $0xa9] sm:$0x1] (!%p599_p2), %v5654_v1  ;;  %vm908_vm4 = vcmask (!%p599_p2), 31744   ;;  %s7142_s24 = sld [smem:[#allocation8_spill]] (!%p599_p2) }
  0x10   : > { %685 = vst [vmem:[#allocation3 + $0x12] sm:$0x1] (!%p599_p2), %v5654_v1  ;;  %686 = vst [vmem:[#allocation3 + $0x2a] sm:$0x1] (!%p599_p2), %v5654_v1  ;;  %s5656_s26 = smov (!%p599_p2), 8   ;;  %s5657_s27 = smov (!%p599_p2), 4  }
  0x11   : > { %v709_v0 = vld [vmem:[%s7139_s3] sm:$0x7] (!%p599_p2)  ;;  %687 = vst [vmem:[#allocation3 + $0x42] sm:$0x1] (!%p599_p2), %v5654_v1  ;;  %688 = vst [vmem:[#allocation3 + $0x5a] sm:$0x1] (!%p599_p2), %v5654_v1 }
  0x12   : > { %4910 = vmatprep.subr.msk.mxu0 (!%p599_p2), %vm759_vm0, %v709_v0  ;;  %689 = vst [vmem:[#allocation3 + $0x72] sm:$0x1] (!%p599_p2), %v5654_v1  ;;  %690 = vst [vmem:[#allocation3 + $0x8a] sm:$0x1] (!%p599_p2), %v5654_v1  ;;  %s7143_s29 = sld [smem:[#allocation7_spill]] (!%p599_p2)  ;;  %s5658_s30 = smov (!%p599_p2), 12  }
  0x13   : > { %691 = vst [vmem:[#allocation3 + $0xa2] sm:$0x1] %v5654_v1  ;;  %692 = vst [vmem:[#allocation3 + $0xba] sm:$0x1] %v5654_v1  ;;  %4911 = vmatpush3.msk.msra.mxu0 %vm759_vm0, %v709_v0  ;;  %s7149_s28 = smov (!%p5789_p3, %s4462_s28), 15  ;;  %vm1582_vm5 = vcmask 1043456  }
  0x14   : > { %s4694_s0 = sshll.u32 %s7149_s28, 4  ;;  %926 = vst.msk [vmem:[#allocation2 + $0x2] sm:$0x3] %vm925_vm2, %v5655_v18  ;;  %927 = vst.msk [vmem:[#allocation2 + $0x1a] sm:$0x3] %vm925_vm2, %v5655_v18  ;;  %s5659_s23 = smov 16  }
  0x15   : > { %s5799_s22 = scalar_lea.vmem %s7141_s5, %s4694_s0  ;;  %928 = vst.msk [vmem:[#allocation2 + $0x32] sm:$0x3] %vm925_vm2, %v5655_v18  ;;  %929 = vst.msk [vmem:[#allocation2 + $0x4a] sm:$0x3] %vm925_vm2, %v5655_v18  ;;  %v1336_v29 = vld [vmem:[%s7142_s24] sm:$0x7] }
  0x16   : > { %v5802_v2 = vld [vmem:[%s5799_s22] sm:$0xff]  ;;  %v5805_v3 = vld [vmem:[%s5799_s22 + $0x8] sm:$0xff]  ;;  %v5808_v4 = vld [vmem:[%s5799_s22 + $0x10] sm:$0xff]  ;;  %930 = vst.msk [vmem:[#allocation2 + $0x62] sm:$0x3] %vm925_vm2, %v5655_v18  ;;  %5350 = vmatprep.subr.msk.mxu1 %vm759_vm0, %v1336_v29  ;;  %4936 = vmatprep.subr.msk.mxu0 %vm759_vm0, %v1336_v29  ;;  %vm998_vm6 = vcmask 64544  }
  0x17   : > { %4912 = vmatprep.mubr.msk.f32.mxu0 %vm710_vm1, %v5802_v2  ;;  %1256 = vst.msk [vmem:[#allocation3 + $0x2] sm:$0xff] %vm710_vm1, %v5802_v2  ;;  %1257 = vst.msk [vmem:[#allocation3 + $0xa] sm:$0xff] %vm710_vm1, %v5805_v3  ;;  %v5819_v5 = vld [vmem:[%s5799_s22 + $0x18] sm:$0xff]  ;;  %v5822_v6 = vld [vmem:[%s5799_s22 + $0x20] sm:$0xff]  ;;  %5351 = vmatpush3.msk.msra.mxu1 %vm759_vm0, %v1336_v29  ;;  %vm1072_vm7 = vcmask 97344   ;;  %vm1154_vm8 = vcmask 122976  }
  0x18   : > { %1258 = vst.msk [vmem:[#allocation3 + $0x1a] sm:$0xff] %vm710_vm1, %v5808_v4  ;;  %v5825_v7 = vld [vmem:[%s5799_s22 + $0x28] sm:$0xff]  ;;  %4913 = vmatmul.mubr.msk.f32.vlgmr.msra.gmra.mrb[0].mxu0 %vm710_vm1, %v5805_v3  ;;  %1259 = vst.msk [vmem:[#allocation3 + $0x22] sm:$0xff] %vm710_vm1, %v5819_v5  ;;  %v5836_v8 = vld [vmem:[%s5799_s22 + $0x30] sm:$0xff]  ;;  %vm1137_vm9 = vcmask 130144   ;;  %vm1228_vm10 = vcmask 156800  }
  0x19   : > { %1260 = vst.msk [vmem:[#allocation3 + $0x32] sm:$0xff] %vm710_vm1, %v5822_v6  ;;  %1261 = vst.msk [vmem:[#allocation3 + $0x3a] sm:$0xff] %vm710_vm1, %v5825_v7  ;;  %v5839_v9 = vld [vmem:[%s5799_s22 + $0x38] sm:$0xff]  ;;  %v5842_v10 = vld [vmem:[%s5799_s22 + $0x40] sm:$0xff]  ;;  %4915 = vmatprep.mubr.msk.f32.mxu0 %vm710_vm1, %v5808_v4  ;;  %4937 = vmatpush3.msk.msra.mxu0 %vm759_vm0, %v1336_v29  ;;  %vm1211_vm11 = vcmask 162944   ;;  %vm1533_vm12 = vcmask 162816  }
  0x1a   : > { %1262 = vst.msk [vmem:[#allocation3 + $0x4a] sm:$0xff] %vm710_vm1, %v5836_v8  ;;  %1263 = vst.msk [vmem:[#allocation3 + $0x52] sm:$0xff] %vm710_vm1, %v5839_v9  ;;  %v5853_v11 = vld [vmem:[%s5799_s22 + $0x48] sm:$0xff]  ;;  %v5856_v12 = vld [vmem:[%s5799_s22 + $0x50] sm:$0xff]  ;;  %vm2080_vm13 = vcmask 24576   ;;  %s7144_s1 = sld [smem:[#allocation9_spill]] }
  0x1b   : > { %1264 = vst.msk [vmem:[#allocation3 + $0x62] sm:$0xff] %vm710_vm1, %v5842_v10  ;;  %v5859_v13 = vld [vmem:[%s5799_s22 + $0x58] sm:$0xff]  ;;  %1265 = vst.msk [vmem:[#allocation3 + $0x6a] sm:$0xff] %vm710_vm1, %v5853_v11  ;;  %v705_v14 = vld [vmem:[%s5799_s22 + $0x60] sm:$0xff]  ;;  %vm1870_vm14 = vcmask 261120   ;;  %vm5660_vm15 = vmmov 1  }
  0x1c   : > { %1266 = vst.msk [vmem:[#allocation3 + $0x7a] sm:$0xff] %vm710_vm1, %v5856_v12  ;;  %1267 = vst.msk [vmem:[#allocation3 + $0x82] sm:$0xff] %vm710_vm1, %v5859_v13  ;;  %v706_v15 = vld [vmem:[%s5799_s22 + $0x68] sm:$0xff]  ;;  %v5870_v16 = vld [vmem:[%s5799_s22 + $0x70] sm:$0xff]  ;;  %4916 = vmatmul.mubr.msk.f32.gmra.mrb[2].mxu0 %vm710_vm1, %v5819_v5  ;;  %p669_p4 = scmp.lt.s32.totalorder %s5780_s25, 1 }
  0x1d   : > { %1268 = vst.msk [vmem:[#allocation3 + $0x92] sm:$0xff] %vm710_vm1, %v705_v14  ;;  %1269 = vst.msk [vmem:[#allocation3 + $0x9a] sm:$0xff] %vm710_vm1, %v706_v15  ;;  %v5877_v17 = vld [vmem:[%s5799_s22 + $0x78] sm:$0xff]  ;;  %4918 = vmatprep.mubr.msk.f32.mxu0 %vm710_vm1, %v5822_v6  ;;  %v1253_v36 = vld [vmem:[%s7143_s29] sm:$0xff] }
  0x1e   : > { %1270 = vst.msk [vmem:[#allocation3 + $0xaa] sm:$0xff] %vm710_vm1, %v5870_v16  ;;  %1271 = vst.msk [vmem:[#allocation3 + $0xb2] sm:$0xff] %vm710_vm1, %v5877_v17  ;;  %v1273_v26 = vld [vmem:[#allocation3 + $0x9] sm:$0xff]  ;;  %v1272_v32 = vld [vmem:[#allocation3 + $0x1] sm:$0xff]  ;;  %s7151_s25 = smov (!%p669_p4, %s5780_s25), 1 }
  0x1f   : > { %931 = vst.msk [vmem:[#allocation2 + $0x7a] sm:$0x3] %vm925_vm2, %v5655_v18  ;;  %932 = vst.msk [vmem:[#allocation2 + $0x92] sm:$0x3] %vm925_vm2, %v5655_v18  ;;  %v1254_v37 = vld [vmem:[%s7143_s29 + $0x8] sm:$0xff]  ;;  %v1289_v38 = vmax.f32 %v1273_v26, %v5805_v3  ;;  %v1288_v41 = vmax.f32 %v1272_v32, %v5802_v2  ;;  %v1274_v56 = vld [vmem:[#allocation3 + $0x19] sm:$0xff] }
  0x20   : > { %4919 = vmatmul.mubr.msk.f32.gmra.mrb[4].mxu0 %vm710_vm1, %v5825_v7  ;;  %933 = vst.msk [vmem:[#allocation2 + $0xaa] sm:$0x3] %vm925_vm2, %v5655_v18  ;;  %v5264_v39 = vpack.c.bf16 %v1254_v37, %v1253_v36  ;;  %v1305_v42 = vld [vmem:[#allocation3 + $0xb] sm:$0xff]  ;;  %v1304_v49 = vld [vmem:[#allocation3 + $0x3] sm:$0xff]  ;;  %v1290_v60 = vmax.f32 %v1274_v56, %v5808_v4  ;;  %v1306_v0 = vld [vmem:[#allocation3 + $0x1b] sm:$0xff]  ;;  %vm2537_vm2 = vcmask 97280  }
  0x21   : > { %4921 = vmatprep.mubr.msk.f32.mxu0 %vm710_vm1, %v5836_v8  ;;  %1016 = vst.msk [vmem:[#allocation2 + $0x2] sm:$0x1] %vm1015_vm3, %v5655_v18  ;;  %1017 = vst.msk [vmem:[#allocation2 + $0x1a] sm:$0x1] %vm1015_vm3, %v5655_v18  ;;  %v1321_v48 = vmax.f32 %v1289_v38, %v1305_v42  ;;  %v1255_v51 = vld [vmem:[%s7143_s29 + $0x10] sm:$0xf]  ;;  %v1320_v52 = vmax.f32 %v1288_v41, %v1304_v49 }
  0x22   : > { %1018 = vst.msk [vmem:[#allocation2 + $0x32] sm:$0x1] %vm1015_vm3, %v5655_v18  ;;  %1019 = vst.msk [vmem:[#allocation2 + $0x4a] sm:$0x1] %vm1015_vm3, %v5655_v18  ;;  %5265 = vmatprep.subr.bf16.mxu1 %v5264_v39  ;;  %v1275_v57 = vld [vmem:[#allocation3 + $0x21] sm:$0xff]  ;;  %v1322_v1 = vmax.f32 %v1290_v60, %v1306_v0  ;;  %v1311_v29 = vld [vmem:[#allocation3 + $0x53] sm:$0xff] }
  0x23   : > { %1020 = vst.msk [vmem:[#allocation2 + $0x62] sm:$0x1] %vm1015_vm3, %v5655_v18  ;;  %1021 = vst.msk [vmem:[#allocation2 + $0x7a] sm:$0x1] %vm1015_vm3, %v5655_v18  ;;  %v1291_v61 = vmax.f32 %v1275_v57, %v5819_v5  ;;  %v1307_v2 = vld [vmem:[#allocation3 + $0x23] sm:$0xff]  ;;  %s4465_s24 = sshll.u32 %s7151_s25, 3 }
  0x24   : > { %4922 = vmatmul.mubr.msk.f32.gmra.mrb[6].mxu0 %vm710_vm1, %v5839_v9  ;;  %v1285_v19 = vld [vmem:[#allocation3 + $0x99] sm:$0xff]  ;;  %v1284_v22 = vld [vmem:[#allocation3 + $0x91] sm:$0xff]  ;;  %1022 = vst.msk [vmem:[#allocation2 + $0x92] sm:$0x1] %vm1015_vm3, %v5655_v18  ;;  %1023 = vst.msk [vmem:[#allocation2 + $0xaa] sm:$0x1] %vm1015_vm3, %v5655_v18  ;;  %s676_s4 = scalar_lea.vmem %s7131_s21, %s4465_s24 }
  0x25   : > { %4924 = vmatprep.mubr.msk.f32.mxu0 %vm710_vm1, %v5842_v10  ;;  %v1301_v20 = vmax.f32 %v1285_v19, %v706_v15  ;;  %v1286_v21 = vld [vmem:[#allocation3 + $0xa9] sm:$0xff]  ;;  %v1287_v23 = vld [vmem:[#allocation3 + $0xb1] sm:$0xff]  ;;  %v1300_v24 = vmax.f32 %v1284_v22, %v705_v14  ;;  %v1317_v31 = vld [vmem:[#allocation3 + $0x9b] sm:$0xff]  ;;  %v1323_v3 = vmax.f32 %v1291_v61, %v1307_v2  ;;  %vm5662_vm3 = vmmov 0  }
  0x26   : > { %v1316_v25 = vld [vmem:[#allocation3 + $0x93] sm:$0xff]  ;;  %v1302_v27 = vmax.f32 %v1286_v21, %v5870_v16  ;;  %v1303_v33 = vmax.f32 %v1287_v23, %v5877_v17  ;;  %v1318_v40 = vld [vmem:[#allocation3 + $0xab] sm:$0xff]  ;;  %v1309_v23 = vld [vmem:[#allocation3 + $0x3b] sm:$0xff] }
  0x27   : > { %v1332_v30 = vmax.f32 %v1300_v24, %v1316_v25  ;;  %v1333_v35 = vmax.f32 %v1301_v20, %v1317_v31  ;;  %v1319_v45 = vld [vmem:[#allocation3 + $0xb3] sm:$0xff]  ;;  %v1315_v41 = vld [vmem:[#allocation3 + $0x83] sm:$0xff]  ;;  %vm6466_vm0 = vmpackc.low %vm1582_vm5, %vm5660_vm15 }
  0x28   : > { %4925 = vmatmul.mubr.msk.f32.gmra.mrb[8].mxu0 %vm710_vm1, %v5853_v11  ;;  %v1334_v44 = vmax.f32 %v1302_v27, %v1318_v40  ;;  %v1335_v47 = vmax.f32 %v1303_v33, %v1319_v45  ;;  %v1308_v21 = vld [vmem:[#allocation3 + $0x33] sm:$0xff]  ;;  %v1310_v27 = vld [vmem:[#allocation3 + $0x4b] sm:$0xff]  ;;  %v1312_v33 = vld [vmem:[#allocation3 + $0x63] sm:$0xff] }
  0x29   : > { %4927 = vmatprep.mubr.msk.f32.mxu0 %vm710_vm1, %v5856_v12  ;;  %4956 = vmatprep.mubr.msk.f32.mxu1 %vm710_vm1, %v1332_v30 }
  0x2a   : > { %4957 = vmatmul.mubr.msk.f32.vlgmr.msra.gmra.mrb[0].mxu1 %vm710_vm1, %v1333_v35  ;;  %v1313_v35 = vld [vmem:[#allocation3 + $0x6b] sm:$0xff] }
  0x2b   : > { %4959 = vmatprep.mubr.msk.f32.mxu1 %vm710_vm1, %v1334_v44  ;;  %5267 = vmatpush3.bf16.msra.mxu1 %v5264_v39  ;;  %v1314_v39 = vld [vmem:[#allocation3 + $0x7b] sm:$0xff] }
  0x2c   : > { %4928 = vmatmul.mubr.msk.f32.gmra.mrb[10].mxu0 %vm710_vm1, %v5859_v13  ;;  %4966 = vmatprep.subr.msk.mxu1 %vm1582_vm5, %v1255_v51 }
  0x2d   : > { %4930 = vmatprep.mubr.msk.f32.mxu0 %vm710_vm1, %v705_v14 }
  0x2e   : > { %4960 = vmatmul.mubr.msk.f32.gmra.mrb[2].mxu1 %vm710_vm1, %v1335_v47 }
  0x2f   : > { %4967 = vmatpush3.msk.msra.mxu1 %vm1582_vm5, %v1255_v51 }
  0x30   : > { %4931 = vmatmul.mubr.msk.f32.gmra.mrb[12].mxu0 %vm710_vm1, %v706_v15 }
  0x31   : > { %4933 = vmatprep.mubr.msk.f32.mxu0 %vm710_vm1, %v5870_v16  ;;  %v1276_v16 = vld [vmem:[#allocation3 + $0x31] sm:$0xff] }
  0x32   : > { %v1292_v19 = vmax.f32 %v1276_v16, %v5822_v6  ;;  %v1278_v6 = vld [vmem:[#allocation3 + $0x49] sm:$0xff] }
  0x33   : > { %v1294_v25 = vmax.f32 %v1278_v6, %v5836_v8  ;;  %v1280_v8 = vld [vmem:[#allocation3 + $0x61] sm:$0xff] }
  0x34   : > { %4934 = vmatmul.mubr.msk.f32.gmra.mrb[14].mxu0 %vm710_vm1, %v5877_v17  ;;  %v1277_v17 = vld [vmem:[#allocation3 + $0x39] sm:$0xff]  ;;  %v1324_v22 = vmax.f32 %v1292_v19, %v1308_v21  ;;  %v1296_v31 = vmax.f32 %v1280_v8, %v5842_v10 }
  0x35   : > { %4938 = vmatprep.mubr.msk.f32.mxu0 %vm710_vm1, %v1320_v52  ;;  %v1293_v20 = vmax.f32 %v1277_v17, %v5825_v7  ;;  %v1279_v7 = vld [vmem:[#allocation3 + $0x51] sm:$0xff]  ;;  %v1282_v10 = vld [vmem:[#allocation3 + $0x79] sm:$0xff] }
  0x36   : > { %v1295_v26 = vmax.f32 %v1279_v7, %v5839_v9  ;;  %v1281_v9 = vld [vmem:[#allocation3 + $0x69] sm:$0xff]  ;;  %v1298_v37 = vmax.f32 %v1282_v10, %v5856_v12 }
  0x37   : > { %v1325_v24 = vmax.f32 %v1293_v20, %v1309_v23  ;;  %v1297_v32 = vmax.f32 %v1281_v9, %v5853_v11  ;;  %v1283_v11 = vld [vmem:[#allocation3 + $0x81] sm:$0xff] }
  0x38   : > { %4939 = vmatmul.mubr.msk.f32.vlgmr.msra.gmra.mrb[16].mxu0 %vm710_vm1, %v1321_v48  ;;  %v1327_v30 = vmax.f32 %v1295_v26, %v1311_v29  ;;  %v1299_v38 = vmax.f32 %v1283_v11, %v5859_v13  ;;  %v1330_v40 = vmax.f32 %v1298_v37, %v1314_v39 }
  0x39   : > { %4941 = vmatprep.mubr.msk.f32.mxu0 %vm710_vm1, %v1322_v1  ;;  %v1329_v36 = vmax.f32 %v1297_v32, %v1313_v35 }
  0x3a   : > { %v1331_v42 = vmax.f32 %v1299_v38, %v1315_v41 }
  0x3c   : > { %4942 = vmatmul.mubr.msk.f32.gmra.mrb[18].mxu0 %vm710_vm1, %v1323_v3 }
  0x3d   : > { %4944 = vmatprep.mubr.msk.f32.mxu0 %vm710_vm1, %v1324_v22 }
  0x40   : > { %4945 = vmatmul.mubr.msk.f32.gmra.mrb[20].mxu0 %vm710_vm1, %v1325_v24 }
  0xeb   : > { %v4914_v28 = vpop.f32.mrb[0].mxu0 }
  0xec   : > { %1026 = vrot.lane.b32.xlu1 %v4914_v28, %s5656_s26  ;;  %952 = vrot.lane.b32.xlu0 %v4914_v28, %s5657_s27  ;;  %v829_v34 = vpop.f32.mrb[1].mxu0  ;;  %910 = vst.msk [vmem:[#allocation2 + $0xc] sm:$0xff] %vm908_vm4, %v4914_v28 }
  0xed   : > { %909 = vst.msk [vmem:[#allocation2 + $0x4] sm:$0xff] %vm908_vm4, %v829_v34 }
  0xef   : > { %v5942_v43 = vpop.f32.mrb[2].mxu0 }
  0xf0   : > { %1091 = vrot.lane.b32.xlu1 %v4914_v28, %s5658_s30  ;;  %950 = vrot.lane.b32.xlu0 %v829_v34, %s5657_s27  ;;  %v839_v46 = vpop.f32.mrb[3].mxu0  ;;  %912 = vst.msk [vmem:[#allocation2 + $0x24] sm:$0xff] %vm908_vm4, %v5942_v43 }
  0xf1   : > { %911 = vst.msk [vmem:[#allocation2 + $0x1c] sm:$0xff] %vm908_vm4, %v839_v46 }
  0xf3   : > { %v5952_v50 = vpop.f32.mrb[4].mxu0 }
  0xf4   : > { %1165 = vrot.lane.b32.xlu1 %v4914_v28, %s5659_s23  ;;  %1089 = vrot.lane.b32.xlu0 %v829_v34, %s5658_s30  ;;  %v5960_v53 = vpop.f32.mrb[5].mxu0  ;;  %914 = vst.msk [vmem:[#allocation2 + $0x3c] sm:$0xff] %vm908_vm4, %v5952_v50  ;;  %v1326_v28 = vmax.f32 %v1294_v25, %v1310_v27 }
  0xf5   : > { %913 = vst.msk [vmem:[#allocation2 + $0x34] sm:$0xff] %vm908_vm4, %v5960_v53 }
  0xf6   : > { %4947 = vmatprep.mubr.msk.f32.mxu0 %vm710_vm1, %v1326_v28 }
  0xf7   : > { %v5970_v54 = vpop.f32.mrb[6].mxu0  ;;  %4948 = vmatmul.mubr.msk.f32.gmra.mrb[22].mxu0 %vm710_vm1, %v1327_v30 }
  0xf8   : > { %1024 = vrot.lane.b32.xlu1 %v829_v34, %s5656_s26  ;;  %1163 = vrot.lane.b32.xlu0 %v829_v34, %s5659_s23  ;;  %v5974_v55 = vpop.f32.mrb[7].mxu0  ;;  %916 = vst.msk [vmem:[#allocation2 + $0x54] sm:$0xff] %vm908_vm4, %v5970_v54  ;;  %v1328_v34 = vmax.f32 %v1296_v31, %v1312_v33 }
  0xf9   : > { %915 = vst.msk [vmem:[#allocation2 + $0x4c] sm:$0xff] %vm908_vm4, %v5974_v55 }
  0xfa   : > { %4950 = vmatprep.mubr.msk.f32.mxu0 %vm710_vm1, %v1328_v34 }
  0xfb   : > { %v5980_v58 = vpop.f32.mrb[8].mxu0  ;;  %4951 = vmatmul.mubr.msk.f32.gmra.mrb[24].mxu0 %vm710_vm1, %v1329_v36 }
  0xfc   : > { %956 = vrot.lane.b32.xlu1 %v5942_v43, %s5657_s27  ;;  %954 = vrot.lane.b32.xlu0 %v839_v46, %s5657_s27  ;;  %v5985_v59 = vpop.f32.mrb[9].mxu0  ;;  %918 = vst.msk [vmem:[#allocation2 + $0x6c] sm:$0xff] %vm908_vm4, %v5980_v58 }
  0xfd   : > { %917 = vst.msk [vmem:[#allocation2 + $0x64] sm:$0xff] %vm908_vm4, %v5985_v59  ;;  %4953 = vmatprep.mubr.msk.f32.mxu0 %vm710_vm1, %v1330_v40 }
  0xff   : > { %v5993_v62 = vpop.f32.mrb[10].mxu0  ;;  %4954 = vmatmul.mubr.msk.f32.gmra.mrb[26].mxu0 %vm710_vm1, %v1331_v42  ;;  %vm2233_vm1 = vcmask 90176  }
 0x100   : > { %1030 = vrot.lane.b32.xlu1 %v5942_v43, %s5656_s26  ;;  %1028 = vrot.lane.b32.xlu0 %v839_v46, %s5656_s26  ;;  %v5998_v63 = vpop.f32.mrb[11].mxu0  ;;  %920 = vst.msk [vmem:[#allocation2 + $0x84] sm:$0xff] %vm908_vm4, %v5993_v62 }
 0x101   : > { %919 = vst.msk [vmem:[#allocation2 + $0x7c] sm:$0xff] %vm908_vm4, %v5998_v63 }
 0x103   : > { %v6004_v4 = vpop.f32.mrb[12].mxu0 }
 0x104   : > { %1095 = vrot.lane.b32.xlu1 %v5942_v43, %s5658_s30  ;;  %1093 = vrot.lane.b32.xlu0 %v839_v46, %s5658_s30  ;;  %v6010_v5 = vpop.f32.mrb[13].mxu0  ;;  %922 = vst.msk [vmem:[#allocation2 + $0x9c] sm:$0xff] %vm908_vm4, %v6004_v4 }
 0x105   : > { %921 = vst.msk [vmem:[#allocation2 + $0x94] sm:$0xff] %vm908_vm4, %v6010_v5 }
 0x107   : > { %v6017_v14 = vpop.f32.mrb[14].mxu0 }
 0x108   : > { %1169 = vrot.lane.b32.xlu1 %v5942_v43, %s5659_s23  ;;  %1167 = vrot.lane.b32.xlu0 %v839_v46, %s5659_s23  ;;  %v6022_v15 = vpop.f32.mrb[15].mxu0  ;;  %924 = vst.msk [vmem:[#allocation2 + $0xb4] sm:$0xff] %vm908_vm4, %v6017_v14 }
 0x109   : > { %923 = vst.msk [vmem:[#allocation2 + $0xac] sm:$0xff] %vm908_vm4, %v6022_v15 }
 0x10c   : > { %960 = vrot.lane.b32.xlu1 %v5952_v50, %s5657_s27  ;;  %958 = vrot.lane.b32.xlu0 %v5960_v53, %s5657_s27 }
 0x110   : > { %1034 = vrot.lane.b32.xlu1 %v5952_v50, %s5656_s26  ;;  %1032 = vrot.lane.b32.xlu0 %v5960_v53, %s5656_s26 }
 0x114   : > { %1099 = vrot.lane.b32.xlu1 %v5952_v50, %s5658_s30  ;;  %1097 = vrot.lane.b32.xlu0 %v5960_v53, %s5658_s30 }
 0x118   : > { %1173 = vrot.lane.b32.xlu1 %v5952_v50, %s5659_s23  ;;  %1171 = vrot.lane.b32.xlu0 %v5960_v53, %s5659_s23 }
 0x11c   : > { %964 = vrot.lane.b32.xlu1 %v5970_v54, %s5657_s27  ;;  %962 = vrot.lane.b32.xlu0 %v5974_v55, %s5657_s27 }
 0x120   : > { %1038 = vrot.lane.b32.xlu1 %v5970_v54, %s5656_s26  ;;  %1036 = vrot.lane.b32.xlu0 %v5974_v55, %s5656_s26 }
 0x124   : > { %1103 = vrot.lane.b32.xlu1 %v5970_v54, %s5658_s30  ;;  %1101 = vrot.lane.b32.xlu0 %v5974_v55, %s5658_s30 }
 0x128   : > { %1177 = vrot.lane.b32.xlu1 %v5970_v54, %s5659_s23  ;;  %1175 = vrot.lane.b32.xlu0 %v5974_v55, %s5659_s23 }
 0x12c   : > { %968 = vrot.lane.b32.xlu1 %v5980_v58, %s5657_s27  ;;  %966 = vrot.lane.b32.xlu0 %v5985_v59, %s5657_s27 }
 0x130   : > { %1042 = vrot.lane.b32.xlu1 %v5980_v58, %s5656_s26  ;;  %1040 = vrot.lane.b32.xlu0 %v5985_v59, %s5656_s26 }
 0x134   : > { %1107 = vrot.lane.b32.xlu1 %v5980_v58, %s5658_s30  ;;  %1105 = vrot.lane.b32.xlu0 %v5985_v59, %s5658_s30 }
 0x138   : > { %1181 = vrot.lane.b32.xlu1 %v5980_v58, %s5659_s23  ;;  %1179 = vrot.lane.b32.xlu0 %v5985_v59, %s5659_s23 }
 0x13c   : > { %972 = vrot.lane.b32.xlu1 %v5993_v62, %s5657_s27  ;;  %970 = vrot.lane.b32.xlu0 %v5998_v63, %s5657_s27 }
 0x140   : > { %1046 = vrot.lane.b32.xlu1 %v5993_v62, %s5656_s26  ;;  %1044 = vrot.lane.b32.xlu0 %v5998_v63, %s5656_s26 }
 0x144   : > { %1111 = vrot.lane.b32.xlu1 %v5993_v62, %s5658_s30  ;;  %1109 = vrot.lane.b32.xlu0 %v5998_v63, %s5658_s30 }
 0x148   : > { %1185 = vrot.lane.b32.xlu1 %v5993_v62, %s5659_s23  ;;  %1183 = vrot.lane.b32.xlu0 %v5998_v63, %s5659_s23 }
 0x14c   : > { %976 = vrot.lane.b32.xlu1 %v6004_v4, %s5657_s27  ;;  %974 = vrot.lane.b32.xlu0 %v6010_v5, %s5657_s27 }
 0x150   : > { %1050 = vrot.lane.b32.xlu1 %v6004_v4, %s5656_s26  ;;  %1048 = vrot.lane.b32.xlu0 %v6010_v5, %s5656_s26 }
 0x154   : > { %1115 = vrot.lane.b32.xlu1 %v6004_v4, %s5658_s30  ;;  %1113 = vrot.lane.b32.xlu0 %v6010_v5, %s5658_s30 }
 0x158   : > { %1189 = vrot.lane.b32.xlu1 %v6004_v4, %s5659_s23  ;;  %1187 = vrot.lane.b32.xlu0 %v6010_v5, %s5659_s23 }
 0x15c   : > { %980 = vrot.lane.b32.xlu1 %v6017_v14, %s5657_s27  ;;  %978 = vrot.lane.b32.xlu0 %v6022_v15, %s5657_s27 }
 0x15e   : > { %v1027_v12 = vpop.permute.xlu1 %1026  ;;  %v953_v13 = vpop.permute.xlu0 %952 }
 0x15f   : > { %1000 = vst.msk [vmem:[#allocation2 + $0xb] sm:$0xff] %vm998_vm6, %v953_v13 }
 0x160   : > { %1054 = vrot.lane.b32.xlu1 %v6017_v14, %s5656_s26  ;;  %1052 = vrot.lane.b32.xlu0 %v6022_v15, %s5656_s26 }
 0x162   : > { %v1092_v43 = vpop.permute.xlu1 %1091  ;;  %v951_v44 = vpop.permute.xlu0 %950 }
 0x163   : > { %999 = vst.msk [vmem:[#allocation2 + $0x3] sm:$0xff] %vm998_vm6, %v951_v44  ;;  %v4940_v44 = vpop.f32.mrb[16].mxu0 }
 0x164   : > { %1074 = vst.msk [vmem:[#allocation2 + $0xa] sm:$0xff] %vm1072_vm7, %v1027_v12  ;;  %1119 = vrot.lane.b32.xlu1 %v6017_v14, %s5658_s30  ;;  %1117 = vrot.lane.b32.xlu0 %v6022_v15, %s5658_s30  ;;  %s7147_s30 = sld [smem:[#allocation5_spill]] }
 0x165   : > { %1155 = vst.msk [vmem:[#allocation2 + $0x11] sm:$0x1] %vm1154_vm8, %v5655_v18 }
 0x166   : > { %v1166_v45 = vpop.permute.xlu1 %1165  ;;  %v1090_v46 = vpop.permute.xlu0 %1089 }
 0x168   : > { %1193 = vrot.lane.b32.xlu1 %v6017_v14, %s5659_s23  ;;  %1191 = vrot.lane.b32.xlu0 %v6022_v15, %s5659_s23 }
 0x16a   : > { %v1025_v47 = vpop.permute.xlu1 %1024  ;;  %v1164_v48 = vpop.permute.xlu0 %1163  ;;  %s672_s5 = scalar_lea.vmem %s7147_s30, %s4465_s24 }
 0x16b   : > { %1073 = vst.msk [vmem:[#allocation2 + $0x2] sm:$0xff] %vm1072_vm7, %v1025_v47  ;;  %v1454_v47 = vpop.f32.mrb[17].mxu0 }
 0x16c   : > { %1139 = vst.msk [vmem:[#allocation2 + $0x9] sm:$0xff] %vm1137_vm9, %v1092_v43  ;;  %1138 = vst.msk [vmem:[#allocation2 + $0x1] sm:$0xff] %vm1137_vm9, %v1090_v46 }
 0x16d   : > { %1229 = vst.msk [vmem:[#allocation2 + $0x10] sm:$0x3] %vm1228_vm10, %v5655_v18 }
 0x16e   : > { %1212 = vst.msk [vmem:[#allocation2] sm:$0xff] %vm1211_vm11, %v1164_v48  ;;  %1213 = vst.msk [vmem:[#allocation2 + $0x8] sm:$0xff] %vm1211_vm11, %v1166_v45  ;;  %v957_v49 = vpop.permute.xlu1 %956  ;;  %v955_v50 = vpop.permute.xlu0 %954 }
 0x16f   : > { %1002 = vst.msk [vmem:[#allocation2 + $0x23] sm:$0xff] %vm998_vm6, %v957_v49  ;;  %1001 = vst.msk [vmem:[#allocation2 + $0x1b] sm:$0xff] %vm998_vm6, %v955_v50 }
 0x172   : > { %v1031_v51 = vpop.permute.xlu1 %1030  ;;  %v1029_v52 = vpop.permute.xlu0 %1028 }
 0x173   : > { %1076 = vst.msk [vmem:[#allocation2 + $0x22] sm:$0xff] %vm1072_vm7, %v1031_v51  ;;  %1075 = vst.msk [vmem:[#allocation2 + $0x1a] sm:$0xff] %vm1072_vm7, %v1029_v52 }
 0x174   : > { %1156 = vst.msk [vmem:[#allocation2 + $0x29] sm:$0x1] %vm1154_vm8, %v5655_v18 }
 0x175   : > { %v1237_v53 = vld [vmem:[#allocation2 + $0x2] sm:$0xff]  ;;  %v1238_v54 = vld [vmem:[#allocation2 + $0xa] sm:$0xff] }
 0x176   : > { %4968 = vmatprep.mubr.msk.f32.mxu1 %vm1533_vm12, %v1237_v53  ;;  %2081 = vst.msk [vmem:[#allocation2 + $0x2] sm:$0x1] %vm2080_vm13, %v5655_v18  ;;  %v1096_v55 = vpop.permute.xlu1 %1095  ;;  %v1094_v56 = vpop.permute.xlu0 %1093 }
 0x177   : > { %4969 = vmatmul.mubr.msk.f32.vlgmr.msra.gmra.mrb[4].mxu1 %vm1533_vm12, %v1238_v54  ;;  %1141 = vst.msk [vmem:[#allocation2 + $0x21] sm:$0xff] %vm1137_vm9, %v1096_v55  ;;  %1140 = vst.msk [vmem:[#allocation2 + $0x19] sm:$0xff] %vm1137_vm9, %v1094_v56  ;;  %v4943_v56 = vpop.f32.mrb[18].mxu0 }
 0x178   : > { %1230 = vst.msk [vmem:[#allocation2 + $0x28] sm:$0x3] %vm1228_vm10, %v5655_v18 }
 0x17a   : > { %v1170_v57 = vpop.permute.xlu1 %1169  ;;  %v1168_v58 = vpop.permute.xlu0 %1167 }
 0x17b   : > { %1215 = vst.msk [vmem:[#allocation2 + $0x20] sm:$0xff] %vm1211_vm11, %v1170_v57  ;;  %1214 = vst.msk [vmem:[#allocation2 + $0x18] sm:$0xff] %vm1211_vm11, %v1168_v58  ;;  %v1464_v57 = vpop.f32.mrb[19].mxu0 }
 0x17e   : > { %v961_v59 = vpop.permute.xlu1 %960  ;;  %v959_v60 = vpop.permute.xlu0 %958 }
 0x17f   : > { %1004 = vst.msk [vmem:[#allocation2 + $0x3b] sm:$0xff] %vm998_vm6, %v961_v59  ;;  %1003 = vst.msk [vmem:[#allocation2 + $0x33] sm:$0xff] %vm998_vm6, %v959_v60 }
 0x182   : > { %v1035_v61 = vpop.permute.xlu1 %1034  ;;  %v1033_v62 = vpop.permute.xlu0 %1032  ;;  %v1239_v63 = vld [vmem:[#allocation2 + $0x1a] sm:$0xff]  ;;  %v1240_v0 = vld [vmem:[#allocation2 + $0x22] sm:$0xff] }
 0x183   : > { %1078 = vst.msk [vmem:[#allocation2 + $0x3a] sm:$0xff] %vm1072_vm7, %v1035_v61  ;;  %1077 = vst.msk [vmem:[#allocation2 + $0x32] sm:$0xff] %vm1072_vm7, %v1033_v62  ;;  %4971 = vmatprep.mubr.msk.f32.mxu1 %vm1533_vm12, %v1239_v63  ;;  %v1866_v62 = vld [vmem:[%s7116_s6] sm:$0xff]  ;;  %v1867_v63 = vld [vmem:[%s7116_s6 + $0x8] sm:$0xff] }
 0x184   : > { %2082 = vst.msk [vmem:[#allocation2 + $0x1a] sm:$0x1] %vm2080_vm13, %v5655_v18  ;;  %4972 = vmatmul.mubr.msk.f32.gmra.mrb[6].mxu1 %vm1533_vm12, %v1240_v0  ;;  %v5268_v0 = vpack.c.bf16 %v1867_v63, %v1866_v62 }
 0x185   : > { %1157 = vst.msk [vmem:[#allocation2 + $0x41] sm:$0x1] %vm1154_vm8, %v5655_v18 }
 0x186   : > { %v1100_v1 = vpop.permute.xlu1 %1099  ;;  %v1098_v2 = vpop.permute.xlu0 %1097  ;;  %5269 = vmatprep.subr.bf16.mxu0 %v5268_v0 }
 0x187   : > { %1143 = vst.msk [vmem:[#allocation2 + $0x39] sm:$0xff] %vm1137_vm9, %v1100_v1  ;;  %1142 = vst.msk [vmem:[#allocation2 + $0x31] sm:$0xff] %vm1137_vm9, %v1098_v2  ;;  %v1868_v1 = vld [vmem:[%s7116_s6 + $0x10] sm:$0xff]  ;;  %v1869_v2 = vld [vmem:[%s7116_s6 + $0x18] sm:$0xff]  ;;  %5271 = vmatpush3.bf16.msra.mxu0 %v5268_v0 }
 0x188   : > { %1231 = vst.msk [vmem:[#allocation2 + $0x40] sm:$0x3] %vm1228_vm10, %v5655_v18 }
 0x18a   : > { %v1174_v3 = vpop.permute.xlu1 %1173  ;;  %v1172_v4 = vpop.permute.xlu0 %1171 }
 0x18b   : > { %1217 = vst.msk [vmem:[#allocation2 + $0x38] sm:$0xff] %vm1211_vm11, %v1174_v3  ;;  %1216 = vst.msk [vmem:[#allocation2 + $0x30] sm:$0xff] %vm1211_vm11, %v1172_v4  ;;  %v5272_v3 = vpack.c.bf16 %v1869_v2, %v1868_v1  ;;  %v4946_v4 = vpop.f32.mrb[20].mxu0 }
 0x18d   : > { %5273 = vmatprep.subr.bf16.mxu0 %v5272_v3 }
 0x18e   : > { %v965_v5 = vpop.permute.xlu1 %964  ;;  %v963_v14 = vpop.permute.xlu0 %962  ;;  %5275 = vmatpush3.bf16.msra.mxu0 %v5272_v3 }
 0x18f   : > { %1006 = vst.msk [vmem:[#allocation2 + $0x53] sm:$0xff] %vm998_vm6, %v965_v5  ;;  %1005 = vst.msk [vmem:[#allocation2 + $0x4b] sm:$0xff] %vm998_vm6, %v963_v14  ;;  %v1474_v5 = vpop.f32.mrb[21].mxu0 }
 0x192   : > { %v1039_v15 = vpop.permute.xlu1 %1038  ;;  %v1037_v16 = vpop.permute.xlu0 %1036  ;;  %v1241_v17 = vld [vmem:[#allocation2 + $0x32] sm:$0xff]  ;;  %v1242_v19 = vld [vmem:[#allocation2 + $0x3a] sm:$0xff] }
 0x193   : > { %1080 = vst.msk [vmem:[#allocation2 + $0x52] sm:$0xff] %vm1072_vm7, %v1039_v15  ;;  %1079 = vst.msk [vmem:[#allocation2 + $0x4a] sm:$0xff] %vm1072_vm7, %v1037_v16  ;;  %4974 = vmatprep.mubr.msk.f32.mxu1 %vm1533_vm12, %v1241_v17 }
 0x194   : > { %2083 = vst.msk [vmem:[#allocation2 + $0x32] sm:$0x1] %vm2080_vm13, %v5655_v18  ;;  %4975 = vmatmul.mubr.msk.f32.gmra.mrb[8].mxu1 %vm1533_vm12, %v1242_v19 }
 0x195   : > { %1158 = vst.msk [vmem:[#allocation2 + $0x59] sm:$0x1] %vm1154_vm8, %v5655_v18 }
 0x196   : > { %v1104_v20 = vpop.permute.xlu1 %1103  ;;  %v1102_v21 = vpop.permute.xlu0 %1101 }
 0x197   : > { %1145 = vst.msk [vmem:[#allocation2 + $0x51] sm:$0xff] %vm1137_vm9, %v1104_v20  ;;  %1144 = vst.msk [vmem:[#allocation2 + $0x49] sm:$0xff] %vm1137_vm9, %v1102_v21 }
 0x198   : > { %1232 = vst.msk [vmem:[#allocation2 + $0x58] sm:$0x3] %vm1228_vm10, %v5655_v18 }
 0x19a   : > { %v1178_v22 = vpop.permute.xlu1 %1177  ;;  %v1176_v23 = vpop.permute.xlu0 %1175 }
 0x19b   : > { %1219 = vst.msk [vmem:[#allocation2 + $0x50] sm:$0xff] %vm1211_vm11, %v1178_v22  ;;  %1218 = vst.msk [vmem:[#allocation2 + $0x48] sm:$0xff] %vm1211_vm11, %v1176_v23  ;;  %v6295_v22 = vld [vmem:[%s7144_s1] ss:$0 sm:$0xff] }
 0x19e   : > { %v969_v24 = vpop.permute.xlu1 %968  ;;  %v967_v6 = vpop.permute.xlu0 %966 }
 0x19f   : > { %1008 = vst.msk [vmem:[#allocation2 + $0x6b] sm:$0xff] %vm998_vm6, %v969_v24  ;;  %1007 = vst.msk [vmem:[#allocation2 + $0x63] sm:$0xff] %vm998_vm6, %v967_v6 }
 0x1a2   : > { %v1043_v7 = vpop.permute.xlu1 %1042  ;;  %v1041_v25 = vpop.permute.xlu0 %1040  ;;  %v1243_v26 = vld [vmem:[#allocation2 + $0x4a] sm:$0xff]  ;;  %v1244_v27 = vld [vmem:[#allocation2 + $0x52] sm:$0xff] }
 0x1a3   : > { %1082 = vst.msk [vmem:[#allocation2 + $0x6a] sm:$0xff] %vm1072_vm7, %v1043_v7  ;;  %1081 = vst.msk [vmem:[#allocation2 + $0x62] sm:$0xff] %vm1072_vm7, %v1041_v25  ;;  %4977 = vmatprep.mubr.msk.f32.mxu1 %vm1533_vm12, %v1243_v26 }
 0x1a4   : > { %2084 = vst.msk [vmem:[#allocation2 + $0x4a] sm:$0x1] %vm2080_vm13, %v5655_v18  ;;  %4978 = vmatmul.mubr.msk.f32.gmra.mrb[10].mxu1 %vm1533_vm12, %v1244_v27 }
 0x1a5   : > { %1159 = vst.msk [vmem:[#allocation2 + $0x71] sm:$0x1] %vm1154_vm8, %v5655_v18 }
 0x1a6   : > { %v1108_v28 = vpop.permute.xlu1 %1107  ;;  %v1106_v29 = vpop.permute.xlu0 %1105 }
 0x1a7   : > { %1147 = vst.msk [vmem:[#allocation2 + $0x69] sm:$0xff] %vm1137_vm9, %v1108_v28  ;;  %1146 = vst.msk [vmem:[#allocation2 + $0x61] sm:$0xff] %vm1137_vm9, %v1106_v29  ;;  %v2340_v28 = vld [vmem:[%s7118_s8] sm:$0xff]  ;;  %v2341_v29 = vld [vmem:[%s7118_s8 + $0x8] sm:$0xff] }
 0x1a8   : > { %1233 = vst.msk [vmem:[#allocation2 + $0x70] sm:$0x3] %vm1228_vm10, %v5655_v18 }
 0x1aa   : > { %v1182_v30 = vpop.permute.xlu1 %1181  ;;  %v1180_v8 = vpop.permute.xlu0 %1179 }
 0x1ab   : > { %1221 = vst.msk [vmem:[#allocation2 + $0x68] sm:$0xff] %vm1211_vm11, %v1182_v30  ;;  %1220 = vst.msk [vmem:[#allocation2 + $0x60] sm:$0xff] %vm1211_vm11, %v1180_v8  ;;  %v5276_v30 = vpack.c.bf16 %v2341_v29, %v2340_v28 }
 0x1ad   : > { %5277 = vmatprep.subr.bf16.mxu0 %v5276_v30 }
 0x1ae   : > { %v973_v9 = vpop.permute.xlu1 %972  ;;  %v971_v31 = vpop.permute.xlu0 %970 }
 0x1af   : > { %1010 = vst.msk [vmem:[#allocation2 + $0x83] sm:$0xff] %vm998_vm6, %v973_v9  ;;  %1009 = vst.msk [vmem:[#allocation2 + $0x7b] sm:$0xff] %vm998_vm6, %v971_v31 }
 0x1b2   : > { %v1047_v32 = vpop.permute.xlu1 %1046  ;;  %v1045_v33 = vpop.permute.xlu0 %1044  ;;  %v1245_v34 = vld [vmem:[#allocation2 + $0x62] sm:$0xff]  ;;  %v1246_v35 = vld [vmem:[#allocation2 + $0x6a] sm:$0xff] }
 0x1b3   : > { %1084 = vst.msk [vmem:[#allocation2 + $0x82] sm:$0xff] %vm1072_vm7, %v1047_v32  ;;  %1083 = vst.msk [vmem:[#allocation2 + $0x7a] sm:$0xff] %vm1072_vm7, %v1045_v33  ;;  %4980 = vmatprep.mubr.msk.f32.mxu1 %vm1533_vm12, %v1245_v34 }
 0x1b4   : > { %2085 = vst.msk [vmem:[#allocation2 + $0x62] sm:$0x1] %vm2080_vm13, %v5655_v18  ;;  %4981 = vmatmul.mubr.msk.f32.gmra.mrb[12].mxu1 %vm1533_vm12, %v1246_v35 }
 0x1b5   : > { %1160 = vst.msk [vmem:[#allocation2 + $0x89] sm:$0x1] %vm1154_vm8, %v5655_v18 }
 0x1b6   : > { %v1112_v36 = vpop.permute.xlu1 %1111  ;;  %v1110_v10 = vpop.permute.xlu0 %1109 }
 0x1b7   : > { %1149 = vst.msk [vmem:[#allocation2 + $0x81] sm:$0xff] %vm1137_vm9, %v1112_v36  ;;  %1148 = vst.msk [vmem:[#allocation2 + $0x79] sm:$0xff] %vm1137_vm9, %v1110_v10 }
 0x1b8   : > { %1234 = vst.msk [vmem:[#allocation2 + $0x88] sm:$0x3] %vm1228_vm10, %v5655_v18 }
 0x1ba   : > { %v1186_v11 = vpop.permute.xlu1 %1185  ;;  %v1184_v37 = vpop.permute.xlu0 %1183 }
 0x1bb   : > { %1223 = vst.msk [vmem:[#allocation2 + $0x80] sm:$0xff] %vm1211_vm11, %v1186_v11  ;;  %1222 = vst.msk [vmem:[#allocation2 + $0x78] sm:$0xff] %vm1211_vm11, %v1184_v37 }
 0x1be   : > { %v977_v38 = vpop.permute.xlu1 %976  ;;  %v975_v39 = vpop.permute.xlu0 %974 }
 0x1bf   : > { %1012 = vst.msk [vmem:[#allocation2 + $0x9b] sm:$0xff] %vm998_vm6, %v977_v38  ;;  %1011 = vst.msk [vmem:[#allocation2 + $0x93] sm:$0xff] %vm998_vm6, %v975_v39 }
 0x1c2   : > { %v1051_v40 = vpop.permute.xlu1 %1050  ;;  %v1049_v41 = vpop.permute.xlu0 %1048  ;;  %v1247_v42 = vld [vmem:[#allocation2 + $0x7a] sm:$0xff]  ;;  %v1248_v12 = vld [vmem:[#allocation2 + $0x82] sm:$0xff] }
 0x1c3   : > { %1086 = vst.msk [vmem:[#allocation2 + $0x9a] sm:$0xff] %vm1072_vm7, %v1051_v40  ;;  %1085 = vst.msk [vmem:[#allocation2 + $0x92] sm:$0xff] %vm1072_vm7, %v1049_v41  ;;  %4983 = vmatprep.mubr.msk.f32.mxu1 %vm1533_vm12, %v1247_v42  ;;  %v2342_v41 = vld [vmem:[%s7118_s8 + $0x10] sm:$0xff]  ;;  %v2343_v42 = vld [vmem:[%s7118_s8 + $0x18] sm:$0xff] }
 0x1c4   : > { %2086 = vst.msk [vmem:[#allocation2 + $0x7a] sm:$0x1] %vm2080_vm13, %v5655_v18  ;;  %4984 = vmatmul.mubr.msk.f32.gmra.mrb[14].mxu1 %vm1533_vm12, %v1248_v12 }
 0x1c5   : > { %1161 = vst.msk [vmem:[#allocation2 + $0xa1] sm:$0x1] %vm1154_vm8, %v5655_v18 }
 0x1c6   : > { %v1116_v13 = vpop.permute.xlu1 %1115  ;;  %v1114_v43 = vpop.permute.xlu0 %1113 }
 0x1c7   : > { %1151 = vst.msk [vmem:[#allocation2 + $0x99] sm:$0xff] %vm1137_vm9, %v1116_v13  ;;  %1150 = vst.msk [vmem:[#allocation2 + $0x91] sm:$0xff] %vm1137_vm9, %v1114_v43 }
 0x1c8   : > { %1235 = vst.msk [vmem:[#allocation2 + $0xa0] sm:$0x3] %vm1228_vm10, %v5655_v18 }
 0x1ca   : > { %v1190_v45 = vpop.permute.xlu1 %1189  ;;  %v1188_v46 = vpop.permute.xlu0 %1187 }
 0x1cb   : > { %1225 = vst.msk [vmem:[#allocation2 + $0x98] sm:$0xff] %vm1211_vm11, %v1190_v45  ;;  %1224 = vst.msk [vmem:[#allocation2 + $0x90] sm:$0xff] %vm1211_vm11, %v1188_v46  ;;  %v6280_v14 = vpop.f32.mrb[22].mxu0 }
 0x1cc   : > { %v6282_v15 = vpop.f32.mrb[23].mxu0 }
 0x1ce   : > { %v981_v48 = vpop.permute.xlu1 %980  ;;  %v979_v49 = vpop.permute.xlu0 %978 }
 0x1cf   : > { %1014 = vst.msk [vmem:[#allocation2 + $0xb3] sm:$0xff] %vm998_vm6, %v981_v48  ;;  %1013 = vst.msk [vmem:[#allocation2 + $0xab] sm:$0xff] %vm998_vm6, %v979_v49  ;;  %v6284_v16 = vpop.f32.mrb[24].mxu0 }
 0x1d0   : > { %v6286_v17 = vpop.f32.mrb[25].mxu0 }
 0x1d2   : > { %v1055_v50 = vpop.permute.xlu1 %1054  ;;  %v1053_v51 = vpop.permute.xlu0 %1052  ;;  %v1249_v52 = vld [vmem:[#allocation2 + $0x92] sm:$0xff]  ;;  %v1250_v53 = vld [vmem:[#allocation2 + $0x9a] sm:$0xff] }
 0x1d3   : > { %1088 = vst.msk [vmem:[#allocation2 + $0xb2] sm:$0xff] %vm1072_vm7, %v1055_v50  ;;  %1087 = vst.msk [vmem:[#allocation2 + $0xaa] sm:$0xff] %vm1072_vm7, %v1053_v51  ;;  %4986 = vmatprep.mubr.msk.f32.mxu1 %vm1533_vm12, %v1249_v52  ;;  %v6288_v19 = vpop.f32.mrb[26].mxu0  ;;  %v5280_v51 = vpack.c.bf16 %v2343_v42, %v2342_v41 }
 0x1d4   : > { %2087 = vst.msk [vmem:[#allocation2 + $0x92] sm:$0x1] %vm2080_vm13, %v5655_v18  ;;  %4987 = vmatmul.mubr.msk.f32.gmra.mrb[0].mxu1 %vm1533_vm12, %v1250_v53  ;;  %v6290_v20 = vpop.f32.mrb[27].mxu0 }
 0x1d5   : > { %1162 = vst.msk [vmem:[#allocation2 + $0xb9] sm:$0x1] %vm1154_vm8, %v5655_v18  ;;  %vm4215_vm8 = vcmask 48128  }
 0x1d6   : > { %v1120_v54 = vpop.permute.xlu1 %1119  ;;  %v1118_v55 = vpop.permute.xlu0 %1117 }
 0x1d7   : > { %1153 = vst.msk [vmem:[#allocation2 + $0xb1] sm:$0xff] %vm1137_vm9, %v1120_v54  ;;  %1152 = vst.msk [vmem:[#allocation2 + $0xa9] sm:$0xff] %vm1137_vm9, %v1118_v55  ;;  %vm4316_vm9 = vcmask 64512  }
 0x1d8   : > { %1236 = vst.msk [vmem:[#allocation2 + $0xb8] sm:$0x3] %vm1228_vm10, %v5655_v18  ;;  %vm4390_vm10 = vcmask 15360  }
 0x1da   : > { %v1194_v58 = vpop.permute.xlu1 %1193  ;;  %v1192_v59 = vpop.permute.xlu0 %1191 }
 0x1db   : > { %1227 = vst.msk [vmem:[#allocation2 + $0xb0] sm:$0xff] %vm1211_vm11, %v1194_v58  ;;  %1226 = vst.msk [vmem:[#allocation2 + $0xa8] sm:$0xff] %vm1211_vm11, %v1192_v59 }
 0x1e2   : > { %v1251_v60 = vld [vmem:[#allocation2 + $0xaa] sm:$0xff]  ;;  %v1252_v61 = vld [vmem:[#allocation2 + $0xb2] sm:$0xff] }
 0x1e3   : > { %4989 = vmatprep.mubr.msk.f32.mxu1 %vm1533_vm12, %v1251_v60  ;;  %2088 = vst.msk [vmem:[#allocation2 + $0xaa] sm:$0x1] %vm2080_vm13, %v5655_v18 }
 0x1e4   : > { %4990 = vmatmul.mubr.msk.f32.gmra.mrb[2].mxu1 %vm1533_vm12, %v1252_v61 }
 0x24a   : > { %v4970_v21 = vpop.f32.mrb[4].mxu1 }
 0x24b   : > { %v1658_v23 = vadd.f32 %v4970_v21, %v4940_v44  ;;  %v1652_v24 = vpop.f32.mrb[5].mxu1 }
 0x24c   : > { %v1653_v6 = vadd.f32 %v1652_v24, %v1454_v47 }
 0x24d   : > { %v1739_v7 = vadd.f32 %v6295_v22, %v1658_v23 }
 0x24e   : > { %v1738_v25 = vadd.f32 %v6295_v22, %v1653_v6 }
 0x24f   : > { %v4520_v26 = vmul.f32 -1.442695, %v1739_v7 }
 0x250   : > { %v4519_v27 = vmul.f32 -1.442695, %v1738_v25 }
 0x251   : > { %5450 = vpow2.f32 %v4520_v26 }
 0x252   : > { %5452 = vpow2.f32 %v4519_v27 }
 0x257   : > { %v4973_v8 = vpop.f32.mrb[6].mxu1 }
 0x258   : > { %v1668_v9 = vadd.f32 %v4973_v8, %v4943_v56  ;;  %v1662_v31 = vpop.f32.mrb[7].mxu1 }
 0x259   : > { %v1663_v32 = vadd.f32 %v1662_v31, %v1464_v57 }
 0x25a   : > { %v1741_v34 = vadd.f32 %v6295_v22, %v1668_v9 }
 0x25b   : > { %v5451_v33 = vpop.eup %5450  ;;  %v1740_v10 = vadd.f32 %v6295_v22, %v1663_v32 }
 0x25c   : > { %v5453_v35 = vpop.eup %5452  ;;  %v1803_v36 = vadd.f32 1.0, %v5451_v33  ;;  %v4522_v37 = vmul.f32 -1.442695, %v1741_v34 }
 0x25d   : > { %v1802_v11 = vadd.f32 1.0, %v5453_v35  ;;  %v4521_v38 = vmul.f32 -1.442695, %v1740_v10 }
 0x25e   : > { %5454 = vrcp.f32 %v1803_v36 }
 0x25f   : > { %5456 = vrcp.f32 %v1802_v11 }
 0x260   : > { %5458 = vpow2.f32 %v4522_v37 }
 0x261   : > { %5460 = vpow2.f32 %v4521_v38 }
 0x267   : > { %v4976_v40 = vpop.f32.mrb[8].mxu1 }
 0x268   : > { %v5455_v39 = vpop.eup %5454  ;;  %v1678_v43 = vadd.f32 %v4976_v40, %v4946_v4  ;;  %v1672_v44 = vpop.f32.mrb[9].mxu1 }
 0x269   : > { %v5457_v12 = vpop.eup %5456  ;;  %v6313_v13 = vmul.f32 %v5455_v39, %v1739_v7  ;;  %v1673_v47 = vadd.f32 %v1672_v44, %v1474_v5 }
 0x26a   : > { %v5459_v45 = vpop.eup %5458  ;;  %v6315_v46 = vmul.f32 %v5457_v12, %v1738_v25  ;;  %v1743_v50 = vadd.f32 %v6295_v22, %v1678_v43 }
 0x26b   : > { %v5461_v48 = vpop.eup %5460  ;;  %2261 = vst.msk [vmem:[#allocation3 + $0xa] sm:$0xff] %vm1870_vm14, %v6313_v13  ;;  %v1805_v49 = vadd.f32 1.0, %v5459_v45  ;;  %v1742_v53 = vadd.f32 %v6295_v22, %v1673_v47 }
 0x26c   : > { %2260 = vst.msk [vmem:[#allocation3 + $0x2] sm:$0xff] %vm1870_vm14, %v6315_v46  ;;  %v1804_v52 = vadd.f32 1.0, %v5461_v48  ;;  %5000 = vmatprep.mubr.msk.f32.mxu0 %vm1870_vm14, %v6315_v46  ;;  %v4524_v54 = vmul.f32 -1.442695, %v1743_v50 }
 0x26d   : > { %5462 = vrcp.f32 %v1805_v49  ;;  %5001 = vmatmul.mubr.msk.f32.vlgmr.msra.gmra.mrb[28].mxu0 %vm1870_vm14, %v6313_v13  ;;  %v4523_v55 = vmul.f32 -1.442695, %v1742_v53 }
 0x26e   : > { %5464 = vrcp.f32 %v1804_v52  ;;  %5279 = vmatpush3.bf16.msra.mxu0 %v5276_v30 }
 0x26f   : > { %5466 = vpow2.f32 %v4524_v54  ;;  %5281 = vmatprep.subr.bf16.mxu0 %v5280_v51 }
 0x270   : > { %5468 = vpow2.f32 %v4523_v55 }
 0x272   : > { %5283 = vmatpush3.bf16.msra.mxu0 %v5280_v51 }
 0x277   : > { %v5463_v56 = vpop.eup %5462  ;;  %v4979_v59 = vpop.f32.mrb[10].mxu1 }
 0x278   : > { %v5465_v57 = vpop.eup %5464  ;;  %v6327_v58 = vmul.f32 %v5463_v56, %v1741_v34  ;;  %v1688_v62 = vadd.f32 %v4979_v59, %v6280_v14  ;;  %v1682_v63 = vpop.f32.mrb[11].mxu1 }
 0x279   : > { %v5467_v60 = vpop.eup %5466  ;;  %v6329_v61 = vmul.f32 %v5465_v57, %v1740_v10  ;;  %v1683_v2 = vadd.f32 %v1682_v63, %v6282_v15 }
 0x27a   : > { %v5469_v0 = vpop.eup %5468  ;;  %2263 = vst.msk [vmem:[#allocation3 + $0x22] sm:$0xff] %vm1870_vm14, %v6327_v58  ;;  %v1807_v1 = vadd.f32 1.0, %v5467_v60  ;;  %v1745_v4 = vadd.f32 %v6295_v22, %v1688_v62 }
 0x27b   : > { %2262 = vst.msk [vmem:[#allocation3 + $0x1a] sm:$0xff] %vm1870_vm14, %v6329_v61  ;;  %v1806_v3 = vadd.f32 1.0, %v5469_v0  ;;  %5003 = vmatprep.mubr.msk.f32.mxu0 %vm1870_vm14, %v6329_v61  ;;  %v1744_v5 = vadd.f32 %v6295_v22, %v1683_v2 }
 0x27c   : > { %5470 = vrcp.f32 %v1807_v1  ;;  %5004 = vmatmul.mubr.msk.f32.gmra.mrb[30].mxu0 %vm1870_vm14, %v6327_v58  ;;  %v4526_v14 = vmul.f32 -1.442695, %v1745_v4 }
 0x27d   : > { %5472 = vrcp.f32 %v1806_v3  ;;  %v4525_v21 = vmul.f32 -1.442695, %v1744_v5 }
 0x27e   : > { %5474 = vpow2.f32 %v4526_v14 }
 0x27f   : > { %5476 = vpow2.f32 %v4525_v21 }
 0x286   : > { %v5471_v15 = vpop.eup %5470 }
 0x287   : > { %v5473_v23 = vpop.eup %5472  ;;  %v6343_v24 = vmul.f32 %v5471_v15, %v1743_v50  ;;  %v4982_v7 = vpop.f32.mrb[12].mxu1 }
 0x288   : > { %v6345_v6 = vmul.f32 %v5473_v23, %v1742_v53  ;;  %v5475_v25 = vpop.eup %5474  ;;  %v1698_v26 = vadd.f32 %v4982_v7, %v6284_v16  ;;  %v1692_v27 = vpop.f32.mrb[13].mxu1 }
 0x289   : > { %2265 = vst.msk [vmem:[#allocation3 + $0x3a] sm:$0xff] %vm1870_vm14, %v6343_v24  ;;  %v5477_v28 = vpop.eup %5476  ;;  %v1809_v29 = vadd.f32 1.0, %v5475_v25  ;;  %v1693_v30 = vadd.f32 %v1692_v27, %v6286_v17 }
 0x28a   : > { %2264 = vst.msk [vmem:[#allocation3 + $0x32] sm:$0xff] %vm1870_vm14, %v6345_v6  ;;  %5006 = vmatprep.mubr.msk.f32.mxu0 %vm1870_vm14, %v6345_v6  ;;  %v1808_v8 = vadd.f32 1.0, %v5477_v28  ;;  %v1747_v9 = vadd.f32 %v6295_v22, %v1698_v26 }
 0x28b   : > { %5007 = vmatmul.mubr.msk.f32.gmra.mrb[32].mxu0 %vm1870_vm14, %v6343_v24  ;;  %5478 = vrcp.f32 %v1809_v29  ;;  %v1746_v16 = vadd.f32 %v6295_v22, %v1693_v30 }
 0x28c   : > { %5480 = vrcp.f32 %v1808_v8  ;;  %v4528_v31 = vmul.f32 -1.442695, %v1747_v9  ;;  %v2276_v8 = vld [vmem:[#allocation3 + $0x1] sm:$0xff] }
 0x28d   : > { %v4527_v32 = vmul.f32 -1.442695, %v1746_v16 }
 0x28e   : > { %5482 = vpow2.f32 %v4528_v31  ;;  %v2277_v31 = vld [vmem:[#allocation3 + $0x9] sm:$0xff] }
 0x28f   : > { %5484 = vpow2.f32 %v4527_v32 }
 0x295   : > { %v5479_v33 = vpop.eup %5478 }
 0x296   : > { %v5481_v34 = vpop.eup %5480  ;;  %v6359_v17 = vmul.f32 %v5479_v33, %v1745_v4  ;;  %v2278_v33 = vld [vmem:[#allocation3 + $0x19] sm:$0xff] }
 0x297   : > { %v6361_v35 = vmul.f32 %v5481_v34, %v1744_v5  ;;  %v4985_v36 = vpop.f32.mrb[14].mxu1 }
 0x298   : > { %v5483_v10 = vpop.eup %5482  ;;  %2267 = vst.msk [vmem:[#allocation3 + $0x52] sm:$0xff] %vm1870_vm14, %v6359_v17  ;;  %v1708_v11 = vadd.f32 %v4985_v36, %v6288_v19  ;;  %v1702_v37 = vpop.f32.mrb[15].mxu1 }
 0x299   : > { %v5485_v38 = vpop.eup %5484  ;;  %2266 = vst.msk [vmem:[#allocation3 + $0x4a] sm:$0xff] %vm1870_vm14, %v6361_v35  ;;  %v1811_v39 = vadd.f32 1.0, %v5483_v10  ;;  %v1703_v40 = vadd.f32 %v1702_v37, %v6290_v20  ;;  %5009 = vmatprep.mubr.msk.f32.mxu0 %vm1870_vm14, %v6361_v35  ;;  %v2308_v10 = vld [vmem:[#allocation3 + $0x3] sm:$0xff]  ;;  %v2294_v37 = vmax.f32 %v2278_v33, %v6329_v61 }
 0x29a   : > { %v1810_v41 = vadd.f32 1.0, %v5485_v38  ;;  %v1749_v42 = vadd.f32 %v6295_v22, %v1708_v11  ;;  %5010 = vmatmul.mubr.msk.f32.gmra.mrb[34].mxu0 %vm1870_vm14, %v6359_v17  ;;  %v2293_v11 = vmax.f32 %v2277_v31, %v6313_v13  ;;  %v2279_v38 = vld [vmem:[#allocation3 + $0x21] sm:$0xff] }
 0x29b   : > { %5486 = vrcp.f32 %v1811_v39  ;;  %v1748_v19 = vadd.f32 %v6295_v22, %v1703_v40  ;;  %v2280_v39 = vld [vmem:[#allocation3 + $0x31] sm:$0xff]  ;;  %v2295_v13 = vmax.f32 %v2279_v38, %v6327_v58  ;;  %v2313_v58 = vld [vmem:[#allocation3 + $0x3b] sm:$0xff] }
 0x29c   : > { %5488 = vrcp.f32 %v1810_v41  ;;  %v4530_v12 = vmul.f32 -1.442695, %v1749_v42  ;;  %v2309_v40 = vld [vmem:[#allocation3 + $0xb] sm:$0xff]  ;;  %v2296_v61 = vmax.f32 %v2280_v39, %v6345_v6  ;;  %v2258_v33 = vld [vmem:[%s7117_s7] sm:$0xff] }
 0x29d   : > { %v4529_v43 = vmul.f32 -1.442695, %v1748_v19  ;;  %v2325_v41 = vmax.f32 %v2293_v11, %v2309_v40 }
 0x29e   : > { %5490 = vpow2.f32 %v4530_v12  ;;  %v2281_v12 = vld [vmem:[#allocation3 + $0x39] sm:$0xff] }
 0x29f   : > { %5492 = vpow2.f32 %v4529_v43 }
 0x2a0   : > { %v2282_v43 = vld [vmem:[#allocation3 + $0x49] sm:$0xff] }
 0x2a5   : > { %v5487_v44 = vpop.eup %5486 }
 0x2a6   : > { %v5489_v45 = vpop.eup %5488  ;;  %v6375_v20 = vmul.f32 %v5487_v44, %v1747_v9  ;;  %v2311_v44 = vld [vmem:[#allocation3 + $0x23] sm:$0xff] }
 0x2a7   : > { %v6377_v47 = vmul.f32 %v5489_v45, %v1746_v16  ;;  %v4988_v48 = vpop.f32.mrb[0].mxu1  ;;  %v2292_v16 = vmax.f32 %v2276_v8, %v6315_v46  ;;  %v2327_v45 = vmax.f32 %v2295_v13, %v2311_v44 }
 0x2a8   : > { %v5491_v49 = vpop.eup %5490  ;;  %2269 = vst.msk [vmem:[#allocation3 + $0x6a] sm:$0xff] %vm1870_vm14, %v6375_v20  ;;  %v1751_v50 = vadd.f32 %v4988_v48, %v6295_v22  ;;  %v1712_v51 = vpop.f32.mrb[1].mxu1  ;;  %v2312_v48 = vld [vmem:[#allocation3 + $0x33] sm:$0xff] }
 0x2a9   : > { %v5493_v52 = vpop.eup %5492  ;;  %2268 = vst.msk [vmem:[#allocation3 + $0x62] sm:$0xff] %vm1870_vm14, %v6377_v47  ;;  %v1813_v53 = vadd.f32 1.0, %v5491_v49  ;;  %v1750_v54 = vadd.f32 %v6295_v22, %v1712_v51  ;;  %5012 = vmatprep.mubr.msk.f32.mxu0 %vm1870_vm14, %v6377_v47  ;;  %v2324_v46 = vmax.f32 %v2292_v16, %v2308_v10  ;;  %v2297_v49 = vmax.f32 %v2281_v12, %v6343_v24  ;;  %v2315_v24 = vld [vmem:[#allocation3 + $0x53] sm:$0xff] }
 0x2aa   : > { %v1812_v55 = vadd.f32 1.0, %v5493_v52  ;;  %v4532_v56 = vmul.f32 -1.442695, %v1751_v50  ;;  %5013 = vmatmul.mubr.msk.f32.gmra.mrb[36].mxu0 %vm1870_vm14, %v6375_v20  ;;  %v2328_v51 = vmax.f32 %v2296_v61, %v2312_v48  ;;  %v2283_v52 = vld [vmem:[#allocation3 + $0x51] sm:$0xff] }
 0x2ab   : > { %5494 = vrcp.f32 %v1813_v53  ;;  %v4531_v57 = vmul.f32 -1.442695, %v1750_v54  ;;  %v2329_v6 = vmax.f32 %v2297_v49, %v2313_v58 }
 0x2ac   : > { %5496 = vrcp.f32 %v1812_v55  ;;  %v2299_v55 = vmax.f32 %v2283_v52, %v6359_v17 }
 0x2ad   : > { %5498 = vpow2.f32 %v4532_v56 }
 0x2ae   : > { %5500 = vpow2.f32 %v4531_v57 }
 0x2af   : > { %v2317_v17 = vld [vmem:[#allocation3 + $0x6b] sm:$0xff] }
 0x2b0   : > { %v2284_v53 = vld [vmem:[#allocation3 + $0x61] sm:$0xff] }
 0x2b1   : > { %v2300_v56 = vmax.f32 %v2284_v53, %v6377_v47 }
 0x2b5   : > { %v5495_v59 = vpop.eup %5494 }
 0x2b6   : > { %v5497_v60 = vpop.eup %5496  ;;  %v6389_v62 = vmul.f32 %v5495_v59, %v1749_v42  ;;  %v2310_v42 = vld [vmem:[#allocation3 + $0x1b] sm:$0xff]  ;;  %v2285_v59 = vld [vmem:[#allocation3 + $0x69] sm:$0xff] }
 0x2b7   : > { %v5499_v63 = vpop.eup %5498  ;;  %v6391_v0 = vmul.f32 %v5497_v60, %v1748_v19  ;;  %v4991_v1 = vpop.f32.mrb[2].mxu1  ;;  %v2326_v19 = vmax.f32 %v2294_v37, %v2310_v42 }
 0x2b8   : > { %v5501_v2 = vpop.eup %5500  ;;  %2271 = vst.msk [vmem:[#allocation3 + $0x82] sm:$0xff] %vm1870_vm14, %v6389_v62  ;;  %v1815_v3 = vadd.f32 1.0, %v5499_v63  ;;  %v1753_v4 = vadd.f32 %v4991_v1, %v6295_v22  ;;  %v1722_v5 = vpop.f32.mrb[3].mxu1  ;;  %v2316_v63 = vld [vmem:[#allocation3 + $0x63] sm:$0xff]  ;;  %v2301_v1 = vmax.f32 %v2285_v59, %v6375_v20 }
 0x2b9   : > { %2270 = vst.msk [vmem:[#allocation3 + $0x7a] sm:$0xff] %vm1870_vm14, %v6391_v0  ;;  %v1814_v14 = vadd.f32 1.0, %v5501_v2  ;;  %v1752_v21 = vadd.f32 %v6295_v22, %v1722_v5  ;;  %5015 = vmatprep.mubr.msk.f32.mxu0 %vm1870_vm14, %v6391_v0 }
 0x2ba   : > { %5502 = vrcp.f32 %v1815_v3  ;;  %v4534_v15 = vmul.f32 -1.442695, %v1753_v4  ;;  %5016 = vmatmul.mubr.msk.f32.gmra.mrb[38].mxu0 %vm1870_vm14, %v6389_v62  ;;  %v2332_v3 = vmax.f32 %v2300_v56, %v2316_v63  ;;  %v2333_v47 = vmax.f32 %v2301_v1, %v2317_v17 }
 0x2bb   : > { %5504 = vrcp.f32 %v1814_v14  ;;  %v4533_v23 = vmul.f32 -1.442695, %v1752_v21 }
 0x2bc   : > { %5506 = vpow2.f32 %v4534_v15 }
 0x2bd   : > { %5508 = vpow2.f32 %v4533_v23 }
 0x2bf   : > { %v2319_v20 = vld [vmem:[#allocation3 + $0x83] sm:$0xff] }
 0x2c0   : > { %v2286_v60 = vld [vmem:[#allocation3 + $0x79] sm:$0xff] }
 0x2c1   : > { %v2302_v2 = vmax.f32 %v2286_v60, %v6391_v0  ;;  %v2318_v14 = vld [vmem:[#allocation3 + $0x7b] sm:$0xff] }
 0x2c3   : > { %v2334_v23 = vmax.f32 %v2302_v2, %v2318_v14 }
 0x2c4   : > { %v5503_v7 = vpop.eup %5502 }
 0x2c5   : > { %v5505_v25 = vpop.eup %5504  ;;  %v6403_v26 = vmul.f32 %v5503_v7, %v1751_v50  ;;  %v2298_v50 = vmax.f32 %v2282_v43, %v6361_v35  ;;  %v2331_v35 = vmax.f32 %v2299_v55, %v2315_v24 }
 0x2c6   : > { %v5507_v27 = vpop.eup %5506  ;;  %v6405_v28 = vmul.f32 %v5505_v25, %v1750_v54  ;;  %v2314_v54 = vld [vmem:[#allocation3 + $0x4b] sm:$0xff] }
 0x2c7   : > { %v5509_v22 = vpop.eup %5508  ;;  %2273 = vst.msk [vmem:[#allocation3 + $0x9a] sm:$0xff] %vm1870_vm14, %v6403_v26  ;;  %v1817_v29 = vadd.f32 1.0, %v5507_v27  ;;  %v2330_v57 = vmax.f32 %v2298_v50, %v2314_v54 }
 0x2c8   : > { %2272 = vst.msk [vmem:[#allocation3 + $0x92] sm:$0xff] %vm1870_vm14, %v6405_v28  ;;  %v1816_v30 = vadd.f32 1.0, %v5509_v22  ;;  %5018 = vmatprep.mubr.msk.f32.mxu0 %vm1870_vm14, %v6405_v28 }
 0x2c9   : > { %5510 = vrcp.f32 %v1817_v29  ;;  %5019 = vmatmul.mubr.msk.f32.gmra.mrb[40].mxu0 %vm1870_vm14, %v6403_v26 }
 0x2ca   : > { %5512 = vrcp.f32 %v1816_v30 }
 0x2cf   : > { %v2288_v5 = vld [vmem:[#allocation3 + $0x91] sm:$0xff]  ;;  %v2289_v7 = vld [vmem:[#allocation3 + $0x99] sm:$0xff] }
 0x2d0   : > { %v2304_v15 = vmax.f32 %v2288_v5, %v6405_v28  ;;  %v2320_v27 = vld [vmem:[#allocation3 + $0x93] sm:$0xff]  ;;  %v2305_v22 = vmax.f32 %v2289_v7, %v6403_v26 }
 0x2d2   : > { %v2336_v30 = vmax.f32 %v2304_v15, %v2320_v27 }
 0x2d3   : > { %v5511_v9 = vpop.eup %5510 }
 0x2d4   : > { %v5513_v32 = vpop.eup %5512  ;;  %v6416_v34 = vmul.f32 %v5511_v9, %v1753_v4  ;;  %v2287_v4 = vld [vmem:[#allocation3 + $0x81] sm:$0xff] }
 0x2d5   : > { %v6418_v36 = vmul.f32 %v5513_v32, %v1752_v21  ;;  %v2303_v21 = vmax.f32 %v2287_v4, %v6389_v62  ;;  %v2321_v62 = vld [vmem:[#allocation3 + $0x9b] sm:$0xff] }
 0x2d6   : > { %2275 = vst.msk [vmem:[#allocation3 + $0xb2] sm:$0xff] %vm1870_vm14, %v6416_v34  ;;  %v2337_v28 = vmax.f32 %v2305_v22, %v2321_v62 }
 0x2d7   : > { %2274 = vst.msk [vmem:[#allocation3 + $0xaa] sm:$0xff] %vm1870_vm14, %v6418_v36  ;;  %5021 = vmatprep.mubr.msk.f32.mxu0 %vm1870_vm14, %v6418_v36  ;;  %v2335_v0 = vmax.f32 %v2303_v21, %v2319_v20 }
 0x2d8   : > { %5022 = vmatmul.mubr.msk.f32.gmra.mrb[42].mxu0 %vm1870_vm14, %v6416_v34 }
 0x2d9   : > { %5032 = vmatprep.mubr.msk.f32.mxu0 %vm1870_vm14, %v2324_v46 }
 0x2dc   : > { %5033 = vmatmul.mubr.msk.f32.vlgmr.msra.gmra.mrb[44].mxu0 %vm1870_vm14, %v2325_v41 }
 0x2dd   : > { %5035 = vmatprep.mubr.msk.f32.mxu0 %vm1870_vm14, %v2326_v19  ;;  %v2323_v32 = vld [vmem:[#allocation3 + $0xb3] sm:$0xff] }
 0x2de   : > { %v2290_v25 = vld [vmem:[#allocation3 + $0xa9] sm:$0xff]  ;;  %v2291_v8 = vld [vmem:[#allocation3 + $0xb1] sm:$0xff] }
 0x2df   : > { %v2306_v29 = vmax.f32 %v2290_v25, %v6418_v36  ;;  %v2322_v9 = vld [vmem:[#allocation3 + $0xab] sm:$0xff]  ;;  %v2307_v16 = vmax.f32 %v2291_v8, %v6416_v34 }
 0x2e0   : > { %5036 = vmatmul.mubr.msk.f32.gmra.mrb[46].mxu0 %vm1870_vm14, %v2327_v45  ;;  %v2259_v36 = vld [vmem:[%s7117_s7 + $0x8] sm:$0xf] }
 0x2e1   : > { %5038 = vmatprep.mubr.msk.f32.mxu0 %vm1870_vm14, %v2328_v51  ;;  %v2338_v31 = vmax.f32 %v2306_v29, %v2322_v9  ;;  %v2339_v26 = vmax.f32 %v2307_v16, %v2323_v32  ;;  %v5284_v10 = vpack.c.bf16 %v2259_v36, %v2258_v33 }
 0x2e3   : > { %5286 = vmatprep.subr.msk.bf16.mxu0 %vm6466_vm0, %v5284_v10 }
 0x2e4   : > { %5039 = vmatmul.mubr.msk.f32.gmra.mrb[48].mxu0 %vm1870_vm14, %v2329_v6 }
 0x2e5   : > { %5041 = vmatprep.mubr.msk.f32.mxu0 %vm1870_vm14, %v2330_v57  ;;  %5289 = vmatpush3.bf16.msk.msra.mxu0 %vm6466_vm0, %v5284_v10 }
 0x2e8   : > { %5042 = vmatmul.mubr.msk.f32.gmra.mrb[50].mxu0 %vm1870_vm14, %v2331_v35 }
 0x2e9   : > { %5044 = vmatprep.mubr.msk.f32.mxu0 %vm1870_vm14, %v2332_v3 }
 0x2ec   : > { %5045 = vmatmul.mubr.msk.f32.gmra.mrb[52].mxu0 %vm1870_vm14, %v2333_v47 }
 0x2ed   : > { %5047 = vmatprep.mubr.msk.f32.mxu0 %vm1870_vm14, %v2334_v23 }
 0x2f0   : > { %5048 = vmatmul.mubr.msk.f32.gmra.mrb[54].mxu0 %vm1870_vm14, %v2335_v0 }
 0x2f1   : > { %5050 = vmatprep.mubr.msk.f32.mxu0 %vm1870_vm14, %v2336_v30 }
 0x2f4   : > { %5051 = vmatmul.mubr.msk.f32.gmra.mrb[56].mxu0 %vm1870_vm14, %v2337_v28 }
 0x2f5   : > { %5053 = vmatprep.mubr.msk.f32.mxu0 %vm1870_vm14, %v2338_v31 }
 0x2f8   : > { %5054 = vmatmul.mubr.msk.f32.gmra.mrb[58].mxu0 %vm1870_vm14, %v2339_v26 }
 0x340   : > { %v5002_v11 = vpop.f32.mrb[28].mxu0 }
 0x341   : > { %2065 = vst.msk [vmem:[#allocation2 + $0xb] sm:$0xff] %vm908_vm4, %v5002_v11  ;;  %2107 = vrot.lane.b32.xlu1 %v5002_v11, %s5657_s27  ;;  %v1985_v37 = vpop.f32.mrb[29].mxu0 }
 0x342   : > { %2064 = vst.msk [vmem:[#allocation2 + $0x3] sm:$0xff] %vm908_vm4, %v1985_v37  ;;  %2105 = vrot.lane.b32.xlu0 %v1985_v37, %s5657_s27 }
 0x345   : > { %2171 = vrot.lane.b32.xlu1 %v5002_v11, %s5656_s26 }
 0x346   : > { %2169 = vrot.lane.b32.xlu0 %v1985_v37, %s5656_s26  ;;  %v2869_v37 = vld [vmem:[%s7120_s10] sm:$0xff] }
 0x34f   : > { %v5005_v46 = vpop.f32.mrb[30].mxu0 }
 0x350   : > { %2067 = vst.msk [vmem:[#allocation2 + $0x23] sm:$0xff] %vm908_vm4, %v5005_v46  ;;  %2111 = vrot.lane.b32.xlu1 %v5005_v46, %s5657_s27  ;;  %v1995_v38 = vpop.f32.mrb[31].mxu0 }
 0x351   : > { %2066 = vst.msk [vmem:[#allocation2 + $0x1b] sm:$0xff] %vm908_vm4, %v1995_v38  ;;  %2109 = vrot.lane.b32.xlu0 %v1995_v38, %s5657_s27 }
 0x354   : > { %2175 = vrot.lane.b32.xlu1 %v5005_v46, %s5656_s26  ;;  %v2870_v46 = vld [vmem:[%s7120_s10 + $0x8] sm:$0xff] }
 0x355   : > { %2173 = vrot.lane.b32.xlu0 %v1995_v38, %s5656_s26 }
 0x35e   : > { %v5008_v39 = vpop.f32.mrb[32].mxu0 }
 0x35f   : > { %2069 = vst.msk [vmem:[#allocation2 + $0x3b] sm:$0xff] %vm908_vm4, %v5008_v39  ;;  %2115 = vrot.lane.b32.xlu1 %v5008_v39, %s5657_s27  ;;  %v2005_v40 = vpop.f32.mrb[33].mxu0 }
 0x360   : > { %2068 = vst.msk [vmem:[#allocation2 + $0x33] sm:$0xff] %vm908_vm4, %v2005_v40  ;;  %2113 = vrot.lane.b32.xlu0 %v2005_v40, %s5657_s27 }
 0x363   : > { %2179 = vrot.lane.b32.xlu1 %v5008_v39, %s5656_s26  ;;  %v5290_v39 = vpack.c.bf16 %v2870_v46, %v2869_v37 }
 0x364   : > { %2177 = vrot.lane.b32.xlu0 %v2005_v40, %s5656_s26  ;;  %v2871_v40 = vld [vmem:[%s7120_s10 + $0x10] sm:$0xff] }
 0x365   : > { %5291 = vmatprep.subr.bf16.mxu1 %v5290_v39 }
 0x366   : > { %5293 = vmatpush3.bf16.msra.mxu1 %v5290_v39 }
 0x36d   : > { %v5011_v41 = vpop.f32.mrb[34].mxu0 }
 0x36e   : > { %2071 = vst.msk [vmem:[#allocation2 + $0x53] sm:$0xff] %vm908_vm4, %v5011_v41  ;;  %2119 = vrot.lane.b32.xlu1 %v5011_v41, %s5657_s27  ;;  %v2015_v42 = vpop.f32.mrb[35].mxu0 }
 0x36f   : > { %2070 = vst.msk [vmem:[#allocation2 + $0x4b] sm:$0xff] %vm908_vm4, %v2015_v42  ;;  %2117 = vrot.lane.b32.xlu0 %v2015_v42, %s5657_s27 }
 0x372   : > { %2183 = vrot.lane.b32.xlu1 %v5011_v41, %s5656_s26  ;;  %v2872_v41 = vld [vmem:[%s7120_s10 + $0x18] sm:$0xff] }
 0x373   : > { %2181 = vrot.lane.b32.xlu0 %v2015_v42, %s5656_s26  ;;  %v5294_v42 = vpack.c.bf16 %v2872_v41, %v2871_v40 }
 0x375   : > { %5295 = vmatprep.subr.bf16.mxu1 %v5294_v42 }
 0x376   : > { %5297 = vmatpush3.bf16.msra.mxu1 %v5294_v42 }
 0x37d   : > { %v5014_v13 = vpop.f32.mrb[36].mxu0 }
 0x37e   : > { %2073 = vst.msk [vmem:[#allocation2 + $0x6b] sm:$0xff] %vm908_vm4, %v5014_v13  ;;  %2123 = vrot.lane.b32.xlu1 %v5014_v13, %s5657_s27  ;;  %v2025_v61 = vpop.f32.mrb[37].mxu0 }
 0x37f   : > { %2072 = vst.msk [vmem:[#allocation2 + $0x63] sm:$0xff] %vm908_vm4, %v2025_v61  ;;  %2121 = vrot.lane.b32.xlu0 %v2025_v61, %s5657_s27 }
 0x382   : > { %2187 = vrot.lane.b32.xlu1 %v5014_v13, %s5656_s26  ;;  %v6617_v13 = vld [vmem:[%s7119_s9] ss:$0 sm:$0xff] }
 0x383   : > { %2185 = vrot.lane.b32.xlu0 %v2025_v61, %s5656_s26 }
 0x38d   : > { %v5017_v19 = vpop.f32.mrb[38].mxu0 }
 0x38e   : > { %2075 = vst.msk [vmem:[#allocation2 + $0x83] sm:$0xff] %vm908_vm4, %v5017_v19  ;;  %2127 = vrot.lane.b32.xlu1 %v5017_v19, %s5657_s27  ;;  %v2035_v12 = vpop.f32.mrb[39].mxu0 }
 0x38f   : > { %2074 = vst.msk [vmem:[#allocation2 + $0x7b] sm:$0xff] %vm908_vm4, %v2035_v12  ;;  %2125 = vrot.lane.b32.xlu0 %v2035_v12, %s5657_s27 }
 0x392   : > { %2191 = vrot.lane.b32.xlu1 %v5017_v19, %s5656_s26 }
 0x393   : > { %2189 = vrot.lane.b32.xlu0 %v2035_v12, %s5656_s26 }
 0x39c   : > { %v5020_v43 = vpop.f32.mrb[40].mxu0 }
 0x39d   : > { %2077 = vst.msk [vmem:[#allocation2 + $0x9b] sm:$0xff] %vm908_vm4, %v5020_v43  ;;  %2131 = vrot.lane.b32.xlu1 %v5020_v43, %s5657_s27  ;;  %v2045_v44 = vpop.f32.mrb[41].mxu0 }
 0x39e   : > { %2076 = vst.msk [vmem:[#allocation2 + $0x93] sm:$0xff] %vm908_vm4, %v2045_v44  ;;  %2129 = vrot.lane.b32.xlu0 %v2045_v44, %s5657_s27 }
 0x3a1   : > { %2195 = vrot.lane.b32.xlu1 %v5020_v43, %s5656_s26 }
 0x3a2   : > { %2193 = vrot.lane.b32.xlu0 %v2045_v44, %s5656_s26 }
 0x3ab   : > { %v5023_v45 = vpop.f32.mrb[42].mxu0 }
 0x3ac   : > { %2079 = vst.msk [vmem:[#allocation2 + $0xb3] sm:$0xff] %vm908_vm4, %v5023_v45  ;;  %2135 = vrot.lane.b32.xlu1 %v5023_v45, %s5657_s27  ;;  %v2055_v48 = vpop.f32.mrb[43].mxu0 }
 0x3ad   : > { %2078 = vst.msk [vmem:[#allocation2 + $0xab] sm:$0xff] %vm908_vm4, %v2055_v48  ;;  %2133 = vrot.lane.b32.xlu0 %v2055_v48, %s5657_s27 }
 0x3b0   : > { %2199 = vrot.lane.b32.xlu1 %v5023_v45, %s5656_s26 }
 0x3b1   : > { %2197 = vrot.lane.b32.xlu0 %v2055_v48, %s5656_s26  ;;  %v3340_v48 = vld [vmem:[%s7122_s12] sm:$0xff] }
 0x3b3   : > { %v2108_v49 = vpop.permute.xlu1 %2107 }
 0x3b4   : > { %2154 = vst.msk [vmem:[#allocation2 + $0xa] sm:$0xff] %vm998_vm6, %v2108_v49  ;;  %v2106_v50 = vpop.permute.xlu0 %2105  ;;  %v3341_v49 = vld [vmem:[%s7122_s12 + $0x8] sm:$0xff] }
 0x3b5   : > { %2234 = vst.msk [vmem:[#allocation2 + $0x11] sm:$0x1] %vm2233_vm1, %v5655_v18 }
 0x3b6   : > { %2153 = vst.msk [vmem:[#allocation2 + $0x2] sm:$0xff] %vm998_vm6, %v2106_v50  ;;  %v5298_v50 = vpack.c.bf16 %v3341_v49, %v3340_v48 }
 0x3b7   : > { %v2172_v51 = vpop.permute.xlu1 %2171 }
 0x3b8   : > { %2218 = vst.msk [vmem:[#allocation2 + $0x9] sm:$0xff] %vm1072_vm7, %v2172_v51  ;;  %v2170_v52 = vpop.permute.xlu0 %2169  ;;  %5299 = vmatprep.subr.bf16.mxu1 %v5298_v50 }
 0x3b9   : > { %2217 = vst.msk [vmem:[#allocation2 + $0x1] sm:$0xff] %vm1072_vm7, %v2170_v52 }
 0x3bf   : > { %v2243_v58 = vld [vmem:[#allocation2 + $0xa] sm:$0xff] }
 0x3c0   : > { %v2242_v53 = vld [vmem:[#allocation2 + $0x2] sm:$0xff] }
 0x3c1   : > { %5060 = vmatprep.mubr.msk.f32.mxu0 %vm2537_vm2, %v2242_v53  ;;  %3082 = vst.msk [vmem:[#allocation2 + $0x2] sm:$0x1] %vm2080_vm13, %v5655_v18 }
 0x3c2   : > { %v2112_v6 = vpop.permute.xlu1 %2111  ;;  %5061 = vmatmul.mubr.msk.f32.vlgmr.msra.gmra.mrb[44].mxu0 %vm2537_vm2, %v2243_v58 }
 0x3c3   : > { %2156 = vst.msk [vmem:[#allocation2 + $0x22] sm:$0xff] %vm998_vm6, %v2112_v6  ;;  %v2110_v54 = vpop.permute.xlu0 %2109 }
 0x3c4   : > { %2235 = vst.msk [vmem:[#allocation2 + $0x29] sm:$0x1] %vm2233_vm1, %v5655_v18 }
 0x3c5   : > { %2155 = vst.msk [vmem:[#allocation2 + $0x1a] sm:$0xff] %vm998_vm6, %v2110_v54 }
 0x3c6   : > { %v2176_v55 = vpop.permute.xlu1 %2175 }
 0x3c7   : > { %2220 = vst.msk [vmem:[#allocation2 + $0x21] sm:$0xff] %vm1072_vm7, %v2176_v55  ;;  %v2174_v56 = vpop.permute.xlu0 %2173 }
 0x3c8   : > { %2219 = vst.msk [vmem:[#allocation2 + $0x19] sm:$0xff] %vm1072_vm7, %v2174_v56 }
 0x3ce   : > { %v2245_v59 = vld [vmem:[#allocation2 + $0x22] sm:$0xff] }
 0x3cf   : > { %v2244_v57 = vld [vmem:[#allocation2 + $0x1a] sm:$0xff] }
 0x3d0   : > { %5063 = vmatprep.mubr.msk.f32.mxu0 %vm2537_vm2, %v2244_v57  ;;  %3083 = vst.msk [vmem:[#allocation2 + $0x1a] sm:$0x1] %vm2080_vm13, %v5655_v18 }
 0x3d1   : > { %5064 = vmatmul.mubr.msk.f32.gmra.mrb[46].mxu0 %vm2537_vm2, %v2245_v59  ;;  %v2116_v60 = vpop.permute.xlu1 %2115 }
 0x3d2   : > { %2158 = vst.msk [vmem:[#allocation2 + $0x3a] sm:$0xff] %vm998_vm6, %v2116_v60  ;;  %v2114_v24 = vpop.permute.xlu0 %2113 }
 0x3d3   : > { %2236 = vst.msk [vmem:[#allocation2 + $0x41] sm:$0x1] %vm2233_vm1, %v5655_v18 }
 0x3d4   : > { %2157 = vst.msk [vmem:[#allocation2 + $0x32] sm:$0xff] %vm998_vm6, %v2114_v24  ;;  %v3342_v24 = vld [vmem:[%s7122_s12 + $0x10] sm:$0xff] }
 0x3d5   : > { %v2180_v35 = vpop.permute.xlu1 %2179 }
 0x3d6   : > { %2222 = vst.msk [vmem:[#allocation2 + $0x39] sm:$0xff] %vm1072_vm7, %v2180_v35  ;;  %v2178_v63 = vpop.permute.xlu0 %2177  ;;  %v3343_v35 = vld [vmem:[%s7122_s12 + $0x18] sm:$0xff] }
 0x3d7   : > { %2221 = vst.msk [vmem:[#allocation2 + $0x31] sm:$0xff] %vm1072_vm7, %v2178_v63 }
 0x3dd   : > { %v2247_v2 = vld [vmem:[#allocation2 + $0x3a] sm:$0xff] }
 0x3de   : > { %v2246_v1 = vld [vmem:[#allocation2 + $0x32] sm:$0xff] }
 0x3df   : > { %5066 = vmatprep.mubr.msk.f32.mxu0 %vm2537_vm2, %v2246_v1  ;;  %3084 = vst.msk [vmem:[#allocation2 + $0x32] sm:$0x1] %vm2080_vm13, %v5655_v18 }
 0x3e0   : > { %5067 = vmatmul.mubr.msk.f32.gmra.mrb[48].mxu0 %vm2537_vm2, %v2247_v2  ;;  %v2120_v3 = vpop.permute.xlu1 %2119 }
 0x3e1   : > { %2160 = vst.msk [vmem:[#allocation2 + $0x52] sm:$0xff] %vm998_vm6, %v2120_v3  ;;  %v2118_v4 = vpop.permute.xlu0 %2117 }
 0x3e2   : > { %2237 = vst.msk [vmem:[#allocation2 + $0x59] sm:$0x1] %vm2233_vm1, %v5655_v18 }
 0x3e3   : > { %2159 = vst.msk [vmem:[#allocation2 + $0x4a] sm:$0xff] %vm998_vm6, %v2118_v4 }
 0x3e4   : > { %v2184_v5 = vpop.permute.xlu1 %2183 }
 0x3e5   : > { %2224 = vst.msk [vmem:[#allocation2 + $0x51] sm:$0xff] %vm1072_vm7, %v2184_v5  ;;  %v2182_v17 = vpop.permute.xlu0 %2181 }
 0x3e6   : > { %2223 = vst.msk [vmem:[#allocation2 + $0x49] sm:$0xff] %vm1072_vm7, %v2182_v17 }
 0x3ec   : > { %v2249_v14 = vld [vmem:[#allocation2 + $0x52] sm:$0xff] }
 0x3ed   : > { %v2248_v47 = vld [vmem:[#allocation2 + $0x4a] sm:$0xff] }
 0x3ee   : > { %5069 = vmatprep.mubr.msk.f32.mxu0 %vm2537_vm2, %v2248_v47  ;;  %3085 = vst.msk [vmem:[#allocation2 + $0x4a] sm:$0x1] %vm2080_vm13, %v5655_v18 }
 0x3ef   : > { %5070 = vmatmul.mubr.msk.f32.gmra.mrb[50].mxu0 %vm2537_vm2, %v2249_v14 }
 0x3f0   : > { %v2124_v21 = vpop.permute.xlu1 %2123 }
 0x3f1   : > { %2162 = vst.msk [vmem:[#allocation2 + $0x6a] sm:$0xff] %vm998_vm6, %v2124_v21  ;;  %v2122_v15 = vpop.permute.xlu0 %2121  ;;  %v5302_v21 = vpack.c.bf16 %v3343_v35, %v3342_v24 }
 0x3f2   : > { %2238 = vst.msk [vmem:[#allocation2 + $0x71] sm:$0x1] %vm2233_vm1, %v5655_v18 }
 0x3f3   : > { %2161 = vst.msk [vmem:[#allocation2 + $0x62] sm:$0xff] %vm998_vm6, %v2122_v15 }
 0x3f4   : > { %v2188_v23 = vpop.permute.xlu1 %2187 }
 0x3f5   : > { %2226 = vst.msk [vmem:[#allocation2 + $0x69] sm:$0xff] %vm1072_vm7, %v2188_v23  ;;  %v2186_v7 = vpop.permute.xlu0 %2185 }
 0x3f6   : > { %2225 = vst.msk [vmem:[#allocation2 + $0x61] sm:$0xff] %vm1072_vm7, %v2186_v7 }
 0x3fc   : > { %v2251_v20 = vld [vmem:[#allocation2 + $0x6a] sm:$0xff] }
 0x3fd   : > { %v2250_v25 = vld [vmem:[#allocation2 + $0x62] sm:$0xff] }
 0x3fe   : > { %5072 = vmatprep.mubr.msk.f32.mxu0 %vm2537_vm2, %v2250_v25  ;;  %3086 = vst.msk [vmem:[#allocation2 + $0x62] sm:$0x1] %vm2080_vm13, %v5655_v18 }
 0x3ff   : > { %5073 = vmatmul.mubr.msk.f32.gmra.mrb[52].mxu0 %vm2537_vm2, %v2251_v20 }
 0x400   : > { %v2128_v0 = vpop.permute.xlu1 %2127 }
 0x401   : > { %2164 = vst.msk [vmem:[#allocation2 + $0x82] sm:$0xff] %vm998_vm6, %v2128_v0  ;;  %v2126_v27 = vpop.permute.xlu0 %2125 }
 0x402   : > { %2239 = vst.msk [vmem:[#allocation2 + $0x89] sm:$0x1] %vm2233_vm1, %v5655_v18 }
 0x403   : > { %2163 = vst.msk [vmem:[#allocation2 + $0x7a] sm:$0xff] %vm998_vm6, %v2126_v27 }
 0x404   : > { %v2192_v22 = vpop.permute.xlu1 %2191 }
 0x405   : > { %2228 = vst.msk [vmem:[#allocation2 + $0x81] sm:$0xff] %vm1072_vm7, %v2192_v22  ;;  %v2190_v29 = vpop.permute.xlu0 %2189 }
 0x406   : > { %2227 = vst.msk [vmem:[#allocation2 + $0x79] sm:$0xff] %vm1072_vm7, %v2190_v29 }
 0x40c   : > { %v2253_v8 = vld [vmem:[#allocation2 + $0x82] sm:$0xff] }
 0x40d   : > { %v2252_v30 = vld [vmem:[#allocation2 + $0x7a] sm:$0xff] }
 0x40e   : > { %5075 = vmatprep.mubr.msk.f32.mxu0 %vm2537_vm2, %v2252_v30  ;;  %3087 = vst.msk [vmem:[#allocation2 + $0x7a] sm:$0x1] %vm2080_vm13, %v5655_v18 }
 0x40f   : > { %v2132_v62 = vpop.permute.xlu1 %2131  ;;  %5076 = vmatmul.mubr.msk.f32.gmra.mrb[54].mxu0 %vm2537_vm2, %v2253_v8 }
 0x410   : > { %2166 = vst.msk [vmem:[#allocation2 + $0x9a] sm:$0xff] %vm998_vm6, %v2132_v62  ;;  %v2130_v28 = vpop.permute.xlu0 %2129 }
 0x411   : > { %2240 = vst.msk [vmem:[#allocation2 + $0xa1] sm:$0x1] %vm2233_vm1, %v5655_v18 }
 0x412   : > { %2165 = vst.msk [vmem:[#allocation2 + $0x92] sm:$0xff] %vm998_vm6, %v2130_v28 }
 0x413   : > { %v2196_v9 = vpop.permute.xlu1 %2195 }
 0x414   : > { %2230 = vst.msk [vmem:[#allocation2 + $0x99] sm:$0xff] %vm1072_vm7, %v2196_v9  ;;  %v2194_v16 = vpop.permute.xlu0 %2193 }
 0x415   : > { %2229 = vst.msk [vmem:[#allocation2 + $0x91] sm:$0xff] %vm1072_vm7, %v2194_v16 }
 0x41b   : > { %v2255_v32 = vld [vmem:[#allocation2 + $0x9a] sm:$0xff] }
 0x41c   : > { %v2254_v31 = vld [vmem:[#allocation2 + $0x92] sm:$0xff] }
 0x41d   : > { %5078 = vmatprep.mubr.msk.f32.mxu0 %vm2537_vm2, %v2254_v31  ;;  %3088 = vst.msk [vmem:[#allocation2 + $0x92] sm:$0x1] %vm2080_vm13, %v5655_v18 }
 0x41e   : > { %5079 = vmatmul.mubr.msk.f32.gmra.mrb[56].mxu0 %vm2537_vm2, %v2255_v32  ;;  %v2136_v26 = vpop.permute.xlu1 %2135 }
 0x41f   : > { %2168 = vst.msk [vmem:[#allocation2 + $0xb2] sm:$0xff] %vm998_vm6, %v2136_v26  ;;  %v2134_v33 = vpop.permute.xlu0 %2133 }
 0x420   : > { %2241 = vst.msk [vmem:[#allocation2 + $0xb9] sm:$0x1] %vm2233_vm1, %v5655_v18 }
 0x421   : > { %2167 = vst.msk [vmem:[#allocation2 + $0xaa] sm:$0xff] %vm998_vm6, %v2134_v33 }
 0x422   : > { %v2200_v36 = vpop.permute.xlu1 %2199 }
 0x423   : > { %2232 = vst.msk [vmem:[#allocation2 + $0xb1] sm:$0xff] %vm1072_vm7, %v2200_v36  ;;  %v2198_v10 = vpop.permute.xlu0 %2197 }
 0x424   : > { %2231 = vst.msk [vmem:[#allocation2 + $0xa9] sm:$0xff] %vm1072_vm7, %v2198_v10 }
 0x42a   : > { %v2257_v38 = vld [vmem:[#allocation2 + $0xb2] sm:$0xff] }
 0x42b   : > { %v2256_v11 = vld [vmem:[#allocation2 + $0xaa] sm:$0xff] }
 0x42c   : > { %5081 = vmatprep.mubr.msk.f32.mxu0 %vm2537_vm2, %v2256_v11  ;;  %3089 = vst.msk [vmem:[#allocation2 + $0xaa] sm:$0x1] %vm2080_vm13, %v5655_v18 }
 0x42d   : > { %5082 = vmatmul.mubr.msk.f32.gmra.mrb[58].mxu0 %vm2537_vm2, %v2257_v38 }
 0x42e   : > { %5240 = vmatprep.mubr.msk.f32.mxu0 %vm5662_vm3, %v5655_v18 }
 0x495   : > { %v5062_v61 = vpop.f32.mrb[44].mxu0 }
 0x496   : > { %v2742_v19 = vadd.f32 %v5062_v61, %v6617_v13  ;;  %v2655_v12 = vpop.f32.mrb[45].mxu0 }
 0x497   : > { %v2741_v43 = vadd.f32 %v6617_v13, %v2655_v12 }
 0x498   : > { %v4586_v44 = vmul.f32 -1.442695, %v2742_v19 }
 0x499   : > { %v4585_v45 = vmul.f32 -1.442695, %v2741_v43 }
 0x49a   : > { %5514 = vpow2.f32 %v4586_v44 }
 0x49b   : > { %5516 = vpow2.f32 %v4585_v45 }
 0x4a4   : > { %v5515_v51 = vpop.eup %5514  ;;  %v5065_v52 = vpop.f32.mrb[46].mxu0 }
 0x4a5   : > { %v5517_v53 = vpop.eup %5516  ;;  %v2806_v58 = vadd.f32 1.0, %v5515_v51  ;;  %v2744_v6 = vadd.f32 %v5065_v52, %v6617_v13  ;;  %v2665_v54 = vpop.f32.mrb[47].mxu0 }
 0x4a6   : > { %v2805_v55 = vadd.f32 1.0, %v5517_v53  ;;  %v2743_v56 = vadd.f32 %v6617_v13, %v2665_v54 }
 0x4a7   : > { %5518 = vrcp.f32 %v2806_v58  ;;  %v4588_v57 = vmul.f32 -1.442695, %v2744_v6 }
 0x4a8   : > { %5520 = vrcp.f32 %v2805_v55  ;;  %v4587_v59 = vmul.f32 -1.442695, %v2743_v56 }
 0x4a9   : > { %5522 = vpow2.f32 %v4588_v57 }
 0x4aa   : > { %5524 = vpow2.f32 %v4587_v59 }
 0x4b1   : > { %v5519_v60 = vpop.eup %5518 }
 0x4b2   : > { %v5521_v63 = vpop.eup %5520  ;;  %v6635_v1 = vmul.f32 %v5519_v60, %v2742_v19 }
 0x4b3   : > { %v5523_v2 = vpop.eup %5522  ;;  %v6637_v3 = vmul.f32 %v5521_v63, %v2741_v43  ;;  %v5068_v4 = vpop.f32.mrb[48].mxu0 }
 0x4b4   : > { %v5525_v5 = vpop.eup %5524  ;;  %3261 = vst.msk [vmem:[#allocation3 + $0xa] sm:$0xff] %vm1870_vm14, %v6635_v1  ;;  %v2808_v17 = vadd.f32 1.0, %v5523_v2  ;;  %v2746_v47 = vadd.f32 %v5068_v4, %v6617_v13  ;;  %v2675_v14 = vpop.f32.mrb[49].mxu0 }
 0x4b5   : > { %3260 = vst.msk [vmem:[#allocation3 + $0x2] sm:$0xff] %vm1870_vm14, %v6637_v3  ;;  %v2807_v15 = vadd.f32 1.0, %v5525_v5  ;;  %v2745_v23 = vadd.f32 %v6617_v13, %v2675_v14  ;;  %5092 = vmatprep.mubr.msk.f32.mxu1 %vm1870_vm14, %v6637_v3 }
 0x4b6   : > { %5526 = vrcp.f32 %v2808_v17  ;;  %v4590_v7 = vmul.f32 -1.442695, %v2746_v47  ;;  %5093 = vmatmul.mubr.msk.f32.vlgmr.msra.gmra.mrb[16].mxu1 %vm1870_vm14, %v6635_v1 }
 0x4b7   : > { %5528 = vrcp.f32 %v2807_v15  ;;  %v4589_v25 = vmul.f32 -1.442695, %v2745_v23  ;;  %5301 = vmatpush3.bf16.msra.mxu1 %v5298_v50 }
 0x4b8   : > { %5530 = vpow2.f32 %v4590_v7  ;;  %5303 = vmatprep.subr.bf16.mxu1 %v5302_v21 }
 0x4b9   : > { %5532 = vpow2.f32 %v4589_v25 }
 0x4bb   : > { %5305 = vmatpush3.bf16.msra.mxu1 %v5302_v21 }
 0x4c0   : > { %v5527_v20 = vpop.eup %5526 }
 0x4c1   : > { %v5529_v0 = vpop.eup %5528  ;;  %v6649_v27 = vmul.f32 %v5527_v20, %v2744_v6 }
 0x4c2   : > { %v5531_v22 = vpop.eup %5530  ;;  %v6651_v29 = vmul.f32 %v5529_v0, %v2743_v56  ;;  %v5071_v62 = vpop.f32.mrb[50].mxu0 }
 0x4c3   : > { %v5533_v30 = vpop.eup %5532  ;;  %3263 = vst.msk [vmem:[#allocation3 + $0x22] sm:$0xff] %vm1870_vm14, %v6649_v27  ;;  %v2810_v8 = vadd.f32 1.0, %v5531_v22  ;;  %v2748_v9 = vadd.f32 %v5071_v62, %v6617_v13  ;;  %v2685_v16 = vpop.f32.mrb[51].mxu0 }
 0x4c4   : > { %3262 = vst.msk [vmem:[#allocation3 + $0x1a] sm:$0xff] %vm1870_vm14, %v6651_v29  ;;  %v2809_v28 = vadd.f32 1.0, %v5533_v30  ;;  %5095 = vmatprep.mubr.msk.f32.mxu1 %vm1870_vm14, %v6651_v29  ;;  %v2747_v31 = vadd.f32 %v6617_v13, %v2685_v16 }
 0x4c5   : > { %5534 = vrcp.f32 %v2810_v8  ;;  %5096 = vmatmul.mubr.msk.f32.gmra.mrb[18].mxu1 %vm1870_vm14, %v6649_v27  ;;  %v4592_v32 = vmul.f32 -1.442695, %v2748_v9 }
 0x4c6   : > { %5536 = vrcp.f32 %v2809_v28  ;;  %v4591_v26 = vmul.f32 -1.442695, %v2747_v31 }
 0x4c7   : > { %5538 = vpow2.f32 %v4592_v32 }
 0x4c8   : > { %5540 = vpow2.f32 %v4591_v26 }
 0x4cf   : > { %v5535_v33 = vpop.eup %5534 }
 0x4d0   : > { %v5537_v36 = vpop.eup %5536  ;;  %v6663_v10 = vmul.f32 %v5535_v33, %v2746_v47 }
 0x4d1   : > { %v6665_v11 = vmul.f32 %v5537_v36, %v2745_v23  ;;  %v5539_v37 = vpop.eup %5538 }
 0x4d2   : > { %3265 = vst.msk [vmem:[#allocation3 + $0x3a] sm:$0xff] %vm1870_vm14, %v6663_v10  ;;  %v5541_v46 = vpop.eup %5540  ;;  %v2812_v38 = vadd.f32 1.0, %v5539_v37  ;;  %v5074_v39 = vpop.f32.mrb[52].mxu0 }
 0x4d3   : > { %3264 = vst.msk [vmem:[#allocation3 + $0x32] sm:$0xff] %vm1870_vm14, %v6665_v11  ;;  %5098 = vmatprep.mubr.msk.f32.mxu1 %vm1870_vm14, %v6665_v11  ;;  %v2811_v40 = vadd.f32 1.0, %v5541_v46  ;;  %v2750_v41 = vadd.f32 %v5074_v39, %v6617_v13  ;;  %v2695_v42 = vpop.f32.mrb[53].mxu0 }
 0x4d4   : > { %5099 = vmatmul.mubr.msk.f32.gmra.mrb[20].mxu1 %vm1870_vm14, %v6663_v10  ;;  %5542 = vrcp.f32 %v2812_v38  ;;  %v2749_v61 = vadd.f32 %v6617_v13, %v2695_v42 }
 0x4d5   : > { %5544 = vrcp.f32 %v2811_v40  ;;  %v4594_v19 = vmul.f32 -1.442695, %v2750_v41  ;;  %v3276_v40 = vld [vmem:[#allocation3 + $0x1] sm:$0xff] }
 0x4d6   : > { %v4593_v12 = vmul.f32 -1.442695, %v2749_v61  ;;  %v3292_v42 = vmax.f32 %v3276_v40, %v6637_v3 }
 0x4d7   : > { %5546 = vpow2.f32 %v4594_v19 }
 0x4d8   : > { %5548 = vpow2.f32 %v4593_v12 }
 0x4de   : > { %v5543_v43 = vpop.eup %5542 }
 0x4df   : > { %v5545_v44 = vpop.eup %5544  ;;  %v6677_v45 = vmul.f32 %v5543_v43, %v2748_v9  ;;  %v3278_v43 = vld [vmem:[#allocation3 + $0x19] sm:$0xff] }
 0x4e0   : > { %v6679_v48 = vmul.f32 %v5545_v44, %v2747_v31 }
 0x4e1   : > { %v5547_v49 = vpop.eup %5546  ;;  %3267 = vst.msk [vmem:[#allocation3 + $0x52] sm:$0xff] %vm1870_vm14, %v6677_v45 }
 0x4e2   : > { %v5549_v50 = vpop.eup %5548  ;;  %3266 = vst.msk [vmem:[#allocation3 + $0x4a] sm:$0xff] %vm1870_vm14, %v6679_v48  ;;  %v2814_v51 = vadd.f32 1.0, %v5547_v49  ;;  %v5077_v52 = vpop.f32.mrb[54].mxu0  ;;  %5101 = vmatprep.mubr.msk.f32.mxu1 %vm1870_vm14, %v6679_v48  ;;  %v3308_v49 = vld [vmem:[#allocation3 + $0x3] sm:$0xff] }
 0x4e3   : > { %v2813_v53 = vadd.f32 1.0, %v5549_v50  ;;  %v2752_v58 = vadd.f32 %v5077_v52, %v6617_v13  ;;  %v2705_v6 = vpop.f32.mrb[55].mxu0  ;;  %5102 = vmatmul.mubr.msk.f32.gmra.mrb[22].mxu1 %vm1870_vm14, %v6677_v45  ;;  %v3294_v52 = vmax.f32 %v3278_v43, %v6651_v29 }
 0x4e4   : > { %5550 = vrcp.f32 %v2814_v51  ;;  %v2751_v54 = vadd.f32 %v6617_v13, %v2705_v6  ;;  %v3324_v51 = vmax.f32 %v3292_v42, %v3308_v49  ;;  %v3309_v6 = vld [vmem:[#allocation3 + $0xb] sm:$0xff] }
 0x4e5   : > { %5552 = vrcp.f32 %v2813_v53  ;;  %v4596_v55 = vmul.f32 -1.442695, %v2752_v58  ;;  %v3279_v53 = vld [vmem:[#allocation3 + $0x21] sm:$0xff] }
 0x4e6   : > { %v4595_v56 = vmul.f32 -1.442695, %v2751_v54 }
 0x4e7   : > { %5554 = vpow2.f32 %v4596_v55  ;;  %v3310_v55 = vld [vmem:[#allocation3 + $0x1b] sm:$0xff] }
 0x4e8   : > { %5556 = vpow2.f32 %v4595_v56  ;;  %v3295_v56 = vmax.f32 %v3279_v53, %v6649_v27 }
 0x4ee   : > { %v5551_v57 = vpop.eup %5550 }
 0x4ef   : > { %v5553_v59 = vpop.eup %5552  ;;  %v6691_v60 = vmul.f32 %v5551_v57, %v2750_v41  ;;  %v3326_v57 = vmax.f32 %v3294_v52, %v3310_v55 }
 0x4f0   : > { %v6693_v24 = vmul.f32 %v5553_v59, %v2749_v61  ;;  %v3277_v61 = vld [vmem:[#allocation3 + $0x9] sm:$0xff] }
 0x4f1   : > { %v5555_v35 = vpop.eup %5554  ;;  %3269 = vst.msk [vmem:[#allocation3 + $0x6a] sm:$0xff] %vm1870_vm14, %v6691_v60  ;;  %v5080_v63 = vpop.f32.mrb[56].mxu0  ;;  %v3293_v50 = vmax.f32 %v3277_v61, %v6635_v1 }
 0x4f2   : > { %v5557_v2 = vpop.eup %5556  ;;  %3268 = vst.msk [vmem:[#allocation3 + $0x62] sm:$0xff] %vm1870_vm14, %v6693_v24  ;;  %v2816_v4 = vadd.f32 1.0, %v5555_v35  ;;  %v2754_v5 = vadd.f32 %v5080_v63, %v6617_v13  ;;  %v2715_v17 = vpop.f32.mrb[57].mxu0  ;;  %5104 = vmatprep.mubr.msk.f32.mxu1 %vm1870_vm14, %v6693_v24  ;;  %v3281_v35 = vld [vmem:[#allocation3 + $0x39] sm:$0xff]  ;;  %v3282_v63 = vld [vmem:[#allocation3 + $0x49] sm:$0xff] }
 0x4f3   : > { %v2815_v47 = vadd.f32 1.0, %v5557_v2  ;;  %v2753_v14 = vadd.f32 %v6617_v13, %v2715_v17  ;;  %5105 = vmatmul.mubr.msk.f32.gmra.mrb[24].mxu1 %vm1870_vm14, %v6691_v60  ;;  %v3311_v2 = vld [vmem:[#allocation3 + $0x23] sm:$0xff]  ;;  %v3297_v17 = vmax.f32 %v3281_v35, %v6663_v10 }
 0x4f4   : > { %5558 = vrcp.f32 %v2816_v4  ;;  %v4598_v21 = vmul.f32 -1.442695, %v2754_v5  ;;  %v3327_v4 = vmax.f32 %v3295_v56, %v3311_v2  ;;  %v3258_v2 = vld [vmem:[%s7121_s11] sm:$0xff] }
 0x4f5   : > { %5560 = vrcp.f32 %v2815_v47  ;;  %v4597_v15 = vmul.f32 -1.442695, %v2753_v14 }
 0x4f6   : > { %5562 = vpow2.f32 %v4598_v21  ;;  %v3283_v21 = vld [vmem:[#allocation3 + $0x51] sm:$0xff] }
 0x4f7   : > { %5564 = vpow2.f32 %v4597_v15 }
 0x4f9   : > { %v3284_v15 = vld [vmem:[#allocation3 + $0x61] sm:$0xff] }
 0x4fe   : > { %v5559_v23 = vpop.eup %5558 }
 0x4ff   : > { %v5561_v7 = vpop.eup %5560  ;;  %v6705_v25 = vmul.f32 %v5559_v23, %v2752_v58  ;;  %v3280_v58 = vld [vmem:[#allocation3 + $0x31] sm:$0xff]  ;;  %v3313_v23 = vld [vmem:[#allocation3 + $0x3b] sm:$0xff] }
 0x500   : > { %v5563_v20 = vpop.eup %5562  ;;  %v6707_v0 = vmul.f32 %v5561_v7, %v2751_v54  ;;  %v5083_v22 = vpop.f32.mrb[58].mxu0  ;;  %v3325_v54 = vmax.f32 %v3293_v50, %v3309_v6  ;;  %v3296_v59 = vmax.f32 %v3280_v58, %v6665_v11  ;;  %v3329_v7 = vmax.f32 %v3297_v17, %v3313_v23 }
 0x501   : > { %v5565_v30 = vpop.eup %5564  ;;  %3271 = vst.msk [vmem:[#allocation3 + $0x82] sm:$0xff] %vm1870_vm14, %v6705_v25  ;;  %v2818_v8 = vadd.f32 1.0, %v5563_v20  ;;  %v2756_v62 = vadd.f32 %v5083_v22, %v6617_v13  ;;  %v2725_v28 = vpop.f32.mrb[59].mxu0  ;;  %v3314_v20 = vld [vmem:[#allocation3 + $0x4b] sm:$0xff]  ;;  %v3299_v22 = vmax.f32 %v3283_v21, %v6677_v45 }
 0x502   : > { %3270 = vst.msk [vmem:[#allocation3 + $0x7a] sm:$0xff] %vm1870_vm14, %v6707_v0  ;;  %v2817_v9 = vadd.f32 1.0, %v5565_v30  ;;  %v2755_v16 = vadd.f32 %v6617_v13, %v2725_v28  ;;  %5107 = vmatprep.mubr.msk.f32.mxu1 %vm1870_vm14, %v6707_v0 }
 0x503   : > { %5566 = vrcp.f32 %v2818_v8  ;;  %v4600_v31 = vmul.f32 -1.442695, %v2756_v62  ;;  %5108 = vmatmul.mubr.msk.f32.gmra.mrb[26].mxu1 %vm1870_vm14, %v6705_v25  ;;  %v3300_v8 = vmax.f32 %v3284_v15, %v6693_v24 }
 0x504   : > { %5568 = vrcp.f32 %v2817_v9  ;;  %v4599_v32 = vmul.f32 -1.442695, %v2755_v16  ;;  %v3315_v9 = vld [vmem:[#allocation3 + $0x53] sm:$0xff] }
 0x505   : > { %5570 = vpow2.f32 %v4600_v31  ;;  %v3316_v31 = vld [vmem:[#allocation3 + $0x63] sm:$0xff] }
 0x506   : > { %5572 = vpow2.f32 %v4599_v32 }
 0x508   : > { %v3319_v49 = vld [vmem:[#allocation3 + $0x83] sm:$0xff] }
 0x509   : > { %v3286_v28 = vld [vmem:[#allocation3 + $0x79] sm:$0xff] }
 0x50a   : > { %v3318_v40 = vld [vmem:[#allocation3 + $0x7b] sm:$0xff] }
 0x50d   : > { %v5567_v26 = vpop.eup %5566 }
 0x50e   : > { %v5569_v33 = vpop.eup %5568  ;;  %v6719_v36 = vmul.f32 %v5567_v26, %v2754_v5  ;;  %v3312_v5 = vld [vmem:[#allocation3 + $0x33] sm:$0xff]  ;;  %v3332_v26 = vmax.f32 %v3300_v8, %v3316_v31 }
 0x50f   : > { %v5571_v37 = vpop.eup %5570  ;;  %v6721_v46 = vmul.f32 %v5569_v33, %v2753_v14  ;;  %v3328_v47 = vmax.f32 %v3296_v59, %v3312_v5  ;;  %v3298_v14 = vmax.f32 %v3282_v63, %v6679_v48  ;;  %v3302_v33 = vmax.f32 %v3286_v28, %v6707_v0  ;;  %v3757_v28 = vld [vmem:[%s7124_s14 + $0x8] sm:$0xff] }
 0x510   : > { %v5573_v13 = vpop.eup %5572  ;;  %3273 = vst.msk [vmem:[#allocation3 + $0x9a] sm:$0xff] %vm1870_vm14, %v6719_v36  ;;  %v2820_v38 = vadd.f32 1.0, %v5571_v37  ;;  %v3287_v37 = vld [vmem:[#allocation3 + $0x81] sm:$0xff] }
 0x511   : > { %3272 = vst.msk [vmem:[#allocation3 + $0x92] sm:$0xff] %vm1870_vm14, %v6721_v46  ;;  %v2819_v39 = vadd.f32 1.0, %v5573_v13  ;;  %5110 = vmatprep.mubr.msk.f32.mxu1 %vm1870_vm14, %v6721_v46  ;;  %v3330_v30 = vmax.f32 %v3298_v14, %v3314_v20  ;;  %v3334_v42 = vmax.f32 %v3302_v33, %v3318_v40  ;;  %v3759_v40 = vld [vmem:[%s7124_s14 + $0x18] sm:$0xff] }
 0x512   : > { %5574 = vrcp.f32 %v2820_v38  ;;  %5111 = vmatmul.mubr.msk.f32.gmra.mrb[28].mxu1 %vm1870_vm14, %v6719_v36  ;;  %v3317_v38 = vld [vmem:[#allocation3 + $0x6b] sm:$0xff] }
 0x513   : > { %5576 = vrcp.f32 %v2819_v39 }
 0x518   : > { %v3288_v13 = vld [vmem:[#allocation3 + $0x91] sm:$0xff] }
 0x519   : > { %v3304_v61 = vmax.f32 %v3288_v13, %v6721_v46 }
 0x51c   : > { %v5575_v41 = vpop.eup %5574 }
 0x51d   : > { %v5577_v19 = vpop.eup %5576  ;;  %v6732_v12 = vmul.f32 %v5575_v41, %v2756_v62  ;;  %v3285_v62 = vld [vmem:[#allocation3 + $0x69] sm:$0xff]  ;;  %v3303_v41 = vmax.f32 %v3287_v37, %v6705_v25 }
 0x51e   : > { %v6734_v44 = vmul.f32 %v5577_v19, %v2755_v16  ;;  %v3331_v16 = vmax.f32 %v3299_v22, %v3315_v9  ;;  %v3301_v32 = vmax.f32 %v3285_v62, %v6691_v60  ;;  %v3289_v19 = vld [vmem:[#allocation3 + $0x99] sm:$0xff] }
 0x51f   : > { %3275 = vst.msk [vmem:[#allocation3 + $0xb2] sm:$0xff] %vm1870_vm14, %v6732_v12  ;;  %v3335_v50 = vmax.f32 %v3303_v41, %v3319_v49  ;;  %v3305_v52 = vmax.f32 %v3289_v19, %v6719_v36  ;;  %v3756_v62 = vld [vmem:[%s7124_s14] sm:$0xff] }
 0x520   : > { %3274 = vst.msk [vmem:[#allocation3 + $0xaa] sm:$0xff] %vm1870_vm14, %v6734_v44  ;;  %5113 = vmatprep.mubr.msk.f32.mxu1 %vm1870_vm14, %v6734_v44  ;;  %v3333_v39 = vmax.f32 %v3301_v32, %v3317_v38  ;;  %v5312_v9 = vpack.c.bf16 %v3757_v28, %v3756_v62 }
 0x521   : > { %5114 = vmatmul.mubr.msk.f32.gmra.mrb[30].mxu1 %vm1870_vm14, %v6732_v12 }
 0x522   : > { %5124 = vmatprep.mubr.msk.f32.mxu1 %vm1870_vm14, %v3324_v51  ;;  %v3320_v51 = vld [vmem:[#allocation3 + $0x93] sm:$0xff] }
 0x523   : > { %v3336_v53 = vmax.f32 %v3304_v61, %v3320_v51 }
 0x525   : > { %5125 = vmatmul.mubr.msk.f32.vlgmr.msra.gmra.mrb[32].mxu1 %vm1870_vm14, %v3325_v54  ;;  %v3321_v54 = vld [vmem:[#allocation3 + $0x9b] sm:$0xff] }
 0x526   : > { %5127 = vmatprep.mubr.msk.f32.mxu1 %vm1870_vm14, %v3326_v57  ;;  %v3337_v55 = vmax.f32 %v3305_v52, %v3321_v54  ;;  %v3323_v35 = vld [vmem:[#allocation3 + $0xb3] sm:$0xff] }
 0x527   : > { %v3290_v43 = vld [vmem:[#allocation3 + $0xa9] sm:$0xff]  ;;  %v3291_v6 = vld [vmem:[#allocation3 + $0xb1] sm:$0xff] }
 0x528   : > { %v3306_v58 = vmax.f32 %v3290_v43, %v6734_v44  ;;  %v3322_v56 = vld [vmem:[#allocation3 + $0xab] sm:$0xff]  ;;  %v3307_v57 = vmax.f32 %v3291_v6, %v6732_v12 }
 0x529   : > { %5128 = vmatmul.mubr.msk.f32.gmra.mrb[34].mxu1 %vm1870_vm14, %v3327_v4  ;;  %v3259_v4 = vld [vmem:[%s7121_s11 + $0x8] sm:$0xf] }
 0x52a   : > { %5130 = vmatprep.mubr.msk.f32.mxu1 %vm1870_vm14, %v3328_v47  ;;  %v3338_v59 = vmax.f32 %v3306_v58, %v3322_v56  ;;  %v3339_v63 = vmax.f32 %v3307_v57, %v3323_v35  ;;  %v5306_v5 = vpack.c.bf16 %v3259_v4, %v3258_v2 }
 0x52c   : > { %5308 = vmatprep.subr.msk.bf16.mxu1 %vm6466_vm0, %v5306_v5 }
 0x52d   : > { %5131 = vmatmul.mubr.msk.f32.gmra.mrb[36].mxu1 %vm1870_vm14, %v3329_v7 }
 0x52e   : > { %5133 = vmatprep.mubr.msk.f32.mxu1 %vm1870_vm14, %v3330_v30  ;;  %5311 = vmatpush3.bf16.msk.msra.mxu1 %vm6466_vm0, %v5306_v5 }
 0x52f   : > { %5313 = vmatprep.subr.bf16.mxu1 %v5312_v9 }
 0x531   : > { %5134 = vmatmul.mubr.msk.f32.gmra.mrb[38].mxu1 %vm1870_vm14, %v3331_v16 }
 0x532   : > { %5136 = vmatprep.mubr.msk.f32.mxu1 %vm1870_vm14, %v3332_v26 }
 0x535   : > { %5137 = vmatmul.mubr.msk.f32.gmra.mrb[40].mxu1 %vm1870_vm14, %v3333_v39  ;;  %v3758_v39 = vld [vmem:[%s7124_s14 + $0x10] sm:$0xff] }
 0x536   : > { %5139 = vmatprep.mubr.msk.f32.mxu1 %vm1870_vm14, %v3334_v42  ;;  %v5316_v42 = vpack.c.bf16 %v3759_v40, %v3758_v39 }
 0x539   : > { %5140 = vmatmul.mubr.msk.f32.gmra.mrb[42].mxu1 %vm1870_vm14, %v3335_v50 }
 0x53a   : > { %5142 = vmatprep.mubr.msk.f32.mxu1 %vm1870_vm14, %v3336_v53 }
 0x53d   : > { %5143 = vmatmul.mubr.msk.f32.gmra.mrb[44].mxu1 %vm1870_vm14, %v3337_v55 }
 0x53e   : > { %5145 = vmatprep.mubr.msk.f32.mxu1 %vm1870_vm14, %v3338_v59 }
 0x541   : > { %5146 = vmatmul.mubr.msk.f32.gmra.mrb[46].mxu1 %vm1870_vm14, %v3339_v63 }
 0x589   : > { %v5094_v17 = vpop.f32.mrb[16].mxu1 }
 0x58a   : > { %3067 = vst.msk [vmem:[#allocation2 + $0xb] sm:$0xff] %vm908_vm4, %v5094_v17  ;;  %3108 = vrot.lane.b32.xlu1 %v5094_v17, %s5657_s27  ;;  %v2987_v47 = vpop.f32.mrb[17].mxu1 }
 0x58b   : > { %3066 = vst.msk [vmem:[#allocation2 + $0x3] sm:$0xff] %vm908_vm4, %v2987_v47  ;;  %3106 = vrot.lane.b32.xlu0 %v2987_v47, %s5657_s27 }
 0x58e   : > { %3172 = vrot.lane.b32.xlu1 %v5094_v17, %s5656_s26 }
 0x58f   : > { %3170 = vrot.lane.b32.xlu0 %v2987_v47, %s5656_s26 }
 0x598   : > { %v5097_v14 = vpop.f32.mrb[18].mxu1 }
 0x599   : > { %3069 = vst.msk [vmem:[#allocation2 + $0x23] sm:$0xff] %vm908_vm4, %v5097_v14  ;;  %3112 = vrot.lane.b32.xlu1 %v5097_v14, %s5657_s27  ;;  %v2997_v34 = vpop.f32.mrb[19].mxu1 }
 0x59a   : > { %3068 = vst.msk [vmem:[#allocation2 + $0x1b] sm:$0xff] %vm908_vm4, %v2997_v34  ;;  %3110 = vrot.lane.b32.xlu0 %v2997_v34, %s5657_s27 }
 0x59d   : > { %3176 = vrot.lane.b32.xlu1 %v5097_v14, %s5656_s26 }
 0x59e   : > { %3174 = vrot.lane.b32.xlu0 %v2997_v34, %s5656_s26 }
 0x5a7   : > { %v5100_v21 = vpop.f32.mrb[20].mxu1 }
 0x5a8   : > { %3071 = vst.msk [vmem:[#allocation2 + $0x3b] sm:$0xff] %vm908_vm4, %v5100_v21  ;;  %3116 = vrot.lane.b32.xlu1 %v5100_v21, %s5657_s27  ;;  %v3007_v15 = vpop.f32.mrb[21].mxu1 }
 0x5a9   : > { %3070 = vst.msk [vmem:[#allocation2 + $0x33] sm:$0xff] %vm908_vm4, %v3007_v15  ;;  %3114 = vrot.lane.b32.xlu0 %v3007_v15, %s5657_s27 }
 0x5ac   : > { %3180 = vrot.lane.b32.xlu1 %v5100_v21, %s5656_s26 }
 0x5ad   : > { %3178 = vrot.lane.b32.xlu0 %v3007_v15, %s5656_s26 }
 0x5b6   : > { %v5103_v23 = vpop.f32.mrb[22].mxu1 }
 0x5b7   : > { %3073 = vst.msk [vmem:[#allocation2 + $0x53] sm:$0xff] %vm908_vm4, %v5103_v23  ;;  %3120 = vrot.lane.b32.xlu1 %v5103_v23, %s5657_s27  ;;  %v3017_v7 = vpop.f32.mrb[23].mxu1 }
 0x5b8   : > { %3072 = vst.msk [vmem:[#allocation2 + $0x4b] sm:$0xff] %vm908_vm4, %v3017_v7  ;;  %3118 = vrot.lane.b32.xlu0 %v3017_v7, %s5657_s27 }
 0x5bb   : > { %3184 = vrot.lane.b32.xlu1 %v5103_v23, %s5656_s26 }
 0x5bc   : > { %3182 = vrot.lane.b32.xlu0 %v3017_v7, %s5656_s26 }
 0x5c6   : > { %v5106_v20 = vpop.f32.mrb[24].mxu1 }
 0x5c7   : > { %3075 = vst.msk [vmem:[#allocation2 + $0x6b] sm:$0xff] %vm908_vm4, %v5106_v20  ;;  %3124 = vrot.lane.b32.xlu1 %v5106_v20, %s5657_s27  ;;  %v3027_v22 = vpop.f32.mrb[25].mxu1 }
 0x5c8   : > { %3074 = vst.msk [vmem:[#allocation2 + $0x63] sm:$0xff] %vm908_vm4, %v3027_v22  ;;  %3122 = vrot.lane.b32.xlu0 %v3027_v22, %s5657_s27 }
 0x5cb   : > { %3188 = vrot.lane.b32.xlu1 %v5106_v20, %s5656_s26 }
 0x5cc   : > { %3186 = vrot.lane.b32.xlu0 %v3027_v22, %s5656_s26 }
 0x5d6   : > { %v5109_v30 = vpop.f32.mrb[26].mxu1 }
 0x5d7   : > { %3077 = vst.msk [vmem:[#allocation2 + $0x83] sm:$0xff] %vm908_vm4, %v5109_v30  ;;  %3128 = vrot.lane.b32.xlu1 %v5109_v30, %s5657_s27  ;;  %v3037_v8 = vpop.f32.mrb[27].mxu1 }
 0x5d8   : > { %3076 = vst.msk [vmem:[#allocation2 + $0x7b] sm:$0xff] %vm908_vm4, %v3037_v8  ;;  %3126 = vrot.lane.b32.xlu0 %v3037_v8, %s5657_s27 }
 0x5db   : > { %3192 = vrot.lane.b32.xlu1 %v5109_v30, %s5656_s26 }
 0x5dc   : > { %3190 = vrot.lane.b32.xlu0 %v3037_v8, %s5656_s26 }
 0x5e5   : > { %v5112_v16 = vpop.f32.mrb[28].mxu1 }
 0x5e6   : > { %3079 = vst.msk [vmem:[#allocation2 + $0x9b] sm:$0xff] %vm908_vm4, %v5112_v16  ;;  %3132 = vrot.lane.b32.xlu1 %v5112_v16, %s5657_s27  ;;  %v3047_v31 = vpop.f32.mrb[29].mxu1 }
 0x5e7   : > { %3078 = vst.msk [vmem:[#allocation2 + $0x93] sm:$0xff] %vm908_vm4, %v3047_v31  ;;  %3130 = vrot.lane.b32.xlu0 %v3047_v31, %s5657_s27 }
 0x5ea   : > { %3196 = vrot.lane.b32.xlu1 %v5112_v16, %s5656_s26 }
 0x5eb   : > { %3194 = vrot.lane.b32.xlu0 %v3047_v31, %s5656_s26 }
 0x5f4   : > { %v5115_v32 = vpop.f32.mrb[30].mxu1 }
 0x5f5   : > { %3081 = vst.msk [vmem:[#allocation2 + $0xb3] sm:$0xff] %vm908_vm4, %v5115_v32  ;;  %3136 = vrot.lane.b32.xlu1 %v5115_v32, %s5657_s27  ;;  %v3057_v26 = vpop.f32.mrb[31].mxu1 }
 0x5f6   : > { %3080 = vst.msk [vmem:[#allocation2 + $0xab] sm:$0xff] %vm908_vm4, %v3057_v26  ;;  %3134 = vrot.lane.b32.xlu0 %v3057_v26, %s5657_s27 }
 0x5f9   : > { %3200 = vrot.lane.b32.xlu1 %v5115_v32, %s5656_s26 }
 0x5fa   : > { %3198 = vrot.lane.b32.xlu0 %v3057_v26, %s5656_s26 }
 0x5fc   : > { %v3109_v33 = vpop.permute.xlu1 %3108 }
 0x5fd   : > { %3155 = vst.msk [vmem:[#allocation2 + $0xa] sm:$0xff] %vm998_vm6, %v3109_v33  ;;  %v3107_v37 = vpop.permute.xlu0 %3106 }
 0x5fe   : > { %3234 = vst.msk [vmem:[#allocation2 + $0x11] sm:$0x1] %vm2233_vm1, %v5655_v18 }
 0x5ff   : > { %3154 = vst.msk [vmem:[#allocation2 + $0x2] sm:$0xff] %vm998_vm6, %v3107_v37 }
 0x600   : > { %v3173_v13 = vpop.permute.xlu1 %3172 }
 0x601   : > { %3219 = vst.msk [vmem:[#allocation2 + $0x9] sm:$0xff] %vm1072_vm7, %v3173_v13  ;;  %v3171_v38 = vpop.permute.xlu0 %3170 }
 0x602   : > { %3218 = vst.msk [vmem:[#allocation2 + $0x1] sm:$0xff] %vm1072_vm7, %v3171_v38 }
 0x608   : > { %v3243_v61 = vld [vmem:[#allocation2 + $0xa] sm:$0xff] }
 0x609   : > { %v3242_v41 = vld [vmem:[#allocation2 + $0x2] sm:$0xff] }
 0x60a   : > { %5152 = vmatprep.mubr.msk.f32.mxu1 %vm2537_vm2, %v3242_v41 }
 0x60b   : > { %v3113_v19 = vpop.permute.xlu1 %3112  ;;  %5153 = vmatmul.mubr.msk.f32.vlgmr.msra.gmra.mrb[32].mxu1 %vm2537_vm2, %v3243_v61 }
 0x60c   : > { %3157 = vst.msk [vmem:[#allocation2 + $0x22] sm:$0xff] %vm998_vm6, %v3113_v19  ;;  %v3111_v43 = vpop.permute.xlu0 %3110  ;;  %5315 = vmatpush3.bf16.msra.mxu1 %v5312_v9 }
 0x60d   : > { %3235 = vst.msk [vmem:[#allocation2 + $0x29] sm:$0x1] %vm2233_vm1, %v5655_v18  ;;  %5317 = vmatprep.subr.bf16.mxu1 %v5316_v42 }
 0x60e   : > { %3156 = vst.msk [vmem:[#allocation2 + $0x1a] sm:$0xff] %vm998_vm6, %v3111_v43 }
 0x60f   : > { %v3177_v49 = vpop.permute.xlu1 %3176 }
 0x610   : > { %3221 = vst.msk [vmem:[#allocation2 + $0x21] sm:$0xff] %vm1072_vm7, %v3177_v49  ;;  %v3175_v50 = vpop.permute.xlu0 %3174  ;;  %5319 = vmatpush3.bf16.msra.mxu1 %v5316_v42 }
 0x611   : > { %3220 = vst.msk [vmem:[#allocation2 + $0x19] sm:$0xff] %vm1072_vm7, %v3175_v50 }
 0x617   : > { %v3245_v52 = vld [vmem:[#allocation2 + $0x22] sm:$0xff] }
 0x618   : > { %v3244_v51 = vld [vmem:[#allocation2 + $0x1a] sm:$0xff] }
 0x619   : > { %5155 = vmatprep.mubr.msk.f32.mxu1 %vm2537_vm2, %v3244_v51 }
 0x61a   : > { %5156 = vmatmul.mubr.msk.f32.gmra.mrb[34].mxu1 %vm2537_vm2, %v3245_v52  ;;  %v3117_v53 = vpop.permute.xlu1 %3116 }
 0x61b   : > { %3159 = vst.msk [vmem:[#allocation2 + $0x3a] sm:$0xff] %vm998_vm6, %v3117_v53  ;;  %v3115_v58 = vpop.permute.xlu0 %3114 }
 0x61c   : > { %3236 = vst.msk [vmem:[#allocation2 + $0x41] sm:$0x1] %vm2233_vm1, %v5655_v18 }
 0x61d   : > { %3158 = vst.msk [vmem:[#allocation2 + $0x32] sm:$0xff] %vm998_vm6, %v3115_v58 }
 0x61e   : > { %v3181_v6 = vpop.permute.xlu1 %3180 }
 0x61f   : > { %3223 = vst.msk [vmem:[#allocation2 + $0x39] sm:$0xff] %vm1072_vm7, %v3181_v6  ;;  %v3179_v54 = vpop.permute.xlu0 %3178 }
 0x620   : > { %3222 = vst.msk [vmem:[#allocation2 + $0x31] sm:$0xff] %vm1072_vm7, %v3179_v54 }
 0x626   : > { %v3247_v56 = vld [vmem:[#allocation2 + $0x3a] sm:$0xff] }
 0x627   : > { %v3246_v55 = vld [vmem:[#allocation2 + $0x32] sm:$0xff] }
 0x628   : > { %5158 = vmatprep.mubr.msk.f32.mxu1 %vm2537_vm2, %v3246_v55 }
 0x629   : > { %5159 = vmatmul.mubr.msk.f32.gmra.mrb[36].mxu1 %vm2537_vm2, %v3247_v56  ;;  %v3121_v57 = vpop.permute.xlu1 %3120 }
 0x62a   : > { %3161 = vst.msk [vmem:[#allocation2 + $0x52] sm:$0xff] %vm998_vm6, %v3121_v57  ;;  %v3119_v59 = vpop.permute.xlu0 %3118 }
 0x62b   : > { %3237 = vst.msk [vmem:[#allocation2 + $0x59] sm:$0x1] %vm2233_vm1, %v5655_v18 }
 0x62c   : > { %3160 = vst.msk [vmem:[#allocation2 + $0x4a] sm:$0xff] %vm998_vm6, %v3119_v59 }
 0x62d   : > { %v3185_v35 = vpop.permute.xlu1 %3184 }
 0x62e   : > { %3225 = vst.msk [vmem:[#allocation2 + $0x51] sm:$0xff] %vm1072_vm7, %v3185_v35  ;;  %v3183_v63 = vpop.permute.xlu0 %3182 }
 0x62f   : > { %3224 = vst.msk [vmem:[#allocation2 + $0x49] sm:$0xff] %vm1072_vm7, %v3183_v63 }
 0x635   : > { %v3249_v4 = vld [vmem:[#allocation2 + $0x52] sm:$0xff] }
 0x636   : > { %v3248_v2 = vld [vmem:[#allocation2 + $0x4a] sm:$0xff] }
 0x637   : > { %5161 = vmatprep.mubr.msk.f32.mxu1 %vm2537_vm2, %v3248_v2 }
 0x638   : > { %5162 = vmatmul.mubr.msk.f32.gmra.mrb[38].mxu1 %vm2537_vm2, %v3249_v4 }
 0x639   : > { %v3125_v5 = vpop.permute.xlu1 %3124 }
 0x63a   : > { %3163 = vst.msk [vmem:[#allocation2 + $0x6a] sm:$0xff] %vm998_vm6, %v3125_v5  ;;  %v3123_v17 = vpop.permute.xlu0 %3122 }
 0x63b   : > { %3238 = vst.msk [vmem:[#allocation2 + $0x71] sm:$0x1] %vm2233_vm1, %v5655_v18 }
 0x63c   : > { %3162 = vst.msk [vmem:[#allocation2 + $0x62] sm:$0xff] %vm998_vm6, %v3123_v17 }
 0x63d   : > { %v3189_v47 = vpop.permute.xlu1 %3188 }
 0x63e   : > { %3227 = vst.msk [vmem:[#allocation2 + $0x69] sm:$0xff] %vm1072_vm7, %v3189_v47  ;;  %v3187_v14 = vpop.permute.xlu0 %3186 }
 0x63f   : > { %3226 = vst.msk [vmem:[#allocation2 + $0x61] sm:$0xff] %vm1072_vm7, %v3187_v14 }
 0x645   : > { %v3251_v21 = vld [vmem:[#allocation2 + $0x6a] sm:$0xff] }
 0x646   : > { %v3250_v34 = vld [vmem:[#allocation2 + $0x62] sm:$0xff] }
 0x647   : > { %5164 = vmatprep.mubr.msk.f32.mxu1 %vm2537_vm2, %v3250_v34 }
 0x648   : > { %5165 = vmatmul.mubr.msk.f32.gmra.mrb[40].mxu1 %vm2537_vm2, %v3251_v21 }
 0x649   : > { %v3129_v15 = vpop.permute.xlu1 %3128 }
 0x64a   : > { %3165 = vst.msk [vmem:[#allocation2 + $0x82] sm:$0xff] %vm998_vm6, %v3129_v15  ;;  %v3127_v23 = vpop.permute.xlu0 %3126 }
 0x64b   : > { %3239 = vst.msk [vmem:[#allocation2 + $0x89] sm:$0x1] %vm2233_vm1, %v5655_v18 }
 0x64c   : > { %3164 = vst.msk [vmem:[#allocation2 + $0x7a] sm:$0xff] %vm998_vm6, %v3127_v23 }
 0x64d   : > { %v3193_v7 = vpop.permute.xlu1 %3192 }
 0x64e   : > { %3229 = vst.msk [vmem:[#allocation2 + $0x81] sm:$0xff] %vm1072_vm7, %v3193_v7  ;;  %v3191_v20 = vpop.permute.xlu0 %3190 }
 0x64f   : > { %3228 = vst.msk [vmem:[#allocation2 + $0x79] sm:$0xff] %vm1072_vm7, %v3191_v20 }
 0x655   : > { %v3253_v30 = vld [vmem:[#allocation2 + $0x82] sm:$0xff] }
 0x656   : > { %v3252_v22 = vld [vmem:[#allocation2 + $0x7a] sm:$0xff] }
 0x657   : > { %5167 = vmatprep.mubr.msk.f32.mxu1 %vm2537_vm2, %v3252_v22 }
 0x658   : > { %v3133_v8 = vpop.permute.xlu1 %3132  ;;  %5168 = vmatmul.mubr.msk.f32.gmra.mrb[42].mxu1 %vm2537_vm2, %v3253_v30 }
 0x659   : > { %3167 = vst.msk [vmem:[#allocation2 + $0x9a] sm:$0xff] %vm998_vm6, %v3133_v8  ;;  %v3131_v62 = vpop.permute.xlu0 %3130 }
 0x65a   : > { %3240 = vst.msk [vmem:[#allocation2 + $0xa1] sm:$0x1] %vm2233_vm1, %v5655_v18 }
 0x65b   : > { %3166 = vst.msk [vmem:[#allocation2 + $0x92] sm:$0xff] %vm998_vm6, %v3131_v62 }
 0x65c   : > { %v3197_v28 = vpop.permute.xlu1 %3196 }
 0x65d   : > { %3231 = vst.msk [vmem:[#allocation2 + $0x99] sm:$0xff] %vm1072_vm7, %v3197_v28  ;;  %v3195_v9 = vpop.permute.xlu0 %3194 }
 0x65e   : > { %3230 = vst.msk [vmem:[#allocation2 + $0x91] sm:$0xff] %vm1072_vm7, %v3195_v9 }
 0x664   : > { %v3255_v31 = vld [vmem:[#allocation2 + $0x9a] sm:$0xff] }
 0x665   : > { %v3254_v16 = vld [vmem:[#allocation2 + $0x92] sm:$0xff] }
 0x666   : > { %5170 = vmatprep.mubr.msk.f32.mxu1 %vm2537_vm2, %v3254_v16 }
 0x667   : > { %5171 = vmatmul.mubr.msk.f32.gmra.mrb[44].mxu1 %vm2537_vm2, %v3255_v31  ;;  %v3137_v32 = vpop.permute.xlu1 %3136 }
 0x668   : > { %3169 = vst.msk [vmem:[#allocation2 + $0xb2] sm:$0xff] %vm998_vm6, %v3137_v32  ;;  %v3135_v26 = vpop.permute.xlu0 %3134 }
 0x669   : > { %3241 = vst.msk [vmem:[#allocation2 + $0xb9] sm:$0x1] %vm2233_vm1, %v5655_v18 }
 0x66a   : > { %3168 = vst.msk [vmem:[#allocation2 + $0xaa] sm:$0xff] %vm998_vm6, %v3135_v26 }
 0x66b   : > { %v3201_v33 = vpop.permute.xlu1 %3200 }
 0x66c   : > { %3233 = vst.msk [vmem:[#allocation2 + $0xb1] sm:$0xff] %vm1072_vm7, %v3201_v33  ;;  %v3199_v37 = vpop.permute.xlu0 %3198 }
 0x66d   : > { %3232 = vst.msk [vmem:[#allocation2 + $0xa9] sm:$0xff] %vm1072_vm7, %v3199_v37  ;;  %vm4219_vm7 = vcmask 1045504  }
 0x673   : > { %v3257_v38 = vld [vmem:[#allocation2 + $0xb2] sm:$0xff] }
 0x674   : > { %v3256_v13 = vld [vmem:[#allocation2 + $0xaa] sm:$0xff] }
 0x675   : > { %5173 = vmatprep.mubr.msk.f32.mxu1 %vm2537_vm2, %v3256_v13 }
 0x676   : > { %5174 = vmatmul.mubr.msk.f32.gmra.mrb[46].mxu1 %vm2537_vm2, %v3257_v38 }
 0x677   : > { %5184 = vmatprep.mubr.msk.f32.mxu1 %vm1870_vm14, %v6637_v3  ;;  %v6947_v3 = vld [vmem:[%s7123_s13] ss:$0 sm:$0xff] }
 0x67a   : > { %5185 = vmatmul.mubr.msk.f32.vlgmr.msra.gmra.mrb[32].mxu1 %vm1870_vm14, %v6635_v1  ;;  %v5661_v1 = vmov 0.0|0.0  }
 0x67b   : > { %5187 = vmatprep.mubr.msk.f32.mxu1 %vm1870_vm14, %v6651_v29  ;;  %5320 = vmatprep.subr.bf16.mxu0 %v5661_v1  ;;  %v6952_v29 = vld [vmem:[%s7125_s15] ss:$0 sm:$0xff] }
 0x67e   : > { %5188 = vmatmul.mubr.msk.f32.gmra.mrb[34].mxu1 %vm1870_vm14, %v6649_v27 }
 0x67f   : > { %5190 = vmatprep.mubr.msk.f32.mxu1 %vm1870_vm14, %v6665_v11 }
 0x682   : > { %5191 = vmatmul.mubr.msk.f32.gmra.mrb[36].mxu1 %vm1870_vm14, %v6663_v10 }
 0x683   : > { %5193 = vmatprep.mubr.msk.f32.mxu1 %vm1870_vm14, %v6679_v48 }
 0x686   : > { %5194 = vmatmul.mubr.msk.f32.gmra.mrb[38].mxu1 %vm1870_vm14, %v6677_v45 }
 0x687   : > { %5196 = vmatprep.mubr.msk.f32.mxu1 %vm1870_vm14, %v6693_v24 }
 0x68a   : > { %5197 = vmatmul.mubr.msk.f32.gmra.mrb[40].mxu1 %vm1870_vm14, %v6691_v60 }
 0x68b   : > { %5199 = vmatprep.mubr.msk.f32.mxu1 %vm1870_vm14, %v6707_v0 }
 0x68e   : > { %5200 = vmatmul.mubr.msk.f32.gmra.mrb[42].mxu1 %vm1870_vm14, %v6705_v25 }
 0x68f   : > { %5202 = vmatprep.mubr.msk.f32.mxu1 %vm1870_vm14, %v6721_v46 }
 0x692   : > { %5203 = vmatmul.mubr.msk.f32.gmra.mrb[44].mxu1 %vm1870_vm14, %v6719_v36 }
 0x693   : > { %5205 = vmatprep.mubr.msk.f32.mxu1 %vm1870_vm14, %v6734_v44 }
 0x696   : > { %5206 = vmatmul.mubr.msk.f32.gmra.mrb[46].mxu1 %vm1870_vm14, %v6732_v12 }
 0x74d   : > { %v5186_v27 = vpop.f32.mrb[32].mxu1 }
 0x74e   : > { %v5364_v10 = vadd.f32 %v5186_v27, %v6947_v3  ;;  %v3826_v11 = vpop.f32.mrb[33].mxu1 }
 0x74f   : > { %v5365_v45 = vadd.f32 %v6947_v3, %v3826_v11 }
 0x750   : > { %v6957_v48 = vadd.f32 %v5364_v10, %v6952_v29 }
 0x751   : > { %v6960_v60 = vadd.f32 %v5365_v45, %v6952_v29  ;;  %v5189_v24 = vpop.f32.mrb[34].mxu1 }
 0x752   : > { %v4669_v25 = vmul.f32 -1.442695, %v6957_v48  ;;  %v5366_v0 = vadd.f32 %v5189_v24, %v6947_v3  ;;  %v3836_v36 = vpop.f32.mrb[35].mxu1 }
 0x753   : > { %v4668_v46 = vmul.f32 -1.442695, %v6960_v60  ;;  %v5367_v12 = vadd.f32 %v6947_v3, %v3836_v36 }
 0x754   : > { %5578 = vpow2.f32 %v4669_v25  ;;  %v6967_v44 = vadd.f32 %v5366_v0, %v6952_v29 }
 0x755   : > { %5580 = vpow2.f32 %v4668_v46  ;;  %v6970_v39 = vadd.f32 %v5367_v12, %v6952_v29  ;;  %v5192_v40 = vpop.f32.mrb[36].mxu1 }
 0x756   : > { %v4671_v41 = vmul.f32 -1.442695, %v6967_v44  ;;  %v5368_v42 = vadd.f32 %v5192_v40, %v6947_v3  ;;  %v3846_v61 = vpop.f32.mrb[37].mxu1 }
 0x757   : > { %v4670_v19 = vmul.f32 -1.442695, %v6970_v39  ;;  %v5369_v43 = vadd.f32 %v6947_v3, %v3846_v61 }
 0x758   : > { %5582 = vpow2.f32 %v4671_v41  ;;  %v6977_v49 = vadd.f32 %v5368_v42, %v6952_v29 }
 0x759   : > { %5584 = vpow2.f32 %v4670_v19  ;;  %v6980_v50 = vadd.f32 %v5369_v43, %v6952_v29  ;;  %v5195_v51 = vpop.f32.mrb[38].mxu1 }
 0x75a   : > { %v4673_v52 = vmul.f32 -1.442695, %v6977_v49  ;;  %v5370_v53 = vadd.f32 %v5195_v51, %v6947_v3  ;;  %v3856_v58 = vpop.f32.mrb[39].mxu1 }
 0x75b   : > { %v4672_v6 = vmul.f32 -1.442695, %v6980_v50  ;;  %v5371_v54 = vadd.f32 %v6947_v3, %v3856_v58 }
 0x75c   : > { %5586 = vpow2.f32 %v4673_v52  ;;  %v6987_v55 = vadd.f32 %v5370_v53, %v6952_v29 }
 0x75d   : > { %5588 = vpow2.f32 %v4672_v6  ;;  %v6990_v56 = vadd.f32 %v5371_v54, %v6952_v29  ;;  %v5198_v57 = vpop.f32.mrb[40].mxu1 }
 0x75e   : > { %v5579_v59 = vpop.eup %5578  ;;  %v4675_v35 = vmul.f32 -1.442695, %v6987_v55  ;;  %v5372_v63 = vadd.f32 %v5198_v57, %v6947_v3  ;;  %v3866_v2 = vpop.f32.mrb[41].mxu1 }
 0x75f   : > { %v5581_v4 = vpop.eup %5580  ;;  %v3993_v5 = vadd.f32 1.0, %v5579_v59  ;;  %v4674_v17 = vmul.f32 -1.442695, %v6990_v56  ;;  %v5373_v47 = vadd.f32 %v6947_v3, %v3866_v2 }
 0x760   : > { %v3992_v14 = vadd.f32 1.0, %v5581_v4  ;;  %5590 = vpow2.f32 %v4675_v35  ;;  %v6997_v34 = vadd.f32 %v5372_v63, %v6952_v29 }
 0x761   : > { %5592 = vrcp.f32 %v3993_v5  ;;  %v7000_v21 = vadd.f32 %v5373_v47, %v6952_v29  ;;  %v5201_v15 = vpop.f32.mrb[42].mxu1 }
 0x762   : > { %v5583_v23 = vpop.eup %5582  ;;  %5594 = vrcp.f32 %v3992_v14  ;;  %v4677_v7 = vmul.f32 -1.442695, %v6997_v34  ;;  %v5374_v20 = vadd.f32 %v5201_v15, %v6947_v3  ;;  %v3876_v22 = vpop.f32.mrb[43].mxu1 }
 0x763   : > { %v5585_v30 = vpop.eup %5584  ;;  %v3995_v8 = vadd.f32 1.0, %v5583_v23  ;;  %5596 = vpow2.f32 %v4674_v17  ;;  %v4676_v62 = vmul.f32 -1.442695, %v7000_v21  ;;  %v5375_v28 = vadd.f32 %v6947_v3, %v3876_v22 }
 0x764   : > { %v3994_v9 = vadd.f32 1.0, %v5585_v30  ;;  %5598 = vpow2.f32 %v4677_v7  ;;  %v7007_v16 = vadd.f32 %v5374_v20, %v6952_v29 }
 0x765   : > { %5600 = vrcp.f32 %v3995_v8  ;;  %v7010_v31 = vadd.f32 %v5375_v28, %v6952_v29  ;;  %v5204_v32 = vpop.f32.mrb[44].mxu1 }
 0x766   : > { %v5587_v26 = vpop.eup %5586  ;;  %5602 = vrcp.f32 %v3994_v9  ;;  %v4679_v33 = vmul.f32 -1.442695, %v7007_v16  ;;  %v5376_v37 = vadd.f32 %v5204_v32, %v6947_v3  ;;  %v3886_v13 = vpop.f32.mrb[45].mxu1 }
 0x767   : > { %v5589_v38 = vpop.eup %5588  ;;  %v3997_v27 = vadd.f32 1.0, %v5587_v26  ;;  %5604 = vpow2.f32 %v4676_v62  ;;  %v4678_v10 = vmul.f32 -1.442695, %v7010_v31  ;;  %v5377_v11 = vadd.f32 %v6947_v3, %v3886_v13 }
 0x768   : > { %v3996_v45 = vadd.f32 1.0, %v5589_v38  ;;  %5606 = vpow2.f32 %v4679_v33  ;;  %v7017_v24 = vadd.f32 %v5376_v37, %v6952_v29  ;;  %v4056_v37 = vlaneseq }
 0x769   : > { %5608 = vrcp.f32 %v3997_v27  ;;  %v7020_v25 = vadd.f32 %v5377_v11, %v6952_v29  ;;  %v5207_v0 = vpop.f32.mrb[46].mxu1 }
 0x76a   : > { %v5591_v36 = vpop.eup %5590  ;;  %5610 = vrcp.f32 %v3996_v45  ;;  %v4681_v46 = vmul.f32 -1.442695, %v7017_v24  ;;  %v5378_v12 = vadd.f32 %v5207_v0, %v6947_v3  ;;  %v3896_v40 = vpop.f32.mrb[47].mxu1 }
 0x76b   : > { %v5593_v41 = vpop.eup %5592  ;;  %v3999_v42 = vadd.f32 1.0, %v5591_v36  ;;  %5612 = vpow2.f32 %v4678_v10  ;;  %v4680_v61 = vmul.f32 -1.442695, %v7020_v25  ;;  %v5379_v19 = vadd.f32 %v6947_v3, %v3896_v40 }
 0x76c   : > { %v5595_v43 = vpop.eup %5594  ;;  %v4041_v51 = vmul.f32 %v5593_v41, %v6957_v48  ;;  %5614 = vpow2.f32 %v4681_v46  ;;  %v7028_v52 = vadd.f32 %v5378_v12, %v6952_v29  ;;  %v4057_v36 = vshrl.u32 %v4056_v37, 7 }
 0x76d   : > { %v5597_v53 = vpop.eup %5596  ;;  %v4040_v58 = vmul.f32 %v5595_v43, %v6960_v60  ;;  %5616 = vrcp.f32 %v3999_v42  ;;  %v7032_v6 = vadd.f32 %v5379_v19, %v6952_v29 }
 0x76e   : > { %v5599_v54 = vpop.eup %5598  ;;  %v3998_v57 = vadd.f32 1.0, %v5597_v53  ;;  %5618 = vpow2.f32 %v4680_v61  ;;  %v4683_v59 = vmul.f32 -1.442695, %v7028_v52  ;;  %v4060_v42 = vmul.u32 16, %v4057_v36 }
 0x76f   : > { %v5601_v3 = vpop.eup %5600  ;;  %v5321_v35 = vpack.c.bf16 %v4041_v51, %v4040_v58  ;;  %v4001_v63 = vadd.f32 1.0, %v5599_v54  ;;  %v4682_v48 = vmul.f32 -1.442695, %v7032_v6  ;;  %v4059_v51 = vand.u32 127, %v4056_v37 }
 0x770   : > { %v5603_v2 = vpop.eup %5602  ;;  %v4043_v4 = vmul.f32 %v5601_v3, %v6967_v44  ;;  %5620 = vrcp.f32 %v3998_v57  ;;  %v5663_v3 = vmov 0.0625  }
 0x771   : > { %v5605_v5 = vpop.eup %5604  ;;  %v4042_v60 = vmul.f32 %v5603_v2, %v6970_v39  ;;  %5622 = vrcp.f32 %v4001_v63  ;;  %5322 = vmatpush3.bf16.msra.mxu0 %v5321_v35  ;;  %vm4061_vm4 = vcmp.ge.s32.totalorder %v4059_v51, %v4060_v42  ;;  %v4137_v63 = vld [vmem:[%s7126_s16] sm:$0x3f] }
 0x772   : > { %v5607_v29 = vpop.eup %5606  ;;  %v4000_v17 = vadd.f32 1.0, %v5605_v5  ;;  %5624 = vpow2.f32 %v4683_v59  ;;  %5323 = vmatprep.subr.bf16.mxu0 %v5661_v1  ;;  %v4141_v59 = vld [vmem:[%s7127_s17 + $0x18] sm:$0xff]  ;;  %v4136_v2 = vld [vmem:[%s672_s5] sm:$0xff] }
 0x773   : > { %v5609_v47 = vpop.eup %5608  ;;  %v5324_v14 = vpack.c.bf16 %v4043_v4, %v4042_v60  ;;  %v4003_v15 = vadd.f32 1.0, %v5607_v29  ;;  %5626 = vpow2.f32 %v4682_v48  ;;  %v4308_v4 = vld [vmem:[%s7129_s19] sm:$0xff] }
 0x774   : > { %v5611_v23 = vpop.eup %5610  ;;  %v4045_v7 = vmul.f32 %v5609_v47, %v6977_v49  ;;  %5628 = vrcp.f32 %v4000_v17  ;;  %v4688_v17 = vld [vmem:[%s7128_s18] ss:$0 sm:$0xff] }
 0x775   : > { %v5613_v44 = vpop.eup %5612  ;;  %v4044_v20 = vmul.f32 %v5611_v23, %v6980_v50  ;;  %5630 = vrcp.f32 %v4003_v15  ;;  %5325 = vmatpush3.bf16.msra.mxu0 %v5324_v14 }
 0x776   : > { %v5615_v39 = vpop.eup %5614  ;;  %v4002_v22 = vadd.f32 1.0, %v5613_v44  ;;  %5326 = vmatprep.subr.bf16.mxu0 %v5661_v1 }
 0x777   : > { %v5617_v30 = vpop.eup %5616  ;;  %v5327_v8 = vpack.c.bf16 %v4045_v7, %v4044_v20  ;;  %v4005_v62 = vadd.f32 1.0, %v5615_v39  ;;  %v4690_v39 = vld [vmem:[%s7130_s20] ss:$0 sm:$0xff] }
 0x778   : > { %v5619_v28 = vpop.eup %5618  ;;  %5632 = vrcp.f32 %v4002_v22  ;;  %v4047_v9 = vmul.f32 %v5617_v30, %v6987_v55 }
 0x779   : > { %5634 = vrcp.f32 %v4005_v62  ;;  %v4004_v32 = vadd.f32 1.0, %v5619_v28  ;;  %5328 = vmatpush3.bf16.msra.mxu0 %v5327_v8 }
 0x77a   : > { %v5621_v49 = vpop.eup %5620  ;;  %5329 = vmatprep.subr.bf16.mxu0 %v5661_v1 }
 0x77b   : > { %v5623_v50 = vpop.eup %5622  ;;  %v4046_v26 = vmul.f32 %v5621_v49, %v6990_v56  ;;  %5636 = vrcp.f32 %v4004_v32 }
 0x77c   : > { %v5625_v33 = vpop.eup %5624  ;;  %v4049_v27 = vmul.f32 %v5623_v50, %v6997_v34 }
 0x77d   : > { %v5627_v13 = vpop.eup %5626  ;;  %v5330_v38 = vpack.c.bf16 %v4047_v9, %v4046_v26  ;;  %v4007_v10 = vadd.f32 1.0, %v5625_v33 }
 0x77e   : > { %v5629_v11 = vpop.eup %5628  ;;  %v4006_v45 = vadd.f32 1.0, %v5627_v13 }
 0x77f   : > { %v5631_v55 = vpop.eup %5630  ;;  %v4048_v0 = vmul.f32 %v5629_v11, %v7000_v21  ;;  %5638 = vrcp.f32 %v4007_v10  ;;  %5331 = vmatpush3.bf16.msra.mxu0 %v5330_v38 }
 0x780   : > { %5640 = vrcp.f32 %v4006_v45  ;;  %5332 = vmatprep.subr.bf16.mxu0 %v5661_v1  ;;  %v4051_v46 = vmul.f32 %v5631_v55, %v7007_v16  ;;  %v4062_v16 = vadd.s32 16, %v4060_v42 }
 0x781   : > { %v5333_v56 = vpack.c.bf16 %v4049_v27, %v4048_v0 }
 0x782   : > { %v5633_v12 = vpop.eup %5632  ;;  %vm4063_vm5 = vcmp.lt.s32.totalorder %v4059_v51, %v4062_v16 }
 0x783   : > { %v5635_v40 = vpop.eup %5634  ;;  %v4050_v41 = vmul.f32 %v5633_v12, %v7010_v31  ;;  %5334 = vmatpush3.bf16.msra.mxu0 %v5333_v56  ;;  %vm4064_vm6 = vmand %vm4061_vm4, %vm4063_vm5 }
 0x784   : > { %v4053_v34 = vmul.f32 %v5635_v40, %v7017_v24  ;;  %5335 = vmatprep.subr.bf16.mxu0 %v5661_v1  ;;  %v4138_v24 = vld [vmem:[%s7127_s17] sm:$0xff] }
 0x785   : > { %v5637_v21 = vpop.eup %5636  ;;  %v5336_v61 = vpack.c.bf16 %v4051_v46, %v4050_v41 }
 0x786   : > { %v4052_v19 = vmul.f32 %v5637_v21, %v7020_v25  ;;  %v4139_v25 = vld [vmem:[%s7127_s17 + $0x8] sm:$0xff] }
 0x787   : > { %5337 = vmatpush3.bf16.msra.mxu0 %v5336_v61 }
 0x788   : > { %v5339_v43 = vpack.c.bf16 %v4053_v34, %v4052_v19  ;;  %5338 = vmatprep.subr.bf16.mxu0 %v5661_v1 }
 0x789   : > { %v5639_v53 = vpop.eup %5638 }
 0x78a   : > { %v5641_v58 = vpop.eup %5640  ;;  %v4055_v31 = vmul.f32 %v5639_v53, %v7028_v52  ;;  %v5345_v52 = vpack.c.bf16 %v4139_v25, %v4138_v24 }
 0x78b   : > { %v4054_v54 = vmul.f32 %v5641_v58, %v7032_v6  ;;  %5340 = vmatpush3.bf16.msra.mxu0 %v5339_v43  ;;  %v4140_v6 = vld [vmem:[%s7127_s17 + $0x10] sm:$0xff] }
 0x78c   : > { %5341 = vmatprep.subr.bf16.mxu0 %v5661_v1  ;;  %v5348_v35 = vpack.c.bf16 %v4141_v59, %v4140_v6 }
 0x78d   : > { %v5342_v57 = vpack.c.bf16 %v4055_v31, %v4054_v54 }
 0x78f   : > { %5343 = vmatpush3.bf16.msra.mxu0 %v5342_v57 }
 0x790   : > { %5344 = vmatprep.subr.bf16.mxu0 %v5661_v1 }
 0x792   : > { %5241 = vmatmul.mubr.msk.f32.vlgmr.msra.gmra.mrb[60].mxu0 %vm4064_vm6, %v5663_v3 }
 0x793   : > { %5346 = vmatpush3.bf16.msra.mxu0 %v5345_v52  ;;  %5251 = vmatprep.mubr.msk.f32.mxu0 %vm5662_vm3, %v5655_v18 }
 0x794   : > { %5347 = vmatprep.subr.bf16.mxu0 %v5661_v1 }
 0x797   : > { %5349 = vmatpush3.bf16.msra.mxu0 %v5348_v35 }
 0x798   : > { %5254 = vmatprep.subr.mxu0 %v5655_v18 }
 0x865   : > { %v4132_v1 = vpop.f32.mrb[60].mxu0 }
 0x866   : > { %v5242_v48 = vpop.f32.mrb[61].mxu0  ;;  %5252 = vmatmul.mubr.msk.f32.vlgmr.msra.gmra.mrb[62].mxu0 %vm1870_vm14, %v4132_v1 }
 0x867   : > { %5255 = vmatpush3.msk.msra.mxu0 %vm4219_vm7, %v4137_v63  ;;  %5256 = vmatprep.mubr.msk.f32.mxu0 %vm5662_vm3, %v5655_v18 }
 0x868   : > { %5259 = vmatprep.subr.mxu0 %v5655_v18 }
 0x86a   : > { %5257 = vmatmul.mubr.msk.f32.vlgmr.msra.gmra.mrb[64].mxu0 %vm4215_vm8, %v4136_v2 }
 0x86b   : > { %5261 = vmatprep.mubr.msk.f32.mxu0 %vm5662_vm3, %v5655_v18  ;;  %5260 = vmatpush3.msra.mxu0 %v4308_v4 }
 0x939   : > { %v4211_v5 = vpop.f32.mrb[62].mxu0 }
 0x93a   : > { %v5253_v60 = vpop.f32.mrb[63].mxu0 }
 0x93d   : > { %v4289_v29 = vpop.f32.mrb[64].mxu0 }
 0x93e   : > { %v4290_v47 = vadd.f32 %v4289_v29, %v4211_v5  ;;  %v5258_v14 = vpop.f32.mrb[65].mxu0 }
 0x940   : > { %v4300_v15 = vadd.f32 %v4688_v17, %v4290_v47 }
 0x942   : > { %v4689_v23 = vmul.f32 -1.442695, %v4300_v15 }
 0x944   : > { %5642 = vpow2.f32 %v4689_v23 }
 0x94e   : > { %v5643_v7 = vpop.eup %5642 }
 0x94f   : > { %v4304_v18 = vadd.f32 1.0, %v5643_v7 }
 0x951   : > { %5644 = vrcp.f32 %v4304_v18 }
 0x95b   : > { %v5645_v44 = vpop.eup %5644 }
 0x95c   : > { %v4307_v20 = vmul.f32 %v5645_v44, %v4300_v15 }
 0x95e   : > { %5262 = vmatmul.mubr.msk.f32.vlgmr.msra.gmra.mrb[66].mxu0 %vm4316_vm9, %v4307_v20 }
 0xa31   : > { %v4386_v22 = vpop.f32.mrb[66].mxu0 }
 0xa32   : > { %v4387_v30 = vadd.f32 %v4690_v39, %v4386_v22  ;;  %v5263_v8 = vpop.f32.mrb[67].mxu0 }
 0xa34   : > { %4391 = vst.msk [vmem:[%s676_s4] sm:$0xff] %vm4390_vm10, %v4387_v30 }
 0xa35 PF: > { %s31_s2 = sadd.s32 1, %s5652_s2  }
 0xa36   : > { %p28_p5 = scmp.ge.s32.totalorder %s31_s2, 4  }
 0xa38   :  { %30 = sbr.rel (!%p28_p5) target bundleno = 7 (0x7), region = 137 }

</bundles_post_ra>
